<compile_context>
chip_gen: v7x
topology: tpu7x:2x2x1
jax: 0.10.0
libtpu: 0.0.40
codegen_flags: <defaults>
</compile_context>

<pallas_src>
import functools

import jax
import jax.numpy as jnp
import numpy as np
from jax import lax
from jax.experimental import pallas as pl
from jax.experimental.pallas import tpu as pltpu


def _conv_block_kernel(x_ref, w1_ref, b1_ref, w2_ref, b2_ref, o_ref, p2_ref,
                       *, wp, w_valid, m0):
    """Fused conv3x3 -> (folded BN) -> ReLU -> conv3x3 -> (folded BN) -> ReLU
    for one batch element, on zero-padded spatially-flattened rows.

    x_ref  : (1, Rk, 3*C_in) bf16   padded, row-flattened NHWC input with the
                                    3 kx taps pre-fused along channels
    w1_ref : (3, 3*C_in, C_mid) bf16  BN1-folded conv1 weights, indexed by ky
    b1_ref : (1, C_mid) f32           BN1-folded conv1 bias
    w2_ref : (9, C_out, C_mid) bf16   BN2-folded conv2 weights (pre-transposed)
    b2_ref : (C_out, 1) f32           BN2-folded conv2 bias
    o_ref  : (1, C_out, M)            output, channels-major (lane-dense)
    p2_ref : (Rp2, C_mid) f32         VMEM scratch: re-padded conv1 activation
    """
    c_mid = w1_ref.shape[2]
    c_out = o_ref.shape[1]
    m = o_ref.shape[2]                 # lane-dense flattened output extent
    rp = p2_ref.shape[0]
    n_rows = m0 // wp                  # = H (image rows)

    # ---- conv1 + folded BN1 + ReLU: 3 ky taps, each (m0, 3*C_in)@(3*C_in, C_mid)
    acc1 = jnp.zeros((m0, c_mid), jnp.float32)
    for ky in range(3):
        x_tap = x_ref[0, ky * wp:ky * wp + m0, :]        # sublane-aligned slice
        acc1 = acc1 + jnp.dot(x_tap, w1_ref[ky],
                              preferred_element_type=jnp.float32)
    h1 = jnp.maximum(acc1 + b1_ref[...], 0.0)

    # ---- re-pad conv1 activation into scratch (flat layout; shift = wp + 1).
    # Only the halos and the per-row wrap-around bands are zeroed (they act as
    # conv2's zero padding); the interior is fully overwritten by h1.
    zeros = lambda n: jnp.zeros((n, c_mid), p2_ref.dtype)
    p2_ref[0:wp + 1, :] = zeros(wp + 1)                          # top halo
    p2_ref[wp + 1 + m0:rp, :] = zeros(rp - wp - 1 - m0)          # bottom halo
    p2_ref[wp + 1:wp + 1 + m0, :] = h1.astype(p2_ref.dtype)      # interior
    for h in range(n_rows):                                      # wrap columns
        r0 = wp + 1 + h * wp + w_valid
        p2_ref[r0:r0 + (wp - w_valid), :] = zeros(wp - w_valid)

    # ---- conv2 + folded BN2 + ReLU, accumulated directly in (C_out, m) layout
    acc2 = jnp.zeros((c_out, m), jnp.float32)
    for ky in range(3):
        for kx in range(3):
            off = ky * wp + kx
            h_tap = p2_ref[off:off + m, :].astype(jnp.bfloat16)
            # out[co, n] = sum_ci w2[t, co, ci] * h_tap[n, ci]
            acc2 = acc2 + lax.dot_general(
                w2_ref[ky * 3 + kx], h_tap,
                dimension_numbers=(((1,), (1,)), ((), ())),
                preferred_element_type=jnp.float32)
    o_ref[0] = jnp.maximum(acc2 + b2_ref[...], 0.0).astype(o_ref.dtype)


def _round_up(v, m):
    return -(-v // m) * m


def _fold_bn_into_conv(w, b, gamma, beta, mean, var, eps):
    """Fold eval-mode BatchNorm into the preceding conv (HWIO weights)."""
    s = gamma * lax.rsqrt(var + eps)                  # (C_out,)
    return w * s[None, None, None, :], (b - mean) * s + beta


@functools.partial(jax.jit, static_argnames=("eps",))
def conv_block_forward(x, w1, b1, g1, be1, rm1, rv1,
                       w2, b2, g2, be2, rm2, rv2, eps=1e-5):
    """JAX/Pallas equivalent of conv_block.forward (eval-mode BatchNorm).

    x: (B, C_in, H, W) NCHW; conv weights are HWIO.  Returns (B, C_out, H, W).
    """
    B, C_in, H, W = x.shape
    C_mid = w1.shape[-1]
    C_out = w2.shape[-1]

    # Flattened-row geometry.
    Wp = _round_up(W + 2, 8)        # padded width (>= W+2, sublane friendly)
    M0 = H * Wp                     # valid flattened output rows per image
    M = _round_up(M0, 128)          # lane-dense flattened output extent
    Rk = M0 + 2 * Wp                # kx-fused padded input rows read by conv1
    Rp2 = M + 2 * Wp + 8            # re-padded intermediate rows (scratch)

    # ---- fold eval-mode BN into conv weights/bias (algebraic fusion) --------
    w1f, b1f = _fold_bn_into_conv(w1, b1, g1, be1, rm1, rv1, eps)
    w2f, b2f = _fold_bn_into_conv(w2, b2, g2, be2, rm2, rv2, eps)
    w1k = w1f.reshape(3, 3 * C_in, C_mid).astype(jnp.bfloat16)
    w2k = (w2f.reshape(9, C_mid, C_out).transpose(0, 2, 1)
           .astype(jnp.bfloat16))                        # (9, C_out, C_mid)
    b1k = b1f.reshape(1, C_mid).astype(jnp.float32)
    b2k = b2f.reshape(C_out, 1).astype(jnp.float32)

    # ---- NCHW -> padded NHWC (bf16), flatten, fuse the 3 kx taps ------------
    Hp = -(-(Rk + 2) // Wp)                              # = H + 3
    x_nhwc = jnp.transpose(x, (0, 2, 3, 1)).astype(jnp.bfloat16)
    x_pad = jnp.pad(x_nhwc, ((0, 0), (1, Hp - H - 1), (1, Wp - W - 1), (0, 0)))
    x_flat = x_pad.reshape(B, Hp * Wp, C_in)
    x_k = jnp.concatenate([x_flat[:, kx:kx + Rk, :] for kx in range(3)],
                          axis=-1)                        # (B, Rk, 3*C_in)

    kernel = functools.partial(_conv_block_kernel, wp=Wp, w_valid=W, m0=M0)

    out_itemsize = jnp.dtype(x.dtype).itemsize
    block_bytes = (Rk * 3 * C_in * 2 + 3 * 3 * C_in * C_mid * 2 + C_mid * 4
                   + 9 * C_out * C_mid * 2 + C_out * 4
                   + C_out * M * out_itemsize)
    scratch_bytes = Rp2 * C_mid * 4
    vmem_limit = int(min(4 * block_bytes + scratch_bytes + (8 << 20),
                         100 << 20))

    flops = 2 * B * (M0 * (9 * C_in) * C_mid + M * (9 * C_mid) * C_out)
    bytes_accessed = int(B * (Rk * 3 * C_in * 2 + C_out * M * out_itemsize)
                         + 27 * C_in * C_mid * 2 + 9 * C_mid * C_out * 2)

    out_flat = pl.pallas_call(
        kernel,
        out_shape=jax.ShapeDtypeStruct((B, C_out, M), x.dtype),
        grid_spec=pltpu.PrefetchScalarGridSpec(
            num_scalar_prefetch=0,
            grid=(B,),                       # one fused two-conv chain / image
            in_specs=[
                pl.BlockSpec((1, Rk, 3 * C_in), lambda b: (b, 0, 0)),
                pl.BlockSpec((3, 3 * C_in, C_mid), lambda b: (0, 0, 0)),
                pl.BlockSpec((1, C_mid), lambda b: (0, 0)),
                pl.BlockSpec((9, C_out, C_mid), lambda b: (0, 0, 0)),
                pl.BlockSpec((C_out, 1), lambda b: (0, 0)),
            ],
            out_specs=pl.BlockSpec((1, C_out, M), lambda b: (b, 0, 0)),
            scratch_shapes=[pltpu.VMEM((Rp2, C_mid), jnp.float32)],
        ),
        compiler_params=pltpu.CompilerParams(
            dimension_semantics=("parallel",),
            vmem_limit_bytes=vmem_limit),
        cost_estimate=pl.CostEstimate(flops=flops, transcendentals=0,
                                      bytes_accessed=bytes_accessed),
    )(x_k, w1k, b1k, w2k, b2k)

    # (B, C_out, M) -> (B, C_out, H, Wp) -> drop padded columns -> NCHW.
    # (The final slice is required by the module's (B, C_out, H, W) contract.)
    return out_flat[:, :, :M0].reshape(B, C_out, H, Wp)[:, :, :, :W]


def _reference(x, w1, b1, g1, be1, rm1, rv1, w2, b2, g2, be2, rm2, rv2,
               eps=1e-5):
    """Pure-JAX reference mirroring the PyTorch forward (eval-mode BN)."""
    def conv(x, w, b):
        y = lax.conv_general_dilated(
            x, w, window_strides=(1, 1), padding=((1, 1), (1, 1)),
            dimension_numbers=("NCHW", "HWIO", "NCHW"),
            precision=lax.Precision.HIGHEST)
        return y + b[None, :, None, None]

    def bn(y, g, be, rm, rv):
        inv = (g * lax.rsqrt(rv + eps))[None, :, None, None]
        return (y - rm[None, :, None, None]) * inv + be[None, :, None, None]

    h = jnp.maximum(bn(conv(x, w1, b1), g1, be1, rm1, rv1), 0.0)
    return jnp.maximum(bn(conv(h, w2, b2), g2, be2, rm2, rv2), 0.0)


if __name__ == "__main__":
    B, C_in, C_out, H, W = 2, 4, 16, 16, 16
    key = jax.random.PRNGKey(0)
    ks = jax.random.split(key, 13)

    x = jax.random.normal(ks[0], (B, C_in, H, W), dtype=jnp.float32)

    # conv weights (HWIO), PyTorch-like init scale; bias small
    w1 = jax.random.normal(ks[1], (3, 3, C_in, C_out), jnp.float32) / (9 * C_in) ** 0.5
    b1 = 0.1 * jax.random.normal(ks[2], (C_out,), jnp.float32)
    w2 = jax.random.normal(ks[3], (3, 3, C_out, C_out), jnp.float32) / (9 * C_out) ** 0.5
    b2 = 0.1 * jax.random.normal(ks[4], (C_out,), jnp.float32)

    # eval-mode BatchNorm parameters / running statistics
    g1 = 1.0 + 0.2 * jax.random.normal(ks[5], (C_out,), jnp.float32)
    be1 = 0.1 * jax.random.normal(ks[6], (C_out,), jnp.float32)
    rm1 = 0.1 * jax.random.normal(ks[7], (C_out,), jnp.float32)
    rv1 = 0.5 + jax.random.uniform(ks[8], (C_out,), dtype=jnp.float32)

    g2 = 1.0 + 0.2 * jax.random.normal(ks[9], (C_out,), jnp.float32)
    be2 = 0.1 * jax.random.normal(ks[10], (C_out,), jnp.float32)
    rm2 = 0.1 * jax.random.normal(ks[11], (C_out,), jnp.float32)
    rv2 = 0.5 + jax.random.uniform(ks[12], (C_out,), dtype=jnp.float32)

    out = conv_block_forward(x, w1, b1, g1, be1, rm1, rv1,
                             w2, b2, g2, be2, rm2, rv2)
    out = jax.block_until_ready(out)
    assert out.shape == (B, C_out, H, W), out.shape

    ref = _reference(x, w1, b1, g1, be1, rm1, rv1, w2, b2, g2, be2, rm2, rv2)
    # Tolerance accommodates the bf16 operand / f32 accumulate MXU path.
    np.testing.assert_allclose(np.asarray(out), np.asarray(ref),
                               rtol=5e-2, atol=5e-2)

    print("KERNEL_OK")
</pallas_src>

<mosaic_0001>
module attributes {stable_mosaic.version = 11 : i64} {
  func.func @_conv_block_kernel(%arg0: i32, %arg1: memref<1x432x12xbf16, #tpu.memory_space<vmem>>, %arg2: memref<3x12x16xbf16, #tpu.memory_space<vmem>>, %arg3: memref<1x16xf32, #tpu.memory_space<vmem>>, %arg4: memref<9x16x16xbf16, #tpu.memory_space<vmem>>, %arg5: memref<16x1xf32, #tpu.memory_space<vmem>>, %arg6: memref<1x16x384xf32, #tpu.memory_space<vmem>>, %arg7: memref<440x16xf32, #tpu.memory_space<vmem>>) attributes {dimension_semantics = [#tpu.dimension_semantics<parallel>], iteration_bounds = array<i64: 2>, scalar_prefetch = 0 : i64, scratch_operands = 1 : i64, tpu.core_type = #tpu.core_type<tc>, window_params = [{transform_indices = @transform_0, window_bounds = array<i64: 1, 432, 12>}, {pipeline_mode = #tpu.pipeline_mode<synchronous>, transform_indices = @transform_1, window_bounds = array<i64: 3, 12, 16>}, {pipeline_mode = #tpu.pipeline_mode<synchronous>, transform_indices = @transform_2, window_bounds = array<i64: 1, 16>}, {pipeline_mode = #tpu.pipeline_mode<synchronous>, transform_indices = @transform_3, window_bounds = array<i64: 9, 16, 16>}, {pipeline_mode = #tpu.pipeline_mode<synchronous>, transform_indices = @transform_4, window_bounds = array<i64: 16, 1>}, {transform_indices = @transform_5, window_bounds = array<i64: 1, 16, 384>}]} {
    %cst = arith.constant 0.000000e+00 : f32
    %0 = vector.broadcast %cst : f32 to vector<384x16xf32>
    %c0 = arith.constant 0 : index
    %c0_0 = arith.constant 0 : index
    %c0_1 = arith.constant 0 : index
    %1 = vector.load %arg1[%c0, %c0_0, %c0_1] : memref<1x432x12xbf16, #tpu.memory_space<vmem>>, vector<1x384x12xbf16>
    %2 = vector.shape_cast %1 : vector<1x384x12xbf16> to vector<384x12xbf16>
    %c0_2 = arith.constant 0 : index
    %c0_3 = arith.constant 0 : index
    %c0_4 = arith.constant 0 : index
    %3 = vector.load %arg2[%c0_2, %c0_3, %c0_4] : memref<3x12x16xbf16, #tpu.memory_space<vmem>>, vector<1x12x16xbf16>
    %4 = vector.shape_cast %3 : vector<1x12x16xbf16> to vector<12x16xbf16>
    %cst_5 = arith.constant dense<0.000000e+00> : vector<384x16xf32>
    %5 = tpu.matmul %2, %4, %cst_5 {dimension_numbers = #tpu.dot_dimension_numbers<[1], [0], [0], [1], [0, 0, 1, 1], [], []>} : vector<384x12xbf16>, vector<12x16xbf16>, vector<384x16xf32> -> vector<384x16xf32>
    %6 = arith.addf %0, %5 : vector<384x16xf32>
    %c0_6 = arith.constant 0 : index
    %c24 = arith.constant 24 : index
    %c0_7 = arith.constant 0 : index
    %7 = vector.load %arg1[%c0_6, %c24, %c0_7] : memref<1x432x12xbf16, #tpu.memory_space<vmem>>, vector<1x384x12xbf16>
    %8 = vector.shape_cast %7 : vector<1x384x12xbf16> to vector<384x12xbf16>
    %c1 = arith.constant 1 : index
    %c0_8 = arith.constant 0 : index
    %c0_9 = arith.constant 0 : index
    %9 = vector.load %arg2[%c1, %c0_8, %c0_9] : memref<3x12x16xbf16, #tpu.memory_space<vmem>>, vector<1x12x16xbf16>
    %10 = vector.shape_cast %9 : vector<1x12x16xbf16> to vector<12x16xbf16>
    %cst_10 = arith.constant dense<0.000000e+00> : vector<384x16xf32>
    %11 = tpu.matmul %8, %10, %cst_10 {dimension_numbers = #tpu.dot_dimension_numbers<[1], [0], [0], [1], [0, 0, 1, 1], [], []>} : vector<384x12xbf16>, vector<12x16xbf16>, vector<384x16xf32> -> vector<384x16xf32>
    %12 = arith.addf %6, %11 : vector<384x16xf32>
    %c0_11 = arith.constant 0 : index
    %c48 = arith.constant 48 : index
    %c0_12 = arith.constant 0 : index
    %13 = vector.load %arg1[%c0_11, %c48, %c0_12] : memref<1x432x12xbf16, #tpu.memory_space<vmem>>, vector<1x384x12xbf16>
    %14 = vector.shape_cast %13 : vector<1x384x12xbf16> to vector<384x12xbf16>
    %c2 = arith.constant 2 : index
    %c0_13 = arith.constant 0 : index
    %c0_14 = arith.constant 0 : index
    %15 = vector.load %arg2[%c2, %c0_13, %c0_14] : memref<3x12x16xbf16, #tpu.memory_space<vmem>>, vector<1x12x16xbf16>
    %16 = vector.shape_cast %15 : vector<1x12x16xbf16> to vector<12x16xbf16>
    %cst_15 = arith.constant dense<0.000000e+00> : vector<384x16xf32>
    %17 = tpu.matmul %14, %16, %cst_15 {dimension_numbers = #tpu.dot_dimension_numbers<[1], [0], [0], [1], [0, 0, 1, 1], [], []>} : vector<384x12xbf16>, vector<12x16xbf16>, vector<384x16xf32> -> vector<384x16xf32>
    %18 = arith.addf %12, %17 : vector<384x16xf32>
    %c0_16 = arith.constant 0 : index
    %c0_17 = arith.constant 0 : index
    %19 = vector.load %arg3[%c0_16, %c0_17] : memref<1x16xf32, #tpu.memory_space<vmem>>, vector<1x16xf32>
    %20 = vector.broadcast %19 : vector<1x16xf32> to vector<384x16xf32>
    %21 = arith.addf %18, %20 : vector<384x16xf32>
    %cst_18 = arith.constant 0.000000e+00 : f32
    %22 = vector.broadcast %cst_18 : f32 to vector<384x16xf32>
    %23 = arith.maximumf %21, %22 : vector<384x16xf32>
    %cst_19 = arith.constant 0.000000e+00 : f32
    %24 = vector.broadcast %cst_19 : f32 to vector<25x16xf32>
    %c0_20 = arith.constant 0 : index
    %c0_21 = arith.constant 0 : index
    %25 = vector.load %arg7[%c0_20, %c0_21] : memref<440x16xf32, #tpu.memory_space<vmem>>, vector<25x16xf32>
    tpu.vector_store %arg7[%c0_20, %c0_21], %24 {strides = array<i32>} : memref<440x16xf32, #tpu.memory_space<vmem>>, vector<25x16xf32>,
    %cst_22 = arith.constant 0.000000e+00 : f32
    %26 = vector.broadcast %cst_22 : f32 to vector<31x16xf32>
    %c409 = arith.constant 409 : index
    %c0_23 = arith.constant 0 : index
    %27 = vector.load %arg7[%c409, %c0_23] : memref<440x16xf32, #tpu.memory_space<vmem>>, vector<31x16xf32>
    tpu.vector_store %arg7[%c409, %c0_23], %26 {strides = array<i32>} : memref<440x16xf32, #tpu.memory_space<vmem>>, vector<31x16xf32>,
    %c25 = arith.constant 25 : index
    %c0_24 = arith.constant 0 : index
    %28 = vector.load %arg7[%c25, %c0_24] : memref<440x16xf32, #tpu.memory_space<vmem>>, vector<384x16xf32>
    tpu.vector_store %arg7[%c25, %c0_24], %23 {strides = array<i32>} : memref<440x16xf32, #tpu.memory_space<vmem>>, vector<384x16xf32>,
    %cst_25 = arith.constant 0.000000e+00 : f32
    %29 = vector.broadcast %cst_25 : f32 to vector<8x16xf32>
    %c41 = arith.constant 41 : index
    %c0_26 = arith.constant 0 : index
    %30 = vector.load %arg7[%c41, %c0_26] : memref<440x16xf32, #tpu.memory_space<vmem>>, vector<8x16xf32>
    tpu.vector_store %arg7[%c41, %c0_26], %29 {strides = array<i32>} : memref<440x16xf32, #tpu.memory_space<vmem>>, vector<8x16xf32>,
    %cst_27 = arith.constant 0.000000e+00 : f32
    %31 = vector.broadcast %cst_27 : f32 to vector<8x16xf32>
    %c65 = arith.constant 65 : index
    %c0_28 = arith.constant 0 : index
    %32 = vector.load %arg7[%c65, %c0_28] : memref<440x16xf32, #tpu.memory_space<vmem>>, vector<8x16xf32>
    tpu.vector_store %arg7[%c65, %c0_28], %31 {strides = array<i32>} : memref<440x16xf32, #tpu.memory_space<vmem>>, vector<8x16xf32>,
    %cst_29 = arith.constant 0.000000e+00 : f32
    %33 = vector.broadcast %cst_29 : f32 to vector<8x16xf32>
    %c89 = arith.constant 89 : index
    %c0_30 = arith.constant 0 : index
    %34 = vector.load %arg7[%c89, %c0_30] : memref<440x16xf32, #tpu.memory_space<vmem>>, vector<8x16xf32>
    tpu.vector_store %arg7[%c89, %c0_30], %33 {strides = array<i32>} : memref<440x16xf32, #tpu.memory_space<vmem>>, vector<8x16xf32>,
    %cst_31 = arith.constant 0.000000e+00 : f32
    %35 = vector.broadcast %cst_31 : f32 to vector<8x16xf32>
    %c113 = arith.constant 113 : index
    %c0_32 = arith.constant 0 : index
    %36 = vector.load %arg7[%c113, %c0_32] : memref<440x16xf32, #tpu.memory_space<vmem>>, vector<8x16xf32>
    tpu.vector_store %arg7[%c113, %c0_32], %35 {strides = array<i32>} : memref<440x16xf32, #tpu.memory_space<vmem>>, vector<8x16xf32>,
    %cst_33 = arith.constant 0.000000e+00 : f32
    %37 = vector.broadcast %cst_33 : f32 to vector<8x16xf32>
    %c137 = arith.constant 137 : index
    %c0_34 = arith.constant 0 : index
    %38 = vector.load %arg7[%c137, %c0_34] : memref<440x16xf32, #tpu.memory_space<vmem>>, vector<8x16xf32>
    tpu.vector_store %arg7[%c137, %c0_34], %37 {strides = array<i32>} : memref<440x16xf32, #tpu.memory_space<vmem>>, vector<8x16xf32>,
    %cst_35 = arith.constant 0.000000e+00 : f32
    %39 = vector.broadcast %cst_35 : f32 to vector<8x16xf32>
    %c161 = arith.constant 161 : index
    %c0_36 = arith.constant 0 : index
    %40 = vector.load %arg7[%c161, %c0_36] : memref<440x16xf32, #tpu.memory_space<vmem>>, vector<8x16xf32>
    tpu.vector_store %arg7[%c161, %c0_36], %39 {strides = array<i32>} : memref<440x16xf32, #tpu.memory_space<vmem>>, vector<8x16xf32>,
    %cst_37 = arith.constant 0.000000e+00 : f32
    %41 = vector.broadcast %cst_37 : f32 to vector<8x16xf32>
    %c185 = arith.constant 185 : index
    %c0_38 = arith.constant 0 : index
    %42 = vector.load %arg7[%c185, %c0_38] : memref<440x16xf32, #tpu.memory_space<vmem>>, vector<8x16xf32>
    tpu.vector_store %arg7[%c185, %c0_38], %41 {strides = array<i32>} : memref<440x16xf32, #tpu.memory_space<vmem>>, vector<8x16xf32>,
    %cst_39 = arith.constant 0.000000e+00 : f32
    %43 = vector.broadcast %cst_39 : f32 to vector<8x16xf32>
    %c209 = arith.constant 209 : index
    %c0_40 = arith.constant 0 : index
    %44 = vector.load %arg7[%c209, %c0_40] : memref<440x16xf32, #tpu.memory_space<vmem>>, vector<8x16xf32>
    tpu.vector_store %arg7[%c209, %c0_40], %43 {strides = array<i32>} : memref<440x16xf32, #tpu.memory_space<vmem>>, vector<8x16xf32>,
    %cst_41 = arith.constant 0.000000e+00 : f32
    %45 = vector.broadcast %cst_41 : f32 to vector<8x16xf32>
    %c233 = arith.constant 233 : index
    %c0_42 = arith.constant 0 : index
    %46 = vector.load %arg7[%c233, %c0_42] : memref<440x16xf32, #tpu.memory_space<vmem>>, vector<8x16xf32>
    tpu.vector_store %arg7[%c233, %c0_42], %45 {strides = array<i32>} : memref<440x16xf32, #tpu.memory_space<vmem>>, vector<8x16xf32>,
    %cst_43 = arith.constant 0.000000e+00 : f32
    %47 = vector.broadcast %cst_43 : f32 to vector<8x16xf32>
    %c257 = arith.constant 257 : index
    %c0_44 = arith.constant 0 : index
    %48 = vector.load %arg7[%c257, %c0_44] : memref<440x16xf32, #tpu.memory_space<vmem>>, vector<8x16xf32>
    tpu.vector_store %arg7[%c257, %c0_44], %47 {strides = array<i32>} : memref<440x16xf32, #tpu.memory_space<vmem>>, vector<8x16xf32>,
    %cst_45 = arith.constant 0.000000e+00 : f32
    %49 = vector.broadcast %cst_45 : f32 to vector<8x16xf32>
    %c281 = arith.constant 281 : index
    %c0_46 = arith.constant 0 : index
    %50 = vector.load %arg7[%c281, %c0_46] : memref<440x16xf32, #tpu.memory_space<vmem>>, vector<8x16xf32>
    tpu.vector_store %arg7[%c281, %c0_46], %49 {strides = array<i32>} : memref<440x16xf32, #tpu.memory_space<vmem>>, vector<8x16xf32>,
    %cst_47 = arith.constant 0.000000e+00 : f32
    %51 = vector.broadcast %cst_47 : f32 to vector<8x16xf32>
    %c305 = arith.constant 305 : index
    %c0_48 = arith.constant 0 : index
    %52 = vector.load %arg7[%c305, %c0_48] : memref<440x16xf32, #tpu.memory_space<vmem>>, vector<8x16xf32>
    tpu.vector_store %arg7[%c305, %c0_48], %51 {strides = array<i32>} : memref<440x16xf32, #tpu.memory_space<vmem>>, vector<8x16xf32>,
    %cst_49 = arith.constant 0.000000e+00 : f32
    %53 = vector.broadcast %cst_49 : f32 to vector<8x16xf32>
    %c329 = arith.constant 329 : index
    %c0_50 = arith.constant 0 : index
    %54 = vector.load %arg7[%c329, %c0_50] : memref<440x16xf32, #tpu.memory_space<vmem>>, vector<8x16xf32>
    tpu.vector_store %arg7[%c329, %c0_50], %53 {strides = array<i32>} : memref<440x16xf32, #tpu.memory_space<vmem>>, vector<8x16xf32>,
    %cst_51 = arith.constant 0.000000e+00 : f32
    %55 = vector.broadcast %cst_51 : f32 to vector<8x16xf32>
    %c353 = arith.constant 353 : index
    %c0_52 = arith.constant 0 : index
    %56 = vector.load %arg7[%c353, %c0_52] : memref<440x16xf32, #tpu.memory_space<vmem>>, vector<8x16xf32>
    tpu.vector_store %arg7[%c353, %c0_52], %55 {strides = array<i32>} : memref<440x16xf32, #tpu.memory_space<vmem>>, vector<8x16xf32>,
    %cst_53 = arith.constant 0.000000e+00 : f32
    %57 = vector.broadcast %cst_53 : f32 to vector<8x16xf32>
    %c377 = arith.constant 377 : index
    %c0_54 = arith.constant 0 : index
    %58 = vector.load %arg7[%c377, %c0_54] : memref<440x16xf32, #tpu.memory_space<vmem>>, vector<8x16xf32>
    tpu.vector_store %arg7[%c377, %c0_54], %57 {strides = array<i32>} : memref<440x16xf32, #tpu.memory_space<vmem>>, vector<8x16xf32>,
    %cst_55 = arith.constant 0.000000e+00 : f32
    %59 = vector.broadcast %cst_55 : f32 to vector<8x16xf32>
    %c401 = arith.constant 401 : index
    %c0_56 = arith.constant 0 : index
    %60 = vector.load %arg7[%c401, %c0_56] : memref<440x16xf32, #tpu.memory_space<vmem>>, vector<8x16xf32>
    tpu.vector_store %arg7[%c401, %c0_56], %59 {strides = array<i32>} : memref<440x16xf32, #tpu.memory_space<vmem>>, vector<8x16xf32>,
    %cst_57 = arith.constant 0.000000e+00 : f32
    %61 = vector.broadcast %cst_57 : f32 to vector<16x384xf32>
    %c0_58 = arith.constant 0 : index
    %c0_59 = arith.constant 0 : index
    %62 = vector.load %arg7[%c0_58, %c0_59] : memref<440x16xf32, #tpu.memory_space<vmem>>, vector<384x16xf32>
    %63 = arith.truncf %62 : vector<384x16xf32> to vector<384x16xbf16>
    %c0_60 = arith.constant 0 : index
    %c0_61 = arith.constant 0 : index
    %c0_62 = arith.constant 0 : index
    %64 = vector.load %arg4[%c0_60, %c0_61, %c0_62] : memref<9x16x16xbf16, #tpu.memory_space<vmem>>, vector<1x16x16xbf16>
    %65 = vector.shape_cast %64 : vector<1x16x16xbf16> to vector<16x16xbf16>
    %cst_63 = arith.constant dense<0.000000e+00> : vector<16x384xf32>
    %66 = tpu.matmul %65, %63, %cst_63 {dimension_numbers = #tpu.dot_dimension_numbers<[1], [1], [0], [0], [0, 0, 1, 0], [], []>} : vector<16x16xbf16>, vector<384x16xbf16>, vector<16x384xf32> -> vector<16x384xf32>
    %67 = arith.addf %61, %66 : vector<16x384xf32>
    %c1_64 = arith.constant 1 : index
    %c0_65 = arith.constant 0 : index
    %68 = vector.load %arg7[%c1_64, %c0_65] : memref<440x16xf32, #tpu.memory_space<vmem>>, vector<384x16xf32>
    %69 = arith.truncf %68 : vector<384x16xf32> to vector<384x16xbf16>
    %c1_66 = arith.constant 1 : index
    %c0_67 = arith.constant 0 : index
    %c0_68 = arith.constant 0 : index
    %70 = vector.load %arg4[%c1_66, %c0_67, %c0_68] : memref<9x16x16xbf16, #tpu.memory_space<vmem>>, vector<1x16x16xbf16>
    %71 = vector.shape_cast %70 : vector<1x16x16xbf16> to vector<16x16xbf16>
    %cst_69 = arith.constant dense<0.000000e+00> : vector<16x384xf32>
    %72 = tpu.matmul %71, %69, %cst_69 {dimension_numbers = #tpu.dot_dimension_numbers<[1], [1], [0], [0], [0, 0, 1, 0], [], []>} : vector<16x16xbf16>, vector<384x16xbf16>, vector<16x384xf32> -> vector<16x384xf32>
    %73 = arith.addf %67, %72 : vector<16x384xf32>
    %c2_70 = arith.constant 2 : index
    %c0_71 = arith.constant 0 : index
    %74 = vector.load %arg7[%c2_70, %c0_71] : memref<440x16xf32, #tpu.memory_space<vmem>>, vector<384x16xf32>
    %75 = arith.truncf %74 : vector<384x16xf32> to vector<384x16xbf16>
    %c2_72 = arith.constant 2 : index
    %c0_73 = arith.constant 0 : index
    %c0_74 = arith.constant 0 : index
    %76 = vector.load %arg4[%c2_72, %c0_73, %c0_74] : memref<9x16x16xbf16, #tpu.memory_space<vmem>>, vector<1x16x16xbf16>
    %77 = vector.shape_cast %76 : vector<1x16x16xbf16> to vector<16x16xbf16>
    %cst_75 = arith.constant dense<0.000000e+00> : vector<16x384xf32>
    %78 = tpu.matmul %77, %75, %cst_75 {dimension_numbers = #tpu.dot_dimension_numbers<[1], [1], [0], [0], [0, 0, 1, 0], [], []>} : vector<16x16xbf16>, vector<384x16xbf16>, vector<16x384xf32> -> vector<16x384xf32>
    %79 = arith.addf %73, %78 : vector<16x384xf32>
    %c24_76 = arith.constant 24 : index
    %c0_77 = arith.constant 0 : index
    %80 = vector.load %arg7[%c24_76, %c0_77] : memref<440x16xf32, #tpu.memory_space<vmem>>, vector<384x16xf32>
    %81 = arith.truncf %80 : vector<384x16xf32> to vector<384x16xbf16>
    %c3 = arith.constant 3 : index
    %c0_78 = arith.constant 0 : index
    %c0_79 = arith.constant 0 : index
    %82 = vector.load %arg4[%c3, %c0_78, %c0_79] : memref<9x16x16xbf16, #tpu.memory_space<vmem>>, vector<1x16x16xbf16>
    %83 = vector.shape_cast %82 : vector<1x16x16xbf16> to vector<16x16xbf16>
    %cst_80 = arith.constant dense<0.000000e+00> : vector<16x384xf32>
    %84 = tpu.matmul %83, %81, %cst_80 {dimension_numbers = #tpu.dot_dimension_numbers<[1], [1], [0], [0], [0, 0, 1, 0], [], []>} : vector<16x16xbf16>, vector<384x16xbf16>, vector<16x384xf32> -> vector<16x384xf32>
    %85 = arith.addf %79, %84 : vector<16x384xf32>
    %c25_81 = arith.constant 25 : index
    %c0_82 = arith.constant 0 : index
    %86 = vector.load %arg7[%c25_81, %c0_82] : memref<440x16xf32, #tpu.memory_space<vmem>>, vector<384x16xf32>
    %87 = arith.truncf %86 : vector<384x16xf32> to vector<384x16xbf16>
    %c4 = arith.constant 4 : index
    %c0_83 = arith.constant 0 : index
    %c0_84 = arith.constant 0 : index
    %88 = vector.load %arg4[%c4, %c0_83, %c0_84] : memref<9x16x16xbf16, #tpu.memory_space<vmem>>, vector<1x16x16xbf16>
    %89 = vector.shape_cast %88 : vector<1x16x16xbf16> to vector<16x16xbf16>
    %cst_85 = arith.constant dense<0.000000e+00> : vector<16x384xf32>
    %90 = tpu.matmul %89, %87, %cst_85 {dimension_numbers = #tpu.dot_dimension_numbers<[1], [1], [0], [0], [0, 0, 1, 0], [], []>} : vector<16x16xbf16>, vector<384x16xbf16>, vector<16x384xf32> -> vector<16x384xf32>
    %91 = arith.addf %85, %90 : vector<16x384xf32>
    %c26 = arith.constant 26 : index
    %c0_86 = arith.constant 0 : index
    %92 = vector.load %arg7[%c26, %c0_86] : memref<440x16xf32, #tpu.memory_space<vmem>>, vector<384x16xf32>
    %93 = arith.truncf %92 : vector<384x16xf32> to vector<384x16xbf16>
    %c5 = arith.constant 5 : index
    %c0_87 = arith.constant 0 : index
    %c0_88 = arith.constant 0 : index
    %94 = vector.load %arg4[%c5, %c0_87, %c0_88] : memref<9x16x16xbf16, #tpu.memory_space<vmem>>, vector<1x16x16xbf16>
    %95 = vector.shape_cast %94 : vector<1x16x16xbf16> to vector<16x16xbf16>
    %cst_89 = arith.constant dense<0.000000e+00> : vector<16x384xf32>
    %96 = tpu.matmul %95, %93, %cst_89 {dimension_numbers = #tpu.dot_dimension_numbers<[1], [1], [0], [0], [0, 0, 1, 0], [], []>} : vector<16x16xbf16>, vector<384x16xbf16>, vector<16x384xf32> -> vector<16x384xf32>
    %97 = arith.addf %91, %96 : vector<16x384xf32>
    %c48_90 = arith.constant 48 : index
    %c0_91 = arith.constant 0 : index
    %98 = vector.load %arg7[%c48_90, %c0_91] : memref<440x16xf32, #tpu.memory_space<vmem>>, vector<384x16xf32>
    %99 = arith.truncf %98 : vector<384x16xf32> to vector<384x16xbf16>
    %c6 = arith.constant 6 : index
    %c0_92 = arith.constant 0 : index
    %c0_93 = arith.constant 0 : index
    %100 = vector.load %arg4[%c6, %c0_92, %c0_93] : memref<9x16x16xbf16, #tpu.memory_space<vmem>>, vector<1x16x16xbf16>
    %101 = vector.shape_cast %100 : vector<1x16x16xbf16> to vector<16x16xbf16>
    %cst_94 = arith.constant dense<0.000000e+00> : vector<16x384xf32>
    %102 = tpu.matmul %101, %99, %cst_94 {dimension_numbers = #tpu.dot_dimension_numbers<[1], [1], [0], [0], [0, 0, 1, 0], [], []>} : vector<16x16xbf16>, vector<384x16xbf16>, vector<16x384xf32> -> vector<16x384xf32>
    %103 = arith.addf %97, %102 : vector<16x384xf32>
    %c49 = arith.constant 49 : index
    %c0_95 = arith.constant 0 : index
    %104 = vector.load %arg7[%c49, %c0_95] : memref<440x16xf32, #tpu.memory_space<vmem>>, vector<384x16xf32>
    %105 = arith.truncf %104 : vector<384x16xf32> to vector<384x16xbf16>
    %c7 = arith.constant 7 : index
    %c0_96 = arith.constant 0 : index
    %c0_97 = arith.constant 0 : index
    %106 = vector.load %arg4[%c7, %c0_96, %c0_97] : memref<9x16x16xbf16, #tpu.memory_space<vmem>>, vector<1x16x16xbf16>
    %107 = vector.shape_cast %106 : vector<1x16x16xbf16> to vector<16x16xbf16>
    %cst_98 = arith.constant dense<0.000000e+00> : vector<16x384xf32>
    %108 = tpu.matmul %107, %105, %cst_98 {dimension_numbers = #tpu.dot_dimension_numbers<[1], [1], [0], [0], [0, 0, 1, 0], [], []>} : vector<16x16xbf16>, vector<384x16xbf16>, vector<16x384xf32> -> vector<16x384xf32>
    %109 = arith.addf %103, %108 : vector<16x384xf32>
    %c50 = arith.constant 50 : index
    %c0_99 = arith.constant 0 : index
    %110 = vector.load %arg7[%c50, %c0_99] : memref<440x16xf32, #tpu.memory_space<vmem>>, vector<384x16xf32>
    %111 = arith.truncf %110 : vector<384x16xf32> to vector<384x16xbf16>
    %c8 = arith.constant 8 : index
    %c0_100 = arith.constant 0 : index
    %c0_101 = arith.constant 0 : index
    %112 = vector.load %arg4[%c8, %c0_100, %c0_101] : memref<9x16x16xbf16, #tpu.memory_space<vmem>>, vector<1x16x16xbf16>
    %113 = vector.shape_cast %112 : vector<1x16x16xbf16> to vector<16x16xbf16>
    %cst_102 = arith.constant dense<0.000000e+00> : vector<16x384xf32>
    %114 = tpu.matmul %113, %111, %cst_102 {dimension_numbers = #tpu.dot_dimension_numbers<[1], [1], [0], [0], [0, 0, 1, 0], [], []>} : vector<16x16xbf16>, vector<384x16xbf16>, vector<16x384xf32> -> vector<16x384xf32>
    %115 = arith.addf %109, %114 : vector<16x384xf32>
    %c0_103 = arith.constant 0 : index
    %c0_104 = arith.constant 0 : index
    %116 = vector.load %arg5[%c0_103, %c0_104] : memref<16x1xf32, #tpu.memory_space<vmem>>, vector<16x1xf32>
    %117 = vector.broadcast %116 : vector<16x1xf32> to vector<16x384xf32>
    %118 = arith.addf %115, %117 : vector<16x384xf32>
    %cst_105 = arith.constant 0.000000e+00 : f32
    %119 = vector.broadcast %cst_105 : f32 to vector<16x384xf32>
    %120 = arith.maximumf %118, %119 : vector<16x384xf32>
    %c0_106 = arith.constant 0 : index
    %c0_107 = arith.constant 0 : index
    %c0_108 = arith.constant 0 : index
    %121 = vector.load %arg6[%c0_106, %c0_107, %c0_108] : memref<1x16x384xf32, #tpu.memory_space<vmem>>, vector<1x16x384xf32>
    %122 = vector.shape_cast %121 : vector<1x16x384xf32> to vector<16x384xf32>
    %123 = vector.shape_cast %120 : vector<16x384xf32> to vector<1x16x384xf32>
    tpu.vector_store %arg6[%c0_106, %c0_107, %c0_108], %123 {strides = array<i32>} : memref<1x16x384xf32, #tpu.memory_space<vmem>>, vector<1x16x384xf32>,
    return
  }
  func.func @transform_0(%arg0: i32) -> (i32, i32, i32) {
    %c0_i32 = arith.constant 0 : i32
    %c0_i32_0 = arith.constant 0 : i32
    %c0_i32_1 = arith.constant 0 : i32
    return %arg0, %c0_i32, %c0_i32_0 : i32, i32, i32
  }
  func.func @transform_1(%arg0: i32) -> (i32, i32, i32) {
    %c0_i32 = arith.constant 0 : i32
    %c0_i32_0 = arith.constant 0 : i32
    %c0_i32_1 = arith.constant 0 : i32
    %c0_i32_2 = arith.constant 0 : i32
    return %c0_i32, %c0_i32_0, %c0_i32_1 : i32, i32, i32
  }
  func.func @transform_2(%arg0: i32) -> (i32, i32) {
    %c0_i32 = arith.constant 0 : i32
    %c0_i32_0 = arith.constant 0 : i32
    %c0_i32_1 = arith.constant 0 : i32
    return %c0_i32, %c0_i32_0 : i32, i32
  }
  func.func @transform_3(%arg0: i32) -> (i32, i32, i32) {
    %c0_i32 = arith.constant 0 : i32
    %c0_i32_0 = arith.constant 0 : i32
    %c0_i32_1 = arith.constant 0 : i32
    %c0_i32_2 = arith.constant 0 : i32
    return %c0_i32, %c0_i32_0, %c0_i32_1 : i32, i32, i32
  }
  func.func @transform_4(%arg0: i32) -> (i32, i32) {
    %c0_i32 = arith.constant 0 : i32
    %c0_i32_0 = arith.constant 0 : i32
    %c0_i32_1 = arith.constant 0 : i32
    return %c0_i32, %c0_i32_0 : i32, i32
  }
  func.func @transform_5(%arg0: i32) -> (i32, i32, i32) {
    %c0_i32 = arith.constant 0 : i32
    %c0_i32_0 = arith.constant 0 : i32
    %c0_i32_1 = arith.constant 0 : i32
    return %arg0, %c0_i32, %c0_i32_0 : i32, i32, i32
  }
}

</mosaic_0001>

<bundles_post_ra>
// kernel: conv_block_forward.1
= control target key start
LH: loop header
LB: loop body
LE: loop exit
PB: predicated region body
PF: predicated region fallthrough
CT: control target
= control target key end

     0   :  { %s5279_s18 = smov 0   ;;  %s6979_s0 = inlined_call_operand.vmem [shape: bf16[2,432,12], index: 0, kind: input, shape index: {}]   ;;  %s6980_s1 = inlined_call_operand.vmem [shape: bf16[3,12,16], index: 1, kind: input, shape index: {}]   ;;  %s6981_s2 = inlined_call_operand.vmem [shape: f32[1,16], index: 2, kind: input, shape index: {}]   ;;  %s6982_s3 = inlined_call_operand.vmem [shape: bf16[9,16,16], index: 3, kind: input, shape index: {}]   ;;  %s6983_s4 = inlined_call_operand.vmem [shape: f32[16,1], index: 4, kind: input, shape index: {}]   ;;  %s6984_s5 = inlined_call_operand.vmem [shape: f32[2,16,384], index: 5, kind: output, shape index: {}]  }
   0x1 LB: > { %s4023_s19 = sadd.s32 4294967295, %s5244_s18   ;;  %p4027_p0 = scmp.ge.s32.totalorder %s5244_s18, 1  ;;  %s5244_s18 = sphi %s5279_s18, %s15_s18  }
   0x2   : > { %p187_p1 = scmp.lt.s32.totalorder %s5244_s18, 3 }
   0x4   : > { %p188_p2 = pnand %p4027_p0, %p187_p1 }
   0x6   : > { %191 = sbr.rel (%p188_p2) target bundleno = 1393 (0x571), region = 40 }
   0xd   : > { %v5092_v0 = vld [vmem:[%s6980_s1 + $0x8] sm:$0x3f]   ;;  %vm480_vm0 = vcmask 1045504   ;;  %p215_p3 = scmp.lt.s32.totalorder %s4023_s19, 1  ;;  %v5097_v2 = vld [vmem:[%s6980_s1] sm:$0x3f]  }
   0xe   : > { %5003 = vmatprep.subr.msk.bf16.mxu0 %vm480_vm0, %v5092_v0  ;;  %v482_v1 = vsel %vm480_vm0, %v5092_v0, 0  ;;  %v5121_v3 = vld [vmem:[%s6980_s1 + $0x10] sm:$0x3f]   ;;  %vm407_vm1 = vcmask 97280   ;;  %v817_v7 = vsel %vm480_vm0, %v5097_v2, 0  ;;  %vm1671_vm2 = vcmask 130048  }
   0xf   : > { %4546 = vmatpush3.bf16.msra.mxu0 %v482_v1  ;;  %s7332_s19 = smov (!%p215_p3, %s4023_s19), 1  ;;  %v5303_v4 = vsel %vm480_vm0, %v5121_v3, 0  ;;  %vm1675_vm3 = vcmask 122880   ;;  %vm5247_vm4 = vmmov 0   ;;  %vm1680_vm5 = vcmask 129024  }
  0x10   : > { %5004 = vmatprep.subr.msk.bf16.mxu0 %vm480_vm0, %v5097_v2  ;;  %s5078_s26 = smul.u32 216, %s7332_s19 }
  0x11   : > { %s5079_s8 = smul.u32 48, %s7332_s19 }
  0x12   : > { %s5308_s29 = scalar_lea.vmem %s6979_s0, %s5078_s26 }
  0x13   : > { %v5311_v5 = vld [vmem:[%s5308_s29 + $0xc] sm:$0xf]  ;;  %v5314_v6 = vld [vmem:[%s5308_s29 + $0x10] sm:$0xf]  ;;  %v5318_v8 = vld [vmem:[%s5308_s29 + $0x14] sm:$0xf]  ;;  %s224_s11 = scalar_lea.vmem %s6984_s5, %s5079_s8 }
  0x14   : > { %v5321_v9 = vld [vmem:[%s5308_s29 + $0x18] sm:$0xf]  ;;  %v4032_v10 = vcombine.low %v5311_v5, %v5314_v6  ;;  %v5326_v11 = vld [vmem:[%s5308_s29 + $0x1c] sm:$0xf]  ;;  %v4083_v13 = vcombine.low %v5314_v6, %v5318_v8  ;;  %v5333_v14 = vld [vmem:[%s5308_s29 + $0x20] sm:$0xf] }
  0x15   : > { %v4033_v12 = vcombine.low %v5318_v8, %v5321_v9  ;;  %v5336_v15 = vld [vmem:[%s5308_s29 + $0x24] sm:$0xf]  ;;  %v5339_v16 = vld [vmem:[%s5308_s29 + $0x28] sm:$0xf]  ;;  %v4084_v17 = vcombine.low %v5321_v9, %v5326_v11  ;;  %v4034_v18 = vcombine.low %v5326_v11, %v5333_v14  ;;  %v5347_v19 = vld [vmem:[%s5308_s29 + $0x2c] sm:$0xf] }
  0x16   : > { %4547 = vmatprep.mubr.msk.bf16.mxu0 %vm407_vm1, %v4032_v10  ;;  %v5350_v20 = vld [vmem:[%s5308_s29 + $0x30] sm:$0xf]  ;;  %v5353_v21 = vld [vmem:[%s5308_s29 + $0x34] sm:$0xf]  ;;  %v4085_v22 = vcombine.low %v5333_v14, %v5336_v15  ;;  %v5359_v23 = vld [vmem:[%s5308_s29 + $0x38] sm:$0xf]  ;;  %v4086_v26 = vcombine.low %v5339_v16, %v5347_v19  ;;  %v4035_v39 = vcombine.low %v5336_v15, %v5339_v16 }
  0x17   : > { %4548 = vmatmul.mubr.msk.bf16.vlgmr.msra.gmra.mrb[0].mxu0 %vm407_vm1, %v4033_v12  ;;  %v5362_v24 = vld [vmem:[%s5308_s29 + $0x3c] sm:$0xf]  ;;  %v5365_v25 = vld [vmem:[%s5308_s29 + $0x40] sm:$0xf]  ;;  %v4087_v27 = vcombine.low %v5350_v20, %v5353_v21  ;;  %v5373_v28 = vld [vmem:[%s5308_s29 + $0x44] sm:$0xf]  ;;  %v4036_v41 = vcombine.low %v5347_v19, %v5350_v20  ;;  %v4037_v48 = vcombine.low %v5353_v21, %v5359_v23 }
  0x18   : > { %4596 = vmatpush3.bf16.msra.mxu0 %v817_v7  ;;  %4551 = vmatprep.mubr.msk.bf16.mxu0 %vm407_vm1, %v4034_v18  ;;  %v5376_v29 = vld [vmem:[%s5308_s29 + $0x48] sm:$0xf]  ;;  %v5379_v30 = vld [vmem:[%s5308_s29 + $0x4c] sm:$0xf]  ;;  %v5384_v32 = vld [vmem:[%s5308_s29 + $0x50] sm:$0xf]  ;;  %v4038_v49 = vcombine.low %v5362_v24, %v5365_v25 }
  0x19   : > { %v5387_v33 = vld [vmem:[%s5308_s29 + $0x54] sm:$0xf]  ;;  %5005 = vmatprep.subr.msk.bf16.mxu0 %vm480_vm0, %v5121_v3  ;;  %v5395_v36 = vld [vmem:[%s5308_s29 + $0x58] sm:$0xf]  ;;  %v5398_v37 = vld [vmem:[%s5308_s29 + $0x5c] sm:$0xf]  ;;  %v4039_v56 = vcombine.low %v5373_v28, %v5376_v29  ;;  %v4040_v57 = vcombine.low %v5379_v30, %v5384_v32  ;;  %v7084_v6 = vcombine.low %v5376_v29, %v5379_v30 }
  0x1a   : > { %v5409_v42 = vld [vmem:[%s5308_s29 + $0x60] sm:$0xf]  ;;  %v5412_v43 = vld [vmem:[%s5308_s29 + $0x64] sm:$0xf]  ;;  %v5416_v44 = vld [vmem:[%s5308_s29 + $0x68] sm:$0xf]  ;;  %v4041_v0 = vcombine.low %v5387_v33, %v5395_v36  ;;  %v7085_v8 = vcombine.low %v5384_v32, %v5387_v33  ;;  %v7086_v9 = vcombine.low %v5395_v36, %v5398_v37 }
  0x1b   : > { %v5419_v45 = vld [vmem:[%s5308_s29 + $0x6c] sm:$0xf]  ;;  %v5431_v50 = vld [vmem:[%s5308_s29 + $0x70] sm:$0xf]  ;;  %v5434_v51 = vld [vmem:[%s5308_s29 + $0x74] sm:$0xf]  ;;  %v4042_v1 = vcombine.low %v5398_v37, %v5409_v42  ;;  %v7087_v11 = vcombine.low %v5409_v42, %v5412_v43 }
  0x1c   : > { %v5437_v52 = vld [vmem:[%s5308_s29 + $0x78] sm:$0xf]  ;;  %v5440_v53 = vld [vmem:[%s5308_s29 + $0x7c] sm:$0xf]  ;;  %v5453_v58 = vld [vmem:[%s5308_s29 + $0x80] sm:$0xf]  ;;  %v7089_v14 = vcombine.low %v5431_v50, %v5434_v51 }
  0x1d   : > { %v5456_v59 = vld [vmem:[%s5308_s29 + $0x84] sm:$0xf]  ;;  %v5459_v60 = vld [vmem:[%s5308_s29 + $0x88] sm:$0xf]  ;;  %v5462_v61 = vld [vmem:[%s5308_s29 + $0x8c] sm:$0xf]  ;;  %v4045_v18 = vcombine.low %v5434_v51, %v5437_v52  ;;  %v4046_v12 = vcombine.low %v5440_v53, %v5453_v58  ;;  %v7090_v15 = vcombine.low %v5437_v52, %v5440_v53 }
  0x1e   : > { %v5475_v2 = vld [vmem:[%s5308_s29 + $0x90] sm:$0xf]  ;;  %v5478_v3 = vld [vmem:[%s5308_s29 + $0x94] sm:$0xf]  ;;  %v5481_v7 = vld [vmem:[%s5308_s29 + $0x98] sm:$0xf]  ;;  %v7091_v16 = vcombine.low %v5453_v58, %v5456_v59 }
  0x1f   : > { %4552 = vmatmul.mubr.msk.bf16.gmra.mrb[4].mxu0 %vm407_vm1, %v4035_v39  ;;  %v5484_v10 = vld [vmem:[%s5308_s29 + $0x9c] sm:$0xf]  ;;  %v4043_v39 = vcombine.low %v5412_v43, %v5416_v44  ;;  %v270_v63 = vld [vmem:[%s5308_s29 + $0xb0] sm:$0xf]  ;;  %v271_v62 = vld [vmem:[%s5308_s29 + $0xb4] sm:$0xf]  ;;  %v4048_v46 = vcombine.low %v5462_v61, %v5475_v2  ;;  %v7093_v19 = vcombine.low %v5475_v2, %v5478_v3 }
  0x20   : > { %4555 = vmatprep.mubr.msk.bf16.mxu0 %vm407_vm1, %v4036_v41  ;;  %v4044_v41 = vcombine.low %v5419_v45, %v5431_v50  ;;  %v272_v55 = vld [vmem:[%s5308_s29 + $0xb8] sm:$0xf]  ;;  %v273_v54 = vld [vmem:[%s5308_s29 + $0xbc] sm:$0xf]  ;;  %v5120_v31 = vld [vmem:[%s5308_s29] sm:$0xff]   ;;  %v7094_v20 = vcombine.low %v5481_v7, %v5484_v10  ;;  %v6985_v51 = vmov 0.0  }
  0x21   : > { %v4104_v47 = vcombine.low %v272_v55, %v273_v54  ;;  %v4053_v35 = vcombine.low %v271_v62, %v272_v55  ;;  %v5143_v21 = vld [vmem:[%s5308_s29 + $0x18] sm:$0xff]   ;;  %v5152_v30 = vld [vmem:[%s5308_s29 + $0x60] sm:$0xff]   ;;  %v5154_v32 = vld [vmem:[%s5308_s29 + $0x70] sm:$0xff]   ;;  %1672 = vst.msk [vmem:[#allocation2] sm:$0xff] %vm1671_vm2, %v6985_v51 }
  0x22   : > { %v5151_v29 = vld [vmem:[%s5308_s29 + $0x58] sm:$0xff]   ;;  %v5158_v36 = vld [vmem:[%s5308_s29 + $0x90] sm:$0xff]   ;;  %v5161_v42 = vld [vmem:[%s5308_s29 + $0xa8] sm:$0xff]   ;;  %1673 = vst.msk [vmem:[#allocation2 + $0x8] sm:$0xff] %vm1671_vm2, %v6985_v51 }
  0x23   : > { %v5155_v33 = vld [vmem:[%s5308_s29 + $0x78] sm:$0xff]   ;;  %v5162_v43 = vld [vmem:[%s5308_s29 + $0xb0] sm:$0xff]   ;;  %1674 = vst.msk [vmem:[#allocation2 + $0x10] sm:$0xff] %vm1671_vm2, %v6985_v51  ;;  %1677 = vst.msk [vmem:[#allocation2 + $0x199] sm:$0xff] %vm1671_vm2, %v6985_v51 }
  0x24   : > { %v5159_v37 = vld [vmem:[%s5308_s29 + $0x98] sm:$0xff]   ;;  %v5166_v50 = vld [vmem:[%s5308_s29 + $0xd0] sm:$0xff]   ;;  %1678 = vst.msk [vmem:[#allocation2 + $0x1a1] sm:$0xff] %vm1671_vm2, %v6985_v51  ;;  %1679 = vst.msk [vmem:[#allocation2 + $0x1a9] sm:$0xff] %vm1671_vm2, %v6985_v51 }
  0x25   : > { %1676 = vst.msk [vmem:[#allocation2 + $0x18] sm:$0x1] %vm1675_vm3, %v6985_v51  ;;  %v5677_v52 = vld [vmem:[%s6982_s3 + $0x8] sm:$0xff]   ;;  %v5684_v53 = vld [vmem:[%s6981_s2] ss:$0 sm:$0xff] }
  0x26   : > { %4318 = vmatprep.mubr.msk.bf16.mxu1 %vm1671_vm2, %v5677_v52 }
  0x27   : > { %4556 = vmatmul.mubr.msk.bf16.gmra.mrb[8].mxu0 %vm407_vm1, %v4037_v48  ;;  %v266_v48 = vld [vmem:[%s5308_s29 + $0xa0] sm:$0xf] }
  0x28   : > { %4559 = vmatprep.mubr.msk.bf16.mxu0 %vm407_vm1, %v4038_v49  ;;  %v267_v49 = vld [vmem:[%s5308_s29 + $0xa4] sm:$0xf]  ;;  %v4050_v40 = vcombine.low %v5484_v10, %v266_v48 }
  0x2f   : > { %4560 = vmatmul.mubr.msk.bf16.gmra.mrb[12].mxu0 %vm407_vm1, %v4039_v56  ;;  %v268_v56 = vld [vmem:[%s5308_s29 + $0xa8] sm:$0xf] }
  0x30   : > { %4563 = vmatprep.mubr.msk.bf16.mxu0 %vm407_vm1, %v4040_v57  ;;  %v269_v57 = vld [vmem:[%s5308_s29 + $0xac] sm:$0xf] }
  0x31   : > { %v4052_v38 = vcombine.low %v269_v57, %v270_v63 }
  0x37   : > { %4564 = vmatmul.mubr.msk.bf16.gmra.mrb[16].mxu0 %vm407_vm1, %v4041_v0  ;;  %v4101_v0 = vcombine.low %v266_v48, %v267_v49  ;;  %v228_v48 = vld [vmem:[%s5308_s29 + $0x8] sm:$0xf] }
  0x38   : > { %4567 = vmatprep.mubr.msk.bf16.mxu0 %vm407_vm1, %v4042_v1  ;;  %v4102_v1 = vcombine.low %v268_v56, %v269_v57 }
  0x3f   : > { %4568 = vmatmul.mubr.msk.bf16.gmra.mrb[20].mxu0 %vm407_vm1, %v4043_v39  ;;  %v4103_v39 = vcombine.low %v270_v63, %v271_v62 }
  0x40   : > { %4571 = vmatprep.mubr.msk.bf16.mxu0 %vm407_vm1, %v4044_v41  ;;  %v4047_v41 = vcombine.low %v5456_v59, %v5459_v60 }
  0x47   : > { %4572 = vmatmul.mubr.msk.bf16.gmra.mrb[24].mxu0 %vm407_vm1, %v4045_v18  ;;  %v4049_v18 = vcombine.low %v5478_v3, %v5481_v7 }
  0x48   : > { %4575 = vmatprep.mubr.msk.bf16.mxu0 %vm407_vm1, %v4046_v12  ;;  %v4051_v12 = vcombine.low %v267_v49, %v268_v56 }
  0x4f   : > { %4576 = vmatmul.mubr.msk.bf16.gmra.mrb[28].mxu0 %vm407_vm1, %v4047_v41  ;;  %v276_v41 = vld [vmem:[%s5308_s29 + $0xc0] sm:$0xf] }
  0x50   : > { %4579 = vmatprep.mubr.msk.bf16.mxu0 %vm407_vm1, %v4048_v46  ;;  %v4054_v34 = vcombine.low %v273_v54, %v276_v41  ;;  %v5119_v46 = vld [vmem:[%s5308_s29 + $0xc4] sm:$0xff]  }
  0x57   : > { %4580 = vmatmul.mubr.msk.bf16.gmra.mrb[32].mxu0 %vm407_vm1, %v4049_v18 }
  0x58   : > { %4583 = vmatprep.mubr.msk.bf16.mxu0 %vm407_vm1, %v4050_v40  ;;  %v4082_v40 = vcombine.low %v228_v48, %v5311_v5  ;;  %v7083_v5 = vcombine.low %v5365_v25, %v5373_v28  ;;  %v5147_v25 = vld [vmem:[%s5308_s29 + $0x38] sm:$0xff]   ;;  %v5150_v28 = vld [vmem:[%s5308_s29 + $0x50] sm:$0xff]  }
  0x5f   : > { %4584 = vmatmul.mubr.msk.bf16.gmra.mrb[36].mxu0 %vm407_vm1, %v4051_v12 }
  0x60   : > { %4587 = vmatprep.mubr.msk.bf16.mxu0 %vm407_vm1, %v4052_v38  ;;  %v5160_v38 = vld [vmem:[%s5308_s29 + $0xa0] sm:$0xff]  }
  0x67   : > { %4588 = vmatmul.mubr.msk.bf16.gmra.mrb[40].mxu0 %vm407_vm1, %v4053_v35  ;;  %v5157_v35 = vld [vmem:[%s5308_s29 + $0x88] sm:$0xff]  }
  0x68   : > { %4591 = vmatprep.mubr.msk.bf16.mxu0 %vm407_vm1, %v4054_v34  ;;  %v5156_v34 = vld [vmem:[%s5308_s29 + $0x80] sm:$0xff]  }
  0x6f   : > { %4592 = vmatmul.mubr.msk.bf16.gmra.mrb[44].mxu0 %vm407_vm1, %v5119_v46 }
  0x70   : > { %4597 = vmatprep.mubr.msk.bf16.mxu0 %vm407_vm1, %v5120_v31  ;;  %v5153_v31 = vld [vmem:[%s5308_s29 + $0x68] sm:$0xff]  }
  0x77   : > { %4598 = vmatmul.mubr.msk.bf16.vlgmr.msra.gmra.mrb[0].mxu0 %vm407_vm1, %v4082_v40 }
  0x78   : > { %4646 = vmatpush3.bf16.msra.mxu0 %v5303_v4  ;;  %4601 = vmatprep.mubr.msk.bf16.mxu0 %vm407_vm1, %v4083_v13  ;;  %v7082_v4 = vcombine.low %v5359_v23, %v5362_v24  ;;  %v7088_v13 = vcombine.low %v5416_v44, %v5419_v45  ;;  %v5145_v23 = vld [vmem:[%s5308_s29 + $0x28] sm:$0xff]   ;;  %v5146_v24 = vld [vmem:[%s5308_s29 + $0x30] sm:$0xff]   ;;  %v5163_v44 = vld [vmem:[%s5308_s29 + $0xb8] sm:$0xff]  }
  0x79   : > { %v5164_v45 = vld [vmem:[%s5308_s29 + $0xc0] sm:$0xff]   ;;  %4735 = vmatprep.subr.bf16.mxu0 %v6985_v51 }
  0x7f   : > { %4602 = vmatmul.mubr.msk.bf16.gmra.mrb[4].mxu0 %vm407_vm1, %v4084_v17  ;;  %v7092_v17 = vcombine.low %v5459_v60, %v5462_v61 }
  0x80   : > { %4605 = vmatprep.mubr.msk.bf16.mxu0 %vm407_vm1, %v4085_v22  ;;  %v5144_v22 = vld [vmem:[%s5308_s29 + $0x20] sm:$0xff]  }
  0x87   : > { %4606 = vmatmul.mubr.msk.bf16.gmra.mrb[8].mxu0 %vm407_vm1, %v4086_v26  ;;  %v5148_v26 = vld [vmem:[%s5308_s29 + $0x40] sm:$0xff]  }
  0x88   : > { %4609 = vmatprep.mubr.msk.bf16.mxu0 %vm407_vm1, %v4087_v27  ;;  %v5149_v27 = vld [vmem:[%s5308_s29 + $0x48] sm:$0xff]  }
  0x8f   : > { %4610 = vmatmul.mubr.msk.bf16.gmra.mrb[12].mxu0 %vm407_vm1, %v7082_v4 }
  0x90   : > { %4613 = vmatprep.mubr.msk.bf16.mxu0 %vm407_vm1, %v7083_v5 }
  0x97   : > { %4614 = vmatmul.mubr.msk.bf16.gmra.mrb[16].mxu0 %vm407_vm1, %v7084_v6 }
  0x98   : > { %4617 = vmatprep.mubr.msk.bf16.mxu0 %vm407_vm1, %v7085_v8 }
  0x9f   : > { %4618 = vmatmul.mubr.msk.bf16.gmra.mrb[20].mxu0 %vm407_vm1, %v7086_v9 }
  0xa0   : > { %4621 = vmatprep.mubr.msk.bf16.mxu0 %vm407_vm1, %v7087_v11 }
  0xa7   : > { %4622 = vmatmul.mubr.msk.bf16.gmra.mrb[24].mxu0 %vm407_vm1, %v7088_v13 }
  0xa8   : > { %4625 = vmatprep.mubr.msk.bf16.mxu0 %vm407_vm1, %v7089_v14 }
  0xaf   : > { %4626 = vmatmul.mubr.msk.bf16.gmra.mrb[28].mxu0 %vm407_vm1, %v7090_v15 }
  0xb0   : > { %4629 = vmatprep.mubr.msk.bf16.mxu0 %vm407_vm1, %v7091_v16 }
  0xb7   : > { %4630 = vmatmul.mubr.msk.bf16.gmra.mrb[32].mxu0 %vm407_vm1, %v7092_v17 }
  0xb8   : > { %4633 = vmatprep.mubr.msk.bf16.mxu0 %vm407_vm1, %v7093_v19 }
  0xbf   : > { %4634 = vmatmul.mubr.msk.bf16.gmra.mrb[36].mxu0 %vm407_vm1, %v7094_v20 }
  0xc0   : > { %4637 = vmatprep.mubr.msk.bf16.mxu0 %vm407_vm1, %v4101_v0 }
  0xc7   : > { %4638 = vmatmul.mubr.msk.bf16.gmra.mrb[40].mxu0 %vm407_vm1, %v4102_v1 }
  0xc8   : > { %4641 = vmatprep.mubr.msk.bf16.mxu0 %vm407_vm1, %v4103_v39 }
  0xcf   : > { %4642 = vmatmul.mubr.msk.bf16.gmra.mrb[44].mxu0 %vm407_vm1, %v4104_v47  ;;  %v5165_v47 = vld [vmem:[%s5308_s29 + $0xc8] sm:$0xff]  }
  0xd0   : > { %4647 = vmatprep.mubr.msk.bf16.mxu0 %vm407_vm1, %v5143_v21 }
  0xd7   : > { %4648 = vmatmul.mubr.msk.bf16.vlgmr.msra.gmra.mrb[0].mxu0 %vm407_vm1, %v5144_v22 }
  0xd8   : > { %4651 = vmatprep.mubr.msk.bf16.mxu0 %vm407_vm1, %v5145_v23 }
  0xdf   : > { %4652 = vmatmul.mubr.msk.bf16.gmra.mrb[4].mxu0 %vm407_vm1, %v5146_v24 }
  0xe0   : > { %4655 = vmatprep.mubr.msk.bf16.mxu0 %vm407_vm1, %v5147_v25 }
  0xe7   : > { %4656 = vmatmul.mubr.msk.bf16.gmra.mrb[8].mxu0 %vm407_vm1, %v5148_v26 }
  0xe8   : > { %4659 = vmatprep.mubr.msk.bf16.mxu0 %vm407_vm1, %v5149_v27 }
  0xef   : > { %4660 = vmatmul.mubr.msk.bf16.gmra.mrb[12].mxu0 %vm407_vm1, %v5150_v28 }
  0xf0   : > { %4663 = vmatprep.mubr.msk.bf16.mxu0 %vm407_vm1, %v5151_v29 }
  0xf7   : > { %4664 = vmatmul.mubr.msk.bf16.gmra.mrb[16].mxu0 %vm407_vm1, %v5152_v30 }
  0xf8   : > { %4667 = vmatprep.mubr.msk.bf16.mxu0 %vm407_vm1, %v5153_v31 }
  0xff   : > { %4668 = vmatmul.mubr.msk.bf16.gmra.mrb[20].mxu0 %vm407_vm1, %v5154_v32 }
 0x100   : > { %4671 = vmatprep.mubr.msk.bf16.mxu0 %vm407_vm1, %v5155_v33 }
 0x107   : > { %4672 = vmatmul.mubr.msk.bf16.gmra.mrb[24].mxu0 %vm407_vm1, %v5156_v34 }
 0x108   : > { %4675 = vmatprep.mubr.msk.bf16.mxu0 %vm407_vm1, %v5157_v35 }
 0x10f   : > { %4676 = vmatmul.mubr.msk.bf16.gmra.mrb[28].mxu0 %vm407_vm1, %v5158_v36 }
 0x110   : > { %4679 = vmatprep.mubr.msk.bf16.mxu0 %vm407_vm1, %v5159_v37 }
 0x117   : > { %4680 = vmatmul.mubr.msk.bf16.gmra.mrb[32].mxu0 %vm407_vm1, %v5160_v38 }
 0x118   : > { %4683 = vmatprep.mubr.msk.bf16.mxu0 %vm407_vm1, %v5161_v42 }
 0x11f   : > { %4684 = vmatmul.mubr.msk.bf16.gmra.mrb[36].mxu0 %vm407_vm1, %v5162_v43 }
 0x120   : > { %4687 = vmatprep.mubr.msk.bf16.mxu0 %vm407_vm1, %v5163_v44 }
 0x127   : > { %4688 = vmatmul.mubr.msk.bf16.gmra.mrb[40].mxu0 %vm407_vm1, %v5164_v45 }
 0x128   : > { %4691 = vmatprep.mubr.msk.bf16.mxu0 %vm407_vm1, %v5165_v47 }
 0x12f   : > { %4692 = vmatmul.mubr.msk.bf16.gmra.mrb[44].mxu0 %vm407_vm1, %v5166_v50 }
 0x130   : > { %4751 = vmatprep.mubr.msk.bf16.mxu0 %vm5247_vm4, %v6985_v51 }
 0x1aa   : > { %v4649_v54 = vpop.f32.mrb[0].mxu0 }
 0x1ab   : > { %v1577_v55 = vadd.f32 %v4649_v54, %v5684_v53  ;;  %v1329_v58 = vpop.f32.mrb[1].mxu0 }
 0x1ac   : > { %v1575_v59 = vadd.f32 %v5684_v53, %v1329_v58  ;;  %v4650_v60 = vpop.f32.mrb[2].mxu0 }
 0x1ad   : > { %v1625_v61 = vmax.f32 %v1577_v55, 0.0  ;;  %v1578_v62 = vadd.f32 %v4650_v60, %v5684_v53  ;;  %v1332_v63 = vpop.f32.mrb[3].mxu0 }
 0x1ae   : > { %v1623_v2 = vmax.f32 %v1575_v59, 0.0  ;;  %v1576_v3 = vadd.f32 %v5684_v53, %v1332_v63 }
 0x1af   : > { %1684 = vst.msk [vmem:[#allocation2 + $0x29] sm:$0xff] %vm1671_vm2, %v1625_v61  ;;  %v1626_v7 = vmax.f32 %v1578_v62, 0.0 }
 0x1b0   : > { %1730 = vst.msk [vmem:[#allocation2 + $0x29] sm:$0xff] %vm1671_vm2, %v6985_v51  ;;  %1682 = vst.msk [vmem:[#allocation2 + $0x19] sm:$0xff] %vm1671_vm2, %v1623_v2  ;;  %v1624_v10 = vmax.f32 %v1576_v3, 0.0 }
 0x1b1   : > { %1685 = vst.msk [vmem:[#allocation2 + $0x31] sm:$0xff] %vm1671_vm2, %v1626_v7 }
 0x1b2   : > { %1683 = vst.msk [vmem:[#allocation2 + $0x21] sm:$0xff] %vm1671_vm2, %v1624_v10  ;;  %v4653_v49 = vpop.f32.mrb[4].mxu0 }
 0x1b3   : > { %v1581_v56 = vadd.f32 %v4653_v49, %v5684_v53  ;;  %v1345_v57 = vpop.f32.mrb[5].mxu0 }
 0x1b4   : > { %v1579_v0 = vadd.f32 %v5684_v53, %v1345_v57  ;;  %v4654_v1 = vpop.f32.mrb[6].mxu0 }
 0x1b5   : > { %v1629_v39 = vmax.f32 %v1581_v56, 0.0  ;;  %v1582_v18 = vadd.f32 %v4654_v1, %v5684_v53  ;;  %v1348_v12 = vpop.f32.mrb[7].mxu0 }
 0x1b6   : > { %v1627_v41 = vmax.f32 %v1579_v0, 0.0  ;;  %v1580_v46 = vadd.f32 %v5684_v53, %v1348_v12 }
 0x1b7   : > { %1688 = vst.msk [vmem:[#allocation2 + $0x49] sm:$0xff] %vm1671_vm2, %v1629_v39  ;;  %v1630_v48 = vmax.f32 %v1582_v18, 0.0  ;;  %v5712_v9 = vld [vmem:[#allocation2 + $0x18] sm:$0xff]  ;;  %v1820_v39 = vld [vmem:[#allocation2 + $0x1] sm:$0xff]  ;;  %v1821_v18 = vld [vmem:[#allocation2 + $0x9] sm:$0xff] }
 0x1b8   : > { %1686 = vst.msk [vmem:[#allocation2 + $0x39] sm:$0xff] %vm1671_vm2, %v1627_v41  ;;  %v1628_v40 = vmax.f32 %v1580_v46, 0.0  ;;  %v5709_v6 = vld [vmem:[#allocation2 + $0x30] sm:$0xff]  ;;  %7098 = vst [vmem:[#allocation6_spill] sm:$0xff] %v5712_v9 }
 0x1b9   : > { %1689 = vst.msk [vmem:[#allocation2 + $0x51] sm:$0xff] %vm1671_vm2, %v1630_v48  ;;  %v5705_v4 = vld [vmem:[#allocation2 + $0x20] sm:$0xff]  ;;  %v5707_v5 = vld [vmem:[#allocation2 + $0x28] sm:$0xff]  ;;  %7097 = vst [vmem:[#allocation5_spill] sm:$0xff] %v5709_v6 }
 0x1ba   : > { %7095 = vst [vmem:[#allocation3_spill] sm:$0xff] %v5705_v4  ;;  %7096 = vst [vmem:[#allocation4_spill] sm:$0xff] %v5707_v5  ;;  %v4657_v8 = vpop.f32.mrb[8].mxu0  ;;  %v5720_v17 = vld [vmem:[#allocation2 + $0x1a] sm:$0xff]  ;;  %v5722_v19 = vld [vmem:[#allocation2 + $0x22] sm:$0xff] }
 0x1bb   : > { %1687 = vst.msk [vmem:[#allocation2 + $0x41] sm:$0xff] %vm1671_vm2, %v1628_v40  ;;  %v1585_v11 = vadd.f32 %v4657_v8, %v5684_v53  ;;  %v1361_v13 = vpop.f32.mrb[9].mxu0  ;;  %7099 = vst [vmem:[#allocation7_spill] sm:$0xff] %v5720_v17  ;;  %v5729_v27 = vld [vmem:[#allocation2 + $0x2a] sm:$0xff] }
 0x1bc   : > { %1731 = vst.msk [vmem:[#allocation2 + $0x41] sm:$0xff] %vm1671_vm2, %v6985_v51  ;;  %v1583_v15 = vadd.f32 %v5684_v53, %v1361_v13  ;;  %v4658_v16 = vpop.f32.mrb[10].mxu0  ;;  %7100 = vst [vmem:[#allocation8_spill] sm:$0xff] %v5722_v19  ;;  %v1825_v49 = vld [vmem:[#allocation2 + $0x29] sm:$0xff] }
 0x1bd   : > { %v1633_v21 = vmax.f32 %v1585_v11, 0.0  ;;  %v1586_v22 = vadd.f32 %v4658_v16, %v5684_v53  ;;  %v1364_v23 = vpop.f32.mrb[11].mxu0  ;;  %7101 = vst [vmem:[#allocation9_spill] sm:$0xff] %v5729_v27  ;;  %v1868_v16 = vpack.c.bf16 %v1821_v18, %v1820_v39 }
 0x1be   : > { %v1631_v24 = vmax.f32 %v1583_v15, 0.0  ;;  %v1584_v25 = vadd.f32 %v5684_v53, %v1364_v23 }
 0x1bf   : > { %1692 = vst.msk [vmem:[#allocation2 + $0x69] sm:$0xff] %vm1671_vm2, %v1633_v21  ;;  %v1634_v26 = vmax.f32 %v1586_v22, 0.0  ;;  %v5731_v28 = vld [vmem:[#allocation2 + $0x32] sm:$0xff] }
 0x1c0   : > { %7102 = vst [vmem:[#allocation10_spill] sm:$0xff] %v5731_v28  ;;  %1690 = vst.msk [vmem:[#allocation2 + $0x59] sm:$0xff] %vm1671_vm2, %v1631_v24  ;;  %v1632_v30 = vmax.f32 %v1584_v25, 0.0  ;;  %v5744_v33 = vld [vmem:[#allocation2 + $0x38] sm:$0xff]  ;;  %v5751_v38 = vld [vmem:[#allocation2 + $0x50] sm:$0xff] }
 0x1c1   : > { %1732 = vst.msk [vmem:[#allocation2 + $0x59] sm:$0xff] %vm1671_vm2, %v6985_v51  ;;  %1693 = vst.msk [vmem:[#allocation2 + $0x71] sm:$0xff] %vm1671_vm2, %v1634_v26  ;;  %v5770_v2 = vld [vmem:[#allocation2 + $0x4a] sm:$0xff]  ;;  %v5902_v20 = vld [vmem:[#allocation2 + $0x39] sm:$0xff] }
 0x1c2   : > { %1733 = vst.msk [vmem:[#allocation2 + $0x71] sm:$0xff] %vm1671_vm2, %v6985_v51  ;;  %1691 = vst.msk [vmem:[#allocation2 + $0x61] sm:$0xff] %vm1671_vm2, %v1632_v30  ;;  %v4661_v32 = vpop.f32.mrb[12].mxu0 }
 0x1c3   : > { %7103 = vst [vmem:[#allocation11_spill] sm:$0xff] %v5744_v33  ;;  %v5746_v34 = vld [vmem:[#allocation2 + $0x40] sm:$0xff]  ;;  %v5748_v35 = vld [vmem:[#allocation2 + $0x48] sm:$0xff]  ;;  %v1589_v36 = vadd.f32 %v4661_v32, %v5684_v53  ;;  %v1377_v37 = vpop.f32.mrb[13].mxu0  ;;  %7106 = vst [vmem:[#allocation14_spill] sm:$0xff] %v5751_v38 }
 0x1c4   : > { %7104 = vst [vmem:[#allocation12_spill] sm:$0xff] %v5746_v34  ;;  %7105 = vst [vmem:[#allocation13_spill] sm:$0xff] %v5748_v35  ;;  %v1587_v43 = vadd.f32 %v5684_v53, %v1377_v37  ;;  %v4662_v44 = vpop.f32.mrb[14].mxu0  ;;  %v5759_v55 = vld [vmem:[#allocation2 + $0x3a] sm:$0xff]  ;;  %v5761_v58 = vld [vmem:[#allocation2 + $0x42] sm:$0xff] }
 0x1c5   : > { %v1637_v47 = vmax.f32 %v1589_v36, 0.0  ;;  %v1590_v50 = vadd.f32 %v4662_v44, %v5684_v53  ;;  %v1380_v54 = vpop.f32.mrb[15].mxu0  ;;  %7107 = vst [vmem:[#allocation15_spill] sm:$0xff] %v5759_v55  ;;  %7108 = vst [vmem:[#allocation16_spill] sm:$0xff] %v5761_v58 }
 0x1c6   : > { %v1635_v59 = vmax.f32 %v1587_v43, 0.0  ;;  %v1588_v60 = vadd.f32 %v5684_v53, %v1380_v54  ;;  %7110 = vst [vmem:[#allocation18_spill] sm:$0xff] %v5770_v2  ;;  %v1824_v43 = vld [vmem:[#allocation2 + $0x21] sm:$0xff]  ;;  %7131 = vst [vmem:[#allocation39_spill] sm:$0xff] %v5902_v20 }
 0x1c7   : > { %1696 = vst.msk [vmem:[#allocation2 + $0x89] sm:$0xff] %vm1671_vm2, %v1637_v47  ;;  %v1638_v61 = vmax.f32 %v1590_v50, 0.0  ;;  %v1904_v50 = vsel %vm1671_vm2, %v1868_v16, 0 }
 0x1c8   : > { %1734 = vst.msk [vmem:[#allocation2 + $0x89] sm:$0xff] %vm1671_vm2, %v6985_v51  ;;  %1694 = vst.msk [vmem:[#allocation2 + $0x79] sm:$0xff] %vm1671_vm2, %v1635_v59  ;;  %v1636_v62 = vmax.f32 %v1588_v60, 0.0  ;;  %v5768_v63 = vld [vmem:[#allocation2 + $0x58] sm:$0xff] }
 0x1c9   : > { %7109 = vst [vmem:[#allocation17_spill] sm:$0xff] %v5768_v63  ;;  %v5772_v3 = vld [vmem:[#allocation2 + $0x52] sm:$0xff]  ;;  %1697 = vst.msk [vmem:[#allocation2 + $0x91] sm:$0xff] %vm1671_vm2, %v1638_v61  ;;  %v5777_v10 = vld [vmem:[#allocation2 + $0x60] sm:$0xff] }
 0x1ca   : > { %7111 = vst [vmem:[#allocation19_spill] sm:$0xff] %v5772_v3  ;;  %7112 = vst [vmem:[#allocation20_spill] sm:$0xff] %v5777_v10  ;;  %v4665_v56 = vpop.f32.mrb[16].mxu0  ;;  %v5786_v46 = vld [vmem:[#allocation2 + $0x68] sm:$0xff]  ;;  %v5788_v48 = vld [vmem:[#allocation2 + $0x70] sm:$0xff] }
 0x1cb   : > { %1695 = vst.msk [vmem:[#allocation2 + $0x81] sm:$0xff] %vm1671_vm2, %v1636_v62  ;;  %v1593_v0 = vadd.f32 %v4665_v56, %v5684_v53  ;;  %v1393_v1 = vpop.f32.mrb[17].mxu0  ;;  %7113 = vst [vmem:[#allocation21_spill] sm:$0xff] %v5786_v46  ;;  %v5792_v21 = vld [vmem:[#allocation2 + $0x5a] sm:$0xff]  ;;  %v5794_v22 = vld [vmem:[#allocation2 + $0x62] sm:$0xff] }
 0x1cc   : > { %v1591_v12 = vadd.f32 %v5684_v53, %v1393_v1  ;;  %v4666_v41 = vpop.f32.mrb[18].mxu0  ;;  %7114 = vst [vmem:[#allocation22_spill] sm:$0xff] %v5788_v48  ;;  %7115 = vst [vmem:[#allocation23_spill] sm:$0xff] %v5792_v21  ;;  %v5830_v16 = vld [vmem:[#allocation2 + $0x6a] sm:$0xff] }
 0x1cd   : > { %v1641_v40 = vmax.f32 %v1593_v0, 0.0  ;;  %v1594_v8 = vadd.f32 %v4666_v41, %v5684_v53  ;;  %v1396_v11 = vpop.f32.mrb[19].mxu0  ;;  %7116 = vst [vmem:[#allocation24_spill] sm:$0xff] %v5794_v22  ;;  %v1822_v0 = vld [vmem:[#allocation2 + $0x11] sm:$0xff]  ;;  %7123 = vst [vmem:[#allocation31_spill] sm:$0xff] %v5830_v16 }
 0x1ce   : > { %v1639_v13 = vmax.f32 %v1591_v12, 0.0  ;;  %v1592_v15 = vadd.f32 %v5684_v53, %v1396_v11  ;;  %v5924_v16 = vld [vmem:[#allocation2 + $0x51] sm:$0xff] }
 0x1cf   : > { %1700 = vst.msk [vmem:[#allocation2 + $0xa9] sm:$0xff] %vm1671_vm2, %v1641_v40  ;;  %v1642_v23 = vmax.f32 %v1594_v8, 0.0  ;;  %v1837_v24 = vld [vmem:[#allocation2 + $0x89] sm:$0xff]  ;;  %v5811_v54 = vld [vmem:[#allocation2 + $0x78] sm:$0xff]  ;;  %7139 = vst [vmem:[#allocation47_spill] sm:$0xff] %v5924_v16 }
 0x1d0   : > { %1698 = vst.msk [vmem:[#allocation2 + $0x99] sm:$0xff] %vm1671_vm2, %v1639_v13  ;;  %v1640_v26 = vmax.f32 %v1592_v15, 0.0  ;;  %v5800_v30 = vld [vmem:[#allocation2 + $0x90] sm:$0xff]  ;;  %7119 = vst [vmem:[#allocation27_spill] sm:$0xff] %v5811_v54  ;;  %v1823_v40 = vld [vmem:[#allocation2 + $0x19] sm:$0xff] }
 0x1d1   : > { %7117 = vst [vmem:[#allocation25_spill] sm:$0xff] %v5800_v30  ;;  %1701 = vst.msk [vmem:[#allocation2 + $0xb1] sm:$0xff] %vm1671_vm2, %v1642_v23  ;;  %v5820_v1 = vld [vmem:[#allocation2 + $0x72] sm:$0xff]  ;;  %v5966_v16 = vld [vmem:[#allocation2 + $0x41] sm:$0xff] }
 0x1d2   : > { %v1836_v32 = vld [vmem:[#allocation2 + $0x81] sm:$0xff]  ;;  %1699 = vst.msk [vmem:[#allocation2 + $0xa1] sm:$0xff] %vm1671_vm2, %v1640_v26  ;;  %v4669_v44 = vpop.f32.mrb[20].mxu0  ;;  %7120 = vst [vmem:[#allocation28_spill] sm:$0xff] %v5820_v1  ;;  %v5980_v3 = vld [vmem:[#allocation2 + $0x79] sm:$0xff] }
 0x1d3   : > { %v5803_v36 = vld [vmem:[#allocation2 + $0x80] sm:$0xff]  ;;  %v5805_v37 = vld [vmem:[#allocation2 + $0x88] sm:$0xff]  ;;  %v1876_v47 = vpack.c.bf16 %v1837_v24, %v1836_v32  ;;  %1735 = vst.msk [vmem:[#allocation2 + $0xa1] sm:$0xff] %vm1671_vm2, %v6985_v51  ;;  %v1597_v59 = vadd.f32 %v4669_v44, %v5684_v53  ;;  %v1409_v60 = vpop.f32.mrb[21].mxu0  ;;  %v1838_v24 = vld [vmem:[#allocation2 + $0x91] sm:$0xff] }
 0x1d4   : > { %7118 = vst [vmem:[#allocation26_spill] sm:$0xff] %v5805_v37  ;;  %v1595_v62 = vadd.f32 %v5684_v53, %v1409_v60  ;;  %v4670_v56 = vpop.f32.mrb[22].mxu0  ;;  %v5825_v8 = vld [vmem:[#allocation2 + $0x82] sm:$0xff]  ;;  %v5827_v11 = vld [vmem:[#allocation2 + $0x7a] sm:$0xff]  ;;  %7150 = vst [vmem:[#allocation57_spill] sm:$0xff] %v5980_v3 }
 0x1d5   : > { %5006 = vmatprep.subr.msk.bf16.mxu1 %vm1671_vm2, %v1876_v47  ;;  %v1645_v18 = vmax.f32 %v1597_v59, 0.0  ;;  %v1598_v12 = vadd.f32 %v4670_v56, %v5684_v53  ;;  %v1412_v41 = vpop.f32.mrb[23].mxu0  ;;  %7121 = vst [vmem:[#allocation29_spill] sm:$0xff] %v5825_v8  ;;  %7122 = vst [vmem:[#allocation30_spill] sm:$0xff] %v5827_v11  ;;  %v5915_v11 = vld [vmem:[#allocation2 + $0x41] sm:$0xff]  ;;  %v5987_v27 = vld [vmem:[#allocation2 + $0x71] sm:$0xff] }
 0x1d6   : > { %4303 = vmatpush3.bf16.xpose.msra.mxu1 %v1904_v50  ;;  %v1643_v13 = vmax.f32 %v1595_v62, 0.0  ;;  %v1596_v15 = vadd.f32 %v5684_v53, %v1412_v41  ;;  %v1869_v50 = vpack.c.bf16 %v1823_v40, %v1822_v0  ;;  %v1841_v60 = vld [vmem:[#allocation2 + $0xa9] sm:$0xff]  ;;  %7135 = vst [vmem:[#allocation43_spill] sm:$0xff] %v5915_v11  ;;  %7152 = vst [vmem:[#allocation59_spill] sm:$0xff] %v5987_v27  ;;  %v1834_v48 = vld [vmem:[#allocation2 + $0x71] sm:$0xff] }
 0x1d7   : > { %1704 = vst.msk [vmem:[#allocation2 + $0xc9] sm:$0xff] %vm1671_vm2, %v1645_v18  ;;  %v1646_v23 = vmax.f32 %v1598_v12, 0.0  ;;  %v1839_v26 = vld [vmem:[#allocation2 + $0x99] sm:$0xff]  ;;  %v5995_v55 = vld [vmem:[#allocation2 + $0x89] sm:$0xff] }
 0x1d8   : > { %1702 = vst.msk [vmem:[#allocation2 + $0xb9] sm:$0xff] %vm1671_vm2, %v1643_v13  ;;  %v1644_v44 = vmax.f32 %v1596_v15, 0.0  ;;  %v1877_v47 = vpack.c.bf16 %v1839_v26, %v1838_v24  ;;  %v5841_v62 = vld [vmem:[#allocation2 + $0x98] sm:$0xff]  ;;  %v5852_v15 = vld [vmem:[#allocation2 + $0xb0] sm:$0xff]  ;;  %v1907_v59 = vsel %vm1671_vm2, %v1869_v50, 0  ;;  %7155 = vst [vmem:[#allocation62_spill] sm:$0xff] %v5995_v55 }
 0x1d9   : > { %1736 = vst.msk [vmem:[#allocation2 + $0xb9] sm:$0xff] %vm1671_vm2, %v6985_v51  ;;  %1705 = vst.msk [vmem:[#allocation2 + $0xd1] sm:$0xff] %vm1671_vm2, %v1646_v23  ;;  %v1842_v39 = vld [vmem:[#allocation2 + $0xb1] sm:$0xff]  ;;  %v5993_v28 = vld [vmem:[#allocation2 + $0x99] sm:$0xff] }
 0x1da   : > { %1737 = vst.msk [vmem:[#allocation2 + $0xd1] sm:$0xff] %vm1671_vm2, %v6985_v51  ;;  %1703 = vst.msk [vmem:[#allocation2 + $0xc1] sm:$0xff] %vm1671_vm2, %v1644_v44  ;;  %v4673_v56 = vpop.f32.mrb[24].mxu0  ;;  %5007 = vmatprep.subr.msk.bf16.mxu1 %vm1671_vm2, %v1877_v47  ;;  %v1840_v0 = vld [vmem:[#allocation2 + $0xa1] sm:$0xff]  ;;  %v1826_v26 = vld [vmem:[#allocation2 + $0x31] sm:$0xff] }
 0x1db   : > { %v5847_v18 = vld [vmem:[#allocation2 + $0xa0] sm:$0xff]  ;;  %v5849_v12 = vld [vmem:[#allocation2 + $0xa8] sm:$0xff]  ;;  %v1601_v41 = vadd.f32 %v4673_v56, %v5684_v53  ;;  %v1425_v40 = vpop.f32.mrb[25].mxu0  ;;  %v1878_v13 = vpack.c.bf16 %v1841_v60, %v1840_v0  ;;  %7154 = vst [vmem:[#allocation61_spill] sm:$0xff] %v5993_v28 }
 0x1dc   : > { %v5854_v23 = vld [vmem:[#allocation2 + $0x9a] sm:$0xff]  ;;  %v5856_v24 = vld [vmem:[#allocation2 + $0xa2] sm:$0xff]  ;;  %v1599_v44 = vadd.f32 %v5684_v53, %v1425_v40  ;;  %v4674_v47 = vpop.f32.mrb[26].mxu0 }
 0x1dd   : > { %7124 = vst [vmem:[#allocation32_spill] sm:$0xff] %v5854_v23  ;;  %7125 = vst [vmem:[#allocation33_spill] sm:$0xff] %v5856_v24  ;;  %v1649_v56 = vmax.f32 %v1601_v41, 0.0  ;;  %v1602_v60 = vadd.f32 %v4674_v47, %v5684_v53  ;;  %v1428_v0 = vpop.f32.mrb[27].mxu0  ;;  %v5875_v47 = vld [vmem:[#allocation2 + $0xaa] sm:$0xff]  ;;  %v1832_v23 = vld [vmem:[#allocation2 + $0x61] sm:$0xff] }
 0x1de   : > { %4305 = vmatpush3.bf16.xpose.msra.mxu1 %v1907_v59  ;;  %v1647_v31 = vmax.f32 %v1599_v44, 0.0  ;;  %v1600_v29 = vadd.f32 %v5684_v53, %v1428_v0  ;;  %v1870_v59 = vpack.c.bf16 %v1825_v49, %v1824_v43  ;;  %7126 = vst [vmem:[#allocation34_spill] sm:$0xff] %v5875_v47  ;;  %v5922_v8 = vld [vmem:[#allocation2 + $0xc9] sm:$0xff]  ;;  %v1835_v63 = vld [vmem:[#allocation2 + $0x79] sm:$0xff] }
 0x1df   : > { %5008 = vmatprep.subr.msk.bf16.mxu1 %vm1671_vm2, %v1878_v13  ;;  %1708 = vst.msk [vmem:[#allocation2 + $0xe9] sm:$0xff] %vm1671_vm2, %v1649_v56  ;;  %v1650_v50 = vmax.f32 %v1602_v60, 0.0  ;;  %v1827_v56 = vld [vmem:[#allocation2 + $0x39] sm:$0xff]  ;;  %7138 = vst [vmem:[#allocation46_spill] sm:$0xff] %v5922_v8  ;;  %v6014_v17 = vld [vmem:[#allocation2 + $0xa9] sm:$0xff] }
 0x1e0   : > { %1738 = vst.msk [vmem:[#allocation2 + $0xe9] sm:$0xff] %vm1671_vm2, %v6985_v51  ;;  %1706 = vst.msk [vmem:[#allocation2 + $0xd9] sm:$0xff] %vm1671_vm2, %v1647_v31  ;;  %v1648_v41 = vmax.f32 %v1600_v29, 0.0  ;;  %v5873_v40 = vld [vmem:[#allocation2 + $0xb8] sm:$0xff]  ;;  %v1910_v57 = vsel %vm1671_vm2, %v1870_v59, 0  ;;  %v1871_v1 = vpack.c.bf16 %v1827_v56, %v1826_v26  ;;  %v5961_v26 = vld [vmem:[#allocation2 + $0x61] sm:$0xff] }
 0x1e1   : > { %v5877_v7 = vld [vmem:[#allocation2 + $0xb2] sm:$0xff]  ;;  %1709 = vst.msk [vmem:[#allocation2 + $0xf1] sm:$0xff] %vm1671_vm2, %v1650_v50  ;;  %v5880_v13 = vld [vmem:[#allocation2 + $0xc0] sm:$0xff]  ;;  %v5885_v31 = vld [vmem:[#allocation2 + $0xc8] sm:$0xff] }
 0x1e2   : > { %7127 = vst [vmem:[#allocation35_spill] sm:$0xff] %v5877_v7  ;;  %v1843_v44 = vld [vmem:[#allocation2 + $0xb9] sm:$0xff]  ;;  %1707 = vst.msk [vmem:[#allocation2 + $0xe1] sm:$0xff] %vm1671_vm2, %v1648_v41  ;;  %v4677_v60 = vpop.f32.mrb[28].mxu0  ;;  %v5887_v29 = vld [vmem:[#allocation2 + $0xd0] sm:$0xff]  ;;  %v1913_v20 = vsel %vm1671_vm2, %v1871_v1, 0 }
 0x1e3   : > { %v5889_v49 = vld [vmem:[#allocation2 + $0xba] sm:$0xff]  ;;  %v1605_v0 = vadd.f32 %v4677_v60, %v5684_v53  ;;  %v1441_v50 = vpop.f32.mrb[29].mxu0  ;;  %v5894_v61 = vld [vmem:[#allocation2 + $0xc2] sm:$0xff]  ;;  %v1879_v45 = vpack.c.bf16 %v1843_v44, %v1842_v39  ;;  %v5907_v51 = vld [vmem:[#allocation2 + $0x31] sm:$0xff]  ;;  %7144 = vst [vmem:[#allocation52_spill] sm:$0xff] %v5961_v26 }
 0x1e4   : > { %7128 = vst [vmem:[#allocation36_spill] sm:$0xff] %v5889_v49  ;;  %7129 = vst [vmem:[#allocation37_spill] sm:$0xff] %v5894_v61  ;;  %v1603_v41 = vadd.f32 %v5684_v53, %v1441_v50  ;;  %v4678_v25 = vpop.f32.mrb[30].mxu0  ;;  %v5900_v42 = vld [vmem:[#allocation2 + $0xb9] sm:$0xff]  ;;  %v5909_v50 = vld [vmem:[#allocation2 + $0xc1] sm:$0xff] }
 0x1e5   : > { %7130 = vst [vmem:[#allocation38_spill] sm:$0xff] %v5900_v42  ;;  %v1653_v43 = vmax.f32 %v1605_v0, 0.0  ;;  %v1606_v32 = vadd.f32 %v4678_v25, %v5684_v53  ;;  %v1444_v14 = vpop.f32.mrb[31].mxu0  ;;  %7132 = vst [vmem:[#allocation40_spill] sm:$0xff] %v5907_v51  ;;  %v5913_v44 = vld [vmem:[#allocation2 + $0xb1] sm:$0xff]  ;;  %v5917_v0 = vld [vmem:[#allocation2 + $0x49] sm:$0xff] }
 0x1e6   : > { %4307 = vmatpush3.bf16.xpose.msra.mxu1 %v1910_v57  ;;  %7133 = vst [vmem:[#allocation41_spill] sm:$0xff] %v5909_v50  ;;  %v1651_v59 = vmax.f32 %v1603_v41, 0.0  ;;  %v1604_v39 = vadd.f32 %v5684_v53, %v1444_v14  ;;  %7134 = vst [vmem:[#allocation42_spill] sm:$0xff] %v5913_v44  ;;  %v5919_v25 = vld [vmem:[#allocation2 + $0x59] sm:$0xff]  ;;  %v1844_v60 = vld [vmem:[#allocation2 + $0xc1] sm:$0xff]  ;;  %v7145_v51 = vmov 0.0  }
 0x1e7   : > { %5009 = vmatprep.subr.msk.bf16.mxu1 %vm1671_vm2, %v1879_v45  ;;  %7136 = vst [vmem:[#allocation44_spill] sm:$0xff] %v5917_v0  ;;  %7137 = vst [vmem:[#allocation45_spill] sm:$0xff] %v5919_v25  ;;  %v1654_v57 = vmax.f32 %v1606_v32, 0.0  ;;  %v5933_v22 = vld [vmem:[#allocation2 + $0xca] sm:$0xff]  ;;  %v5935_v32 = vld [vmem:[#allocation2 + $0xd2] sm:$0xff] }
 0x1e8   : > { %1712 = vst.msk [vmem:[#allocation2 + $0x109] sm:$0xff] %vm1671_vm2, %v1653_v43  ;;  %1710 = vst.msk [vmem:[#allocation2 + $0xf9] sm:$0xff] %vm1671_vm2, %v1651_v59  ;;  %v1652_v41 = vmax.f32 %v1604_v39, 0.0  ;;  %v5931_v21 = vld [vmem:[#allocation2 + $0xf0] sm:$0xff]  ;;  %v5940_v2 = vld [vmem:[#allocation2 + $0xd8] sm:$0xff] }
 0x1e9   : > { %7140 = vst [vmem:[#allocation48_spill] sm:$0xff] %v5933_v22  ;;  %7141 = vst [vmem:[#allocation49_spill] sm:$0xff] %v5935_v32  ;;  %v5942_v14 = vld [vmem:[#allocation2 + $0xe0] sm:$0xff]  ;;  %v5944_v45 = vld [vmem:[#allocation2 + $0xe8] sm:$0xff] }
 0x1ea   : > { %1713 = vst.msk [vmem:[#allocation2 + $0x111] sm:$0xff] %vm1671_vm2, %v1654_v57  ;;  %1711 = vst.msk [vmem:[#allocation2 + $0x101] sm:$0xff] %vm1671_vm2, %v1652_v41  ;;  %v4681_v39 = vpop.f32.mrb[32].mxu0  ;;  %v5953_v43 = vld [vmem:[#allocation2 + $0xda] sm:$0xff]  ;;  %v5955_v57 = vld [vmem:[#allocation2 + $0xe2] sm:$0xff] }
 0x1eb   : > { %7142 = vst [vmem:[#allocation50_spill] sm:$0xff] %v5953_v43  ;;  %7143 = vst [vmem:[#allocation51_spill] sm:$0xff] %v5955_v57  ;;  %v1609_v59 = vadd.f32 %v4681_v39, %v5684_v53  ;;  %v1457_v56 = vpop.f32.mrb[33].mxu0  ;;  %v1845_v41 = vld [vmem:[#allocation2 + $0xc9] sm:$0xff]  ;;  %v5968_v25 = vld [vmem:[#allocation2 + $0xd1] sm:$0xff] }
 0x1ec   : > { %1739 = vst.msk [vmem:[#allocation2 + $0x101] sm:$0xff] %vm1671_vm2, %v7145_v51  ;;  %7146 = vst [vmem:[#allocation53_spill] sm:$0xff] %v5968_v25  ;;  %v5970_v11 = vld [vmem:[#allocation2 + $0xd9] sm:$0xff]  ;;  %v1607_v8 = vadd.f32 %v5684_v53, %v1457_v56  ;;  %v4682_v0 = vpop.f32.mrb[34].mxu0  ;;  %v1880_v44 = vpack.c.bf16 %v1845_v41, %v1844_v60  ;;  %v5976_v42 = vld [vmem:[#allocation2 + $0xe1] sm:$0xff] }
 0x1ed   : > { %7147 = vst [vmem:[#allocation54_spill] sm:$0xff] %v5970_v11  ;;  %7148 = vst [vmem:[#allocation55_spill] sm:$0xff] %v5976_v42  ;;  %v5978_v39 = vld [vmem:[#allocation2 + $0xe9] sm:$0xff]  ;;  %v1657_v58 = vmax.f32 %v1609_v59, 0.0  ;;  %v1610_v49 = vadd.f32 %v4682_v0, %v5684_v53  ;;  %v1460_v61 = vpop.f32.mrb[35].mxu0  ;;  %v5989_v1 = vld [vmem:[#allocation2 + $0x81] sm:$0xff] }
 0x1ee   : > { %7149 = vst [vmem:[#allocation56_spill] sm:$0xff] %v5978_v39  ;;  %4309 = vmatpush3.bf16.xpose.msra.mxu1 %v1913_v20  ;;  %v1829_v50 = vld [vmem:[#allocation2 + $0x49] sm:$0xff]  ;;  %7153 = vst [vmem:[#allocation60_spill] sm:$0xff] %v5989_v1  ;;  %v1655_v60 = vmax.f32 %v1607_v8, 0.0  ;;  %v1608_v41 = vadd.f32 %v5684_v53, %v1460_v61  ;;  %v5997_v59 = vld [vmem:[#allocation2 + $0x91] sm:$0xff] }
 0x1ef   : > { %v5985_v56 = vld [vmem:[#allocation2 + $0x69] sm:$0xff]  ;;  %5010 = vmatprep.subr.msk.bf16.mxu1 %vm1671_vm2, %v1880_v44  ;;  %7156 = vst [vmem:[#allocation63_spill] sm:$0xff] %v5997_v59  ;;  %1716 = vst.msk [vmem:[#allocation2 + $0x129] sm:$0xff] %vm1671_vm2, %v1657_v58  ;;  %v1658_v20 = vmax.f32 %v1610_v49, 0.0  ;;  %v6002_v25 = vld [vmem:[#allocation2 + $0xf2] sm:$0xff]  ;;  %v1872_v58 = vpack.c.bf16 %v1829_v50, %v5966_v16 }
 0x1f0   : > { %7151 = vst [vmem:[#allocation58_spill] sm:$0xff] %v5985_v56  ;;  %v6000_v0 = vld [vmem:[#allocation2 + $0xea] sm:$0xff]  ;;  %7158 = vst [vmem:[#allocation65_spill] sm:$0xff] %v6002_v25  ;;  %v6004_v11 = vld [vmem:[#allocation2 + $0xa1] sm:$0xff]  ;;  %v1656_v47 = vmax.f32 %v1608_v41, 0.0 }
 0x1f1   : > { %7157 = vst [vmem:[#allocation64_spill] sm:$0xff] %v6000_v0  ;;  %7159 = vst [vmem:[#allocation66_spill] sm:$0xff] %v6004_v11  ;;  %v1846_v49 = vld [vmem:[#allocation2 + $0xd1] sm:$0xff]  ;;  %v1847_v7 = vld [vmem:[#allocation2 + $0xd9] sm:$0xff]  ;;  %v1916_v56 = vsel %vm1671_vm2, %v1872_v58, 0 }
 0x1f2   : > { %1714 = vst.msk [vmem:[#allocation2 + $0x119] sm:$0xff] %vm1671_vm2, %v1655_v60  ;;  %7160 = vst [vmem:[#allocation67_spill] sm:$0xff] %v6014_v17  ;;  %v6021_v8 = vld [vmem:[#allocation2 + $0xf8] sm:$0xff]  ;;  %v4685_v41 = vpop.f32.mrb[36].mxu0  ;;  %v6043_v28 = vld [vmem:[#allocation2 + $0x110] sm:$0xff]  ;;  %v1881_v27 = vpack.c.bf16 %v1847_v7, %v1846_v49 }
 0x1f3   : > { %1740 = vst.msk [vmem:[#allocation2 + $0x119] sm:$0xff] %vm1671_vm2, %v7145_v51  ;;  %1717 = vst.msk [vmem:[#allocation2 + $0x131] sm:$0xff] %vm1671_vm2, %v1658_v20  ;;  %v6023_v44 = vld [vmem:[#allocation2 + $0xf1] sm:$0xff]  ;;  %v6025_v60 = vld [vmem:[#allocation2 + $0xf9] sm:$0xff]  ;;  %v1613_v16 = vadd.f32 %v4685_v41, %v5684_v53  ;;  %v1473_v1 = vpop.f32.mrb[37].mxu0 }
 0x1f4   : > { %7161 = vst [vmem:[#allocation68_spill] sm:$0xff] %v6023_v44  ;;  %7162 = vst [vmem:[#allocation69_spill] sm:$0xff] %v6025_v60  ;;  %v2255_v61 = vld [vmem:[#allocation2 + $0x102] sm:$0xff]  ;;  %v2256_v20 = vld [vmem:[#allocation2 + $0x10a] sm:$0xff]  ;;  %v1611_v55 = vadd.f32 %v5684_v53, %v1473_v1  ;;  %v4686_v26 = vpop.f32.mrb[38].mxu0 }
 0x1f5   : > { %1741 = vst.msk [vmem:[#allocation2 + $0x131] sm:$0xff] %vm1671_vm2, %v7145_v51  ;;  %1715 = vst.msk [vmem:[#allocation2 + $0x121] sm:$0xff] %vm1671_vm2, %v1656_v47  ;;  %v6034_v19 = vld [vmem:[#allocation2 + $0x100] sm:$0xff]  ;;  %v2287_v50 = vpack.c.bf16 %v2256_v20, %v2255_v61  ;;  %v6041_v59 = vld [vmem:[#allocation2 + $0x108] sm:$0xff]  ;;  %v1661_v11 = vmax.f32 %v1613_v16, 0.0  ;;  %v1614_v41 = vadd.f32 %v4686_v26, %v5684_v53  ;;  %v1476_v61 = vpop.f32.mrb[39].mxu0 }
 0x1f6   : > { %4311 = vmatpush3.bf16.xpose.msra.mxu1 %v1916_v56  ;;  %v1831_v17 = vld [vmem:[#allocation2 + $0x59] sm:$0xff]  ;;  %v6053_v44 = vld [vmem:[#allocation2 + $0x101] sm:$0xff]  ;;  %v1659_v47 = vmax.f32 %v1611_v55, 0.0  ;;  %v1612_v1 = vadd.f32 %v5684_v53, %v1476_v61  ;;  %v1830_v58 = vld [vmem:[#allocation2 + $0x51] sm:$0xff]  ;;  %1681 = vst.msk [vmem:[#allocation2 + $0x1b1] sm:$0x7f] %vm1680_vm5, %v7145_v51 }
 0x1f7   : > { %v2355_v20 = vsel %vm1671_vm2, %v2287_v50, 0  ;;  %7163 = vst [vmem:[#allocation70_spill] sm:$0xff] %v6053_v44  ;;  %5011 = vmatprep.subr.msk.bf16.mxu1 %vm1671_vm2, %v1881_v27  ;;  %1720 = vst.msk [vmem:[#allocation2 + $0x149] sm:$0xff] %vm1671_vm2, %v1661_v11  ;;  %v1662_v7 = vmax.f32 %v1614_v41, 0.0  ;;  %v6059_v26 = vld [vmem:[#allocation2 + $0x109] sm:$0xff]  ;;  %v1873_v55 = vpack.c.bf16 %v1831_v17, %v1830_v58  ;;  %v1848_v11 = vld [vmem:[#allocation2 + $0xe1] sm:$0xff] }
 0x1f8   : > { %4736 = vmatpush3.bf16.xpose.msra.mxu0 %v2355_v20  ;;  %7164 = vst [vmem:[#allocation71_spill] sm:$0xff] %v6059_v26  ;;  %1742 = vst.msk [vmem:[#allocation2 + $0x149] sm:$0xff] %vm1671_vm2, %v7145_v51  ;;  %v1660_v56 = vmax.f32 %v1612_v1, 0.0  ;;  %v1849_v49 = vld [vmem:[#allocation2 + $0xe9] sm:$0xff]  ;;  %v1850_v46 = vld [vmem:[#allocation2 + $0xf1] sm:$0xff] }
 0x1f9   : > { %4737 = vmatprep.subr.bf16.mxu0 %v7145_v51  ;;  %1718 = vst.msk [vmem:[#allocation2 + $0x139] sm:$0xff] %vm1671_vm2, %v1659_v47  ;;  %1721 = vst.msk [vmem:[#allocation2 + $0x151] sm:$0xff] %vm1671_vm2, %v1662_v7  ;;  %v1919_v44 = vsel %vm1671_vm2, %v1873_v55, 0  ;;  %v1882_v26 = vpack.c.bf16 %v1849_v49, %v1848_v11  ;;  %v6094_v49 = vld [vmem:[#allocation2 + $0x129] sm:$0xff]  ;;  %v1852_v0 = vld [vmem:[#allocation2 + $0x101] sm:$0xff] }
 0x1fa   : > { %v2257_v16 = vld [vmem:[#allocation2 + $0x112] sm:$0xff]  ;;  %1719 = vst.msk [vmem:[#allocation2 + $0x141] sm:$0xff] %vm1671_vm2, %v1660_v56  ;;  %v4689_v61 = vpop.f32.mrb[40].mxu0  ;;  %v1853_v57 = vld [vmem:[#allocation2 + $0x109] sm:$0xff] }
 0x1fb   : > { %v1617_v47 = vadd.f32 %v4689_v61, %v5684_v53  ;;  %v1489_v1 = vpop.f32.mrb[41].mxu0  ;;  %v6076_v58 = vld [vmem:[#allocation2 + $0x119] sm:$0xff]  ;;  %v1884_v43 = vpack.c.bf16 %v1853_v57, %v1852_v0 }
 0x1fc   : > { %v6067_v50 = vld [vmem:[#allocation2 + $0x11a] sm:$0xff]  ;;  %v6069_v41 = vld [vmem:[#allocation2 + $0x122] sm:$0xff]  ;;  %v1615_v7 = vadd.f32 %v5684_v53, %v1489_v1  ;;  %v4690_v3 = vpop.f32.mrb[42].mxu0  ;;  %v6083_v60 = vld [vmem:[#allocation2 + $0x131] sm:$0xff] }
 0x1fd   : > { %7165 = vst [vmem:[#allocation72_spill] sm:$0xff] %v6067_v50  ;;  %7166 = vst [vmem:[#allocation73_spill] sm:$0xff] %v6069_v41  ;;  %v2288_v20 = vpack.c.bf16 %v6067_v50, %v2257_v16  ;;  %v6078_v27 = vld [vmem:[#allocation2 + $0x121] sm:$0xff]  ;;  %v1665_v61 = vmax.f32 %v1617_v47, 0.0  ;;  %v1618_v42 = vadd.f32 %v4690_v3, %v5684_v53  ;;  %v1492_v39 = vpop.f32.mrb[43].mxu0  ;;  %v6092_v55 = vld [vmem:[#allocation2 + $0x12a] sm:$0xff] }
 0x1fe   : > { %v6085_v16 = vld [vmem:[#allocation2 + $0x120] sm:$0xff]  ;;  %v6087_v17 = vld [vmem:[#allocation2 + $0x128] sm:$0xff]  ;;  %4313 = vmatpush3.bf16.xpose.msra.mxu1 %v1919_v44  ;;  %v1663_v24 = vmax.f32 %v1615_v7, 0.0  ;;  %v1616_v1 = vadd.f32 %v5684_v53, %v1492_v39  ;;  %7167 = vst [vmem:[#allocation74_spill] sm:$0xff] %v6092_v55  ;;  %v6109_v11 = vld [vmem:[#allocation2 + $0x130] sm:$0xff]  ;;  %v2289_v54 = vpack.c.bf16 %v6092_v55, %v6069_v41  ;;  %v1952_v0 = vsel %vm1671_vm2, %v1884_v43, 0 }
 0x1ff   : > { %v2358_v56 = vsel %vm1671_vm2, %v2288_v20, 0  ;;  %5012 = vmatprep.subr.msk.bf16.mxu1 %vm1671_vm2, %v1882_v26  ;;  %1724 = vst.msk [vmem:[#allocation2 + $0x169] sm:$0xff] %vm1671_vm2, %v1665_v61  ;;  %v1666_v20 = vmax.f32 %v1618_v42, 0.0  ;;  %v1833_v3 = vld [vmem:[#allocation2 + $0x69] sm:$0xff]  ;;  %v1851_v61 = vld [vmem:[#allocation2 + $0xf9] sm:$0xff] }
 0x200   : > { %4738 = vmatpush3.bf16.xpose.msra.mxu0 %v2358_v56  ;;  %v6100_v44 = vld [vmem:[#allocation2 + $0x149] sm:$0xff]  ;;  %1722 = vst.msk [vmem:[#allocation2 + $0x159] sm:$0xff] %vm1671_vm2, %v1663_v24  ;;  %v1664_v47 = vmax.f32 %v1616_v1, 0.0  ;;  %v1874_v7 = vpack.c.bf16 %v1833_v3, %v1832_v23  ;;  %v6107_v56 = vld [vmem:[#allocation2 + $0x151] sm:$0xff]  ;;  %v6123_v1 = vld [vmem:[#allocation2 + $0x139] sm:$0xff]  ;;  %v2361_v6 = vsel %vm1671_vm2, %v2289_v54, 0 }
 0x201   : > { %4739 = vmatprep.subr.bf16.mxu0 %v7145_v51  ;;  %v6111_v42 = vld [vmem:[#allocation2 + $0x138] sm:$0xff]  ;;  %1725 = vst.msk [vmem:[#allocation2 + $0x171] sm:$0xff] %vm1671_vm2, %v1666_v20  ;;  %v6116_v39 = vld [vmem:[#allocation2 + $0x141] sm:$0xff]  ;;  %v6249_v50 = vld [vmem:[#allocation2 + $0x10a] sm:$0xff] }
 0x202   : > { %1723 = vst.msk [vmem:[#allocation2 + $0x161] sm:$0xff] %vm1671_vm2, %v1664_v47  ;;  %v4693_v24 = vpop.f32.mrb[44].mxu0  ;;  %v1922_v23 = vsel %vm1671_vm2, %v1874_v7, 0  ;;  %v1883_v47 = vpack.c.bf16 %v1851_v61, %v1850_v46  ;;  %v6132_v35 = vld [vmem:[#allocation2 + $0x132] sm:$0xff]  ;;  %v6134_v38 = vld [vmem:[#allocation2 + $0x140] sm:$0xff]  ;;  %v6136_v33 = vld [vmem:[#allocation2 + $0x148] sm:$0xff] }
 0x203   : > { %1743 = vst.msk [vmem:[#allocation2 + $0x161] sm:$0xff] %vm1671_vm2, %v7145_v51  ;;  %v1621_v20 = vadd.f32 %v4693_v24, %v5684_v53  ;;  %v1505_v3 = vpop.f32.mrb[45].mxu0  ;;  %7168 = vst [vmem:[#allocation75_spill] sm:$0xff] %v6132_v35  ;;  %v6140_v9 = vld [vmem:[#allocation2 + $0x13a] sm:$0xff] }
 0x204   : > { %v1619_v26 = vadd.f32 %v5684_v53, %v1505_v3  ;;  %v4694_v10 = vpop.f32.mrb[46].mxu0  ;;  %7169 = vst [vmem:[#allocation76_spill] sm:$0xff] %v6140_v9  ;;  %v6142_v3 = vld [vmem:[#allocation2 + $0x142] sm:$0xff]  ;;  %7177 = vst [vmem:[#allocation84_spill] sm:$0xff] %v6249_v50 }
 0x205   : > { %v1669_v34 = vmax.f32 %v1621_v20, 0.0  ;;  %v1622_v24 = vadd.f32 %v4694_v10, %v5684_v53  ;;  %v1508_v5 = vpop.f32.mrb[47].mxu0  ;;  %7170 = vst [vmem:[#allocation77_spill] sm:$0xff] %v6142_v3 }
 0x206   : > { %4315 = vmatpush3.bf16.xpose.msra.mxu1 %v1922_v23  ;;  %v1667_v7 = vmax.f32 %v1619_v26, 0.0  ;;  %v1620_v46 = vadd.f32 %v5684_v53, %v1508_v5  ;;  %v6150_v23 = vld [vmem:[#allocation2 + $0x150] sm:$0xff] }
 0x207   : > { %5013 = vmatprep.subr.msk.bf16.mxu1 %vm1671_vm2, %v1883_v47  ;;  %1728 = vst.msk [vmem:[#allocation2 + $0x189] sm:$0xff] %vm1671_vm2, %v1669_v34  ;;  %v1670_v61 = vmax.f32 %v1622_v24, 0.0  ;;  %v6148_v10 = vld [vmem:[#allocation2 + $0x152] sm:$0xff]  ;;  %v6159_v34 = vld [vmem:[#allocation2 + $0x14a] sm:$0xff] }
 0x208   : > { %4740 = vmatpush3.bf16.xpose.msra.mxu0 %v2361_v6  ;;  %v6152_v54 = vld [vmem:[#allocation2 + $0x158] sm:$0xff]  ;;  %1726 = vst.msk [vmem:[#allocation2 + $0x179] sm:$0xff] %vm1671_vm2, %v1667_v7  ;;  %v1668_v5 = vmax.f32 %v1620_v46, 0.0  ;;  %v1875_v6 = vpack.c.bf16 %v1835_v63, %v1834_v48  ;;  %7171 = vst [vmem:[#allocation78_spill] sm:$0xff] %v6159_v34  ;;  %v6161_v26 = vld [vmem:[#allocation2 + $0x169] sm:$0xff]  ;;  %v2290_v63 = vpack.c.bf16 %v6140_v9, %v6132_v35 }
 0x209   : > { %4741 = vmatprep.subr.bf16.mxu0 %v7145_v51  ;;  %v6163_v47 = vld [vmem:[#allocation2 + $0x171] sm:$0xff]  ;;  %1744 = vst.msk [vmem:[#allocation2 + $0x179] sm:$0xff] %vm1671_vm2, %v7145_v51  ;;  %1729 = vst.msk [vmem:[#allocation2 + $0x191] sm:$0xff] %vm1671_vm2, %v1670_v61  ;;  %v6181_v46 = vld [vmem:[#allocation2 + $0x159] sm:$0xff] }
 0x20a   : > { %1745 = vst.msk [vmem:[#allocation2 + $0x191] sm:$0xff] %vm1671_vm2, %v7145_v51  ;;  %1727 = vst.msk [vmem:[#allocation2 + $0x181] sm:$0xff] %vm1671_vm2, %v1668_v5  ;;  %v6183_v4 = vld [vmem:[#allocation2 + $0x161] sm:$0xff]  ;;  %v1925_v20 = vsel %vm1671_vm2, %v1875_v6, 0  ;;  %v2364_v25 = vsel %vm1671_vm2, %v2290_v63, 0  ;;  %v6201_v24 = vld [vmem:[#allocation2 + $0x16a] sm:$0xff] }
 0x20b   : > { %v6185_v53 = vld [vmem:[#allocation2 + $0x160] sm:$0xff]  ;;  %v6187_v61 = vld [vmem:[#allocation2 + $0x168] sm:$0xff]  ;;  %7172 = vst [vmem:[#allocation79_spill] sm:$0xff] %v6201_v24  ;;  %v6207_v22 = vld [vmem:[#allocation2 + $0x170] sm:$0xff] }
 0x20c   : > { %v6192_v48 = vld [vmem:[#allocation2 + $0x15a] sm:$0xff]  ;;  %v6194_v7 = vld [vmem:[#allocation2 + $0x162] sm:$0xff] }
 0x20e   : > { %4317 = vmatpush3.bf16.xpose.msra.mxu1 %v1925_v20  ;;  %v6232_v6 = vld [vmem:[#allocation2 + $0x189] sm:$0xff] }
 0x20f   : > { %4695 = vmatprep.subr.bf16.mxu1 %v7145_v51 }
 0x210   : > { %4742 = vmatpush3.bf16.xpose.msra.mxu0 %v2364_v25  ;;  %v6205_v32 = vld [vmem:[#allocation2 + $0x172] sm:$0xff]  ;;  %v2291_v25 = vpack.c.bf16 %v6159_v34, %v6142_v3  ;;  %v6246_v3 = vld [vmem:[#allocation2 + $0x102] sm:$0xff] }
 0x211   : > { %4743 = vmatprep.subr.bf16.mxu0 %v7145_v51  ;;  %7173 = vst [vmem:[#allocation80_spill] sm:$0xff] %v6205_v32  ;;  %v6209_v20 = vld [vmem:[#allocation2 + $0x178] sm:$0xff]  ;;  %v6213_v63 = vld [vmem:[#allocation2 + $0x180] sm:$0xff]  ;;  %v6215_v5 = vld [vmem:[#allocation2 + $0x188] sm:$0xff] }
 0x212   : > { %v6226_v55 = vld [vmem:[#allocation2 + $0x181] sm:$0xff]  ;;  %v2367_v34 = vsel %vm1671_vm2, %v2291_v25, 0  ;;  %v6236_v57 = vld [vmem:[#allocation2 + $0x18a] sm:$0xff]  ;;  %7176 = vst [vmem:[#allocation83_spill] sm:$0xff] %v6246_v3  ;;  %v1889_v3 = vpack.c.bf16 %v6181_v46, %v6107_v56 }
 0x213   : > { %v6234_v9 = vld [vmem:[#allocation2 + $0x182] sm:$0xff]  ;;  %7175 = vst [vmem:[#allocation82_spill] sm:$0xff] %v6236_v57 }
 0x214   : > { %7174 = vst [vmem:[#allocation81_spill] sm:$0xff] %v6234_v9  ;;  %v6313_v9 = vld [vmem:[#allocation2 + $0x179] sm:$0xff] }
 0x215   : > { %4319 = vmatmul.mubr.msk.bf16.vlgmr.msra.gmra.mrb[0].mxu1 %vm1671_vm2, %v5677_v52  ;;  %v1854_v52 = vld [vmem:[#allocation2 + $0x111] sm:$0xff] }
 0x216   : > { %4696 = vmatpush3.bf16.xpose.msra.mxu1 %v1952_v0  ;;  %4711 = vmatprep.mubr.msk.bf16.mxu1 %vm5247_vm4, %v7145_v51  ;;  %v1885_v25 = vpack.c.bf16 %v6076_v58, %v1854_v52  ;;  %v2292_v0 = vpack.c.bf16 %v6192_v48, %v6148_v10  ;;  %v1886_v52 = vpack.c.bf16 %v6094_v49, %v6078_v27 }
 0x217   : > { %4697 = vmatprep.subr.bf16.mxu1 %v7145_v51 }
 0x218   : > { %4744 = vmatpush3.bf16.xpose.msra.mxu0 %v2367_v34  ;;  %v1955_v35 = vsel %vm1671_vm2, %v1885_v25, 0  ;;  %v2370_v41 = vsel %vm1671_vm2, %v2292_v0, 0  ;;  %v2293_v34 = vpack.c.bf16 %v6201_v24, %v6194_v7  ;;  %v1958_v25 = vsel %vm1671_vm2, %v1886_v52, 0  ;;  %v6263_v0 = vld [vmem:[#allocation2 + $0x17a] sm:$0xff] }
 0x219   : > { %4745 = vmatprep.subr.bf16.mxu0 %v7145_v51  ;;  %7178 = vst [vmem:[#allocation85_spill] sm:$0xff] %v6263_v0  ;;  %v2294_v43 = vpack.c.bf16 %v6263_v0, %v6205_v32  ;;  %v6276_v52 = vld [vmem:[#allocation2 + $0x118] sm:$0xff]  ;;  %v1747_v0 = vld [vmem:[#allocation2 + $0x8] sm:$0xff]  ;;  %v2536_v24 = vpack.c.bf16 %v6185_v53, %v6152_v54  ;;  %v6332_v32 = vld [vmem:[%s6982_s3] sm:$0xff]  }
 0x21e   : > { %4698 = vmatpush3.bf16.xpose.msra.mxu1 %v1955_v35  ;;  %v2373_v35 = vsel %vm1671_vm2, %v2293_v34, 0  ;;  %v2376_v34 = vsel %vm1671_vm2, %v2294_v43, 0 }
 0x21f   : > { %4699 = vmatprep.subr.bf16.mxu1 %v7145_v51 }
 0x220   : > { %4746 = vmatpush3.bf16.xpose.msra.mxu0 %v2370_v41  ;;  %v1887_v41 = vpack.c.bf16 %v6123_v1, %v6083_v60 }
 0x221   : > { %4747 = vmatprep.subr.bf16.mxu0 %v7145_v51 }
 0x222   : > { %v6271_v50 = vsel %vm1671_vm2, %v1887_v41, 0  ;;  %v2532_v41 = vpack.c.bf16 %v6085_v16, %v6276_v52 }
 0x223   : > { %7179 = vst [vmem:[#allocation86_spill] sm:$0xff] %v6271_v50 }
 0x226   : > { %4700 = vmatpush3.bf16.xpose.msra.mxu1 %v1958_v25  ;;  %v1888_v25 = vpack.c.bf16 %v6100_v44, %v6116_v39 }
 0x227   : > { %4701 = vmatprep.subr.bf16.mxu1 %v7145_v51 }
 0x228   : > { %4748 = vmatpush3.bf16.xpose.msra.mxu0 %v2373_v35  ;;  %v6284_v35 = vld [vmem:[%s6982_s3 + $0x10] sm:$0xff]   ;;  %v1964_v43 = vsel %vm1671_vm2, %v1888_v25, 0  ;;  %v2533_v25 = vpack.c.bf16 %v6109_v11, %v6087_v17 }
 0x229   : > { %4749 = vmatprep.subr.bf16.mxu0 %v7145_v51 }
 0x22e   : > { %4702 = vmatpush3.bf16.xpose.msra.mxu1 %v6271_v50  ;;  %v2534_v50 = vpack.c.bf16 %v6134_v38, %v6111_v42 }
 0x22f   : > { %4703 = vmatprep.subr.bf16.mxu1 %v7145_v51 }
 0x230   : > { %4750 = vmatpush3.bf16.xpose.msra.mxu0 %v2376_v34  ;;  %v2600_v34 = vsel %vm1671_vm2, %v2532_v41, 0  ;;  %v2603_v41 = vsel %vm1671_vm2, %v2533_v25, 0  ;;  %v1891_v25 = vpack.c.bf16 %v6313_v9, %v6163_v47 }
 0x231   : > { %4755 = vmatprep.subr.bf16.mxu0 %v7145_v51 }
 0x236   : > { %4704 = vmatpush3.bf16.xpose.msra.mxu1 %v1964_v43  ;;  %v6301_v43 = vsel %vm1671_vm2, %v1889_v3, 0  ;;  %v2606_v3 = vsel %vm1671_vm2, %v2534_v50, 0  ;;  %v1802_v50 = vpack.c.bf16 %v5805_v37, %v5803_v36 }
 0x237   : > { %4752 = vmatmul.mubr.msk.bf16.vlgmr.msra.gmra.mrb[48].mxu0 %vm1671_vm2, %v6284_v35  ;;  %4705 = vmatprep.subr.bf16.mxu1 %v7145_v51  ;;  %7180 = vst [vmem:[#allocation87_spill] sm:$0xff] %v6301_v43 }
 0x238   : > { %4756 = vmatpush3.bf16.xpose.msra.mxu0 %v2600_v34  ;;  %4771 = vmatprep.mubr.msk.bf16.mxu0 %vm5247_vm4, %v7145_v51  ;;  %v1890_v34 = vpack.c.bf16 %v6161_v26, %v6183_v4 }
 0x239   : > { %4757 = vmatprep.subr.bf16.mxu0 %v7145_v51 }
 0x23a   : > { %v1970_v57 = vsel %vm1671_vm2, %v1890_v34, 0  ;;  %v1973_v34 = vsel %vm1671_vm2, %v1891_v25, 0 }
 0x23e   : > { %4706 = vmatpush3.bf16.xpose.msra.mxu1 %v6301_v43  ;;  %v1746_v43 = vld [vmem:[#allocation2] sm:$0xff] }
 0x23f   : > { %4707 = vmatprep.subr.bf16.mxu1 %v7145_v51 }
 0x240   : > { %4758 = vmatpush3.bf16.xpose.msra.mxu0 %v2603_v41  ;;  %v2535_v41 = vpack.c.bf16 %v6150_v23, %v6136_v33 }
 0x241   : > { %4759 = vmatprep.subr.bf16.mxu0 %v7145_v51 }
 0x246   : > { %4708 = vmatpush3.bf16.xpose.msra.mxu1 %v1970_v57  ;;  %v2609_v57 = vsel %vm1671_vm2, %v2535_v41, 0  ;;  %v5176_v41 = vld [vmem:[%s6982_s3 + $0x8] sm:$0xff]  }
 0x247   : > { %4709 = vmatprep.subr.bf16.mxu1 %v7145_v51 }
 0x248   : > { %4760 = vmatpush3.bf16.xpose.msra.mxu0 %v2606_v3  ;;  %v1794_v3 = vpack.c.bf16 %v1747_v0, %v1746_v43  ;;  %v1803_v0 = vpack.c.bf16 %v5841_v62, %v5800_v30  ;;  %v2612_v43 = vsel %vm1671_vm2, %v2536_v24, 0 }
 0x249   : > { %4761 = vmatprep.subr.bf16.mxu0 %v7145_v51 }
 0x24a   : > { %v2068_v25 = vsel %vm1671_vm2, %v1794_v3, 0  ;;  %v2537_v3 = vpack.c.bf16 %v6207_v22, %v6187_v61 }
 0x24c   : > { %v2615_v24 = vsel %vm1671_vm2, %v2537_v3, 0  ;;  %v6361_v3 = vld [vmem:[#allocation2 + $0x190] sm:$0xff] }
 0x24e   : > { %4710 = vmatpush3.bf16.xpose.msra.mxu1 %v1973_v34  ;;  %v1748_v34 = vld [vmem:[#allocation2 + $0x10] sm:$0xff] }
 0x24f   : > { %5014 = vmatprep.subr.msk.bf16.mxu1 %vm1671_vm2, %v1802_v50  ;;  %v5177_v50 = vld [vmem:[#allocation2 + $0x18] sm:$0xff] }
 0x250   : > { %4762 = vmatpush3.bf16.xpose.msra.mxu0 %v2609_v57  ;;  %v1795_v57 = vpack.c.bf16 %v5177_v50, %v1748_v34  ;;  %v2538_v34 = vpack.c.bf16 %v6213_v63, %v6209_v20 }
 0x251   : > { %4763 = vmatprep.subr.bf16.mxu0 %v7145_v51 }
 0x255   : > { %4712 = vmatmul.mubr.msk.bf16.vlgmr.msra.gmra.mrb[4].mxu1 %vm1671_vm2, %v5176_v41  ;;  %v2071_v41 = vsel %vm1671_vm2, %v1795_v57, 0  ;;  %v1805_v57 = vpack.c.bf16 %v5873_v40, %v5852_v15 }
 0x256   : > { %4330 = vmatpush3.bf16.xpose.msra.mxu1 %v2068_v25  ;;  %4345 = vmatprep.mubr.msk.bf16.mxu1 %vm1671_vm2, %v6332_v32  ;;  %v1804_v25 = vpack.c.bf16 %v5849_v12, %v5847_v18 }
 0x257   : > { %5015 = vmatprep.subr.msk.bf16.mxu1 %vm1671_vm2, %v1803_v0  ;;  %v5178_v0 = vld [vmem:[#allocation2 + $0x20] sm:$0xff] }
 0x258   : > { %4764 = vmatpush3.bf16.xpose.msra.mxu0 %v2612_v43  ;;  %v5179_v43 = vld [vmem:[#allocation2 + $0x28] sm:$0xff] }
 0x259   : > { %4765 = vmatprep.subr.bf16.mxu0 %v7145_v51  ;;  %v1796_v37 = vpack.c.bf16 %v5179_v43, %v5178_v0  ;;  %v2539_v43 = vpack.c.bf16 %v6361_v3, %v6215_v5 }
 0x25b   : > { %v2074_v50 = vsel %vm1671_vm2, %v1796_v37, 0 }
 0x25e   : > { %4332 = vmatpush3.bf16.xpose.msra.mxu1 %v2071_v41  ;;  %v2618_v41 = vsel %vm1671_vm2, %v2538_v34, 0  ;;  %v2621_v34 = vsel %vm1671_vm2, %v2539_v43, 0  ;;  %v7181_v43 = vpack.c.bf16 %v6078_v27, %v6076_v58  ;;  %v7182_v27 = vpack.c.bf16 %v6083_v60, %v6094_v49  ;;  %v5188_v49 = vld [vmem:[#allocation2 + $0x70] sm:$0xff] }
 0x25f   : > { %5016 = vmatprep.subr.msk.bf16.mxu1 %vm1671_vm2, %v1804_v25  ;;  %v5180_v25 = vld [vmem:[#allocation2 + $0x30] sm:$0xff] }
 0x260   : > { %4766 = vmatpush3.bf16.xpose.msra.mxu0 %v2615_v24  ;;  %v5181_v24 = vld [vmem:[#allocation2 + $0x38] sm:$0xff]  ;;  %v2848_v58 = vsel %vm1671_vm2, %v7182_v27, 0  ;;  %v7184_v27 = vpack.c.bf16 %v6107_v56, %v6100_v44  ;;  %v1811_v56 = vpack.c.bf16 %v6276_v52, %v6043_v28 }
 0x261   : > { %4767 = vmatprep.subr.bf16.mxu0 %v7145_v51  ;;  %v1797_v0 = vpack.c.bf16 %v5181_v24, %v5180_v25  ;;  %v6375_v25 = vld [vmem:[%s6982_s3 + $0x18] sm:$0xff]  }
 0x263   : > { %v2077_v37 = vsel %vm1671_vm2, %v1797_v0, 0  ;;  %v1807_v0 = vpack.c.bf16 %v5940_v2, %v5887_v29 }
 0x266   : > { %4334 = vmatpush3.bf16.xpose.msra.mxu1 %v2074_v50  ;;  %v1806_v50 = vpack.c.bf16 %v5885_v31, %v5880_v13 }
 0x267   : > { %5017 = vmatprep.subr.msk.bf16.mxu1 %vm1671_vm2, %v1805_v57  ;;  %v5182_v57 = vld [vmem:[#allocation2 + $0x40] sm:$0xff] }
 0x268   : > { %4768 = vmatpush3.bf16.xpose.msra.mxu0 %v2618_v41  ;;  %v5183_v41 = vld [vmem:[#allocation2 + $0x48] sm:$0xff] }
 0x269   : > { %4769 = vmatprep.subr.bf16.mxu0 %v7145_v51  ;;  %v1798_v30 = vpack.c.bf16 %v5183_v41, %v5182_v57  ;;  %v1808_v41 = vpack.c.bf16 %v5944_v45, %v5942_v14 }
 0x26b   : > { %v2080_v24 = vsel %vm1671_vm2, %v1798_v30, 0  ;;  %v5184_v30 = vld [vmem:[#allocation2 + $0x50] sm:$0xff] }
 0x26e   : > { %4336 = vmatpush3.bf16.xpose.msra.mxu1 %v2077_v37  ;;  %v2845_v37 = vsel %vm1671_vm2, %v7181_v43, 0 }
 0x26f   : > { %5018 = vmatprep.subr.msk.bf16.mxu1 %vm1671_vm2, %v1806_v50  ;;  %v5185_v50 = vld [vmem:[#allocation2 + $0x58] sm:$0xff] }
 0x270   : > { %4770 = vmatpush3.bf16.xpose.msra.mxu0 %v2621_v34  ;;  %v1799_v34 = vpack.c.bf16 %v5185_v50, %v5184_v30  ;;  %v1809_v30 = vpack.c.bf16 %v6021_v8, %v5931_v21  ;;  %v7183_v50 = vpack.c.bf16 %v6116_v39, %v6123_v1  ;;  %v1810_v39 = vpack.c.bf16 %v6041_v59, %v6034_v19 }
 0x271   : > { %4775 = vmatprep.subr.bf16.mxu0 %v7145_v51 }
 0x272   : > { %v2083_v57 = vsel %vm1671_vm2, %v1799_v34, 0  ;;  %v2851_v60 = vsel %vm1671_vm2, %v7183_v50, 0  ;;  %v5189_v34 = vld [vmem:[#allocation2 + $0x78] sm:$0xff]  ;;  %v2116_v1 = vsel %vm1671_vm2, %v1810_v39, 0  ;;  %v6463_v50 = vld [vmem:[%s6982_s3 + $0x20] sm:$0xff]  }
 0x276   : > { %4338 = vmatpush3.bf16.xpose.msra.mxu1 %v2080_v24  ;;  %v5186_v24 = vld [vmem:[#allocation2 + $0x60] sm:$0xff] }
 0x277   : > { %4772 = vmatmul.mubr.msk.bf16.vlgmr.msra.gmra.mrb[52].mxu0 %vm1671_vm2, %v6375_v25  ;;  %5019 = vmatprep.subr.msk.bf16.mxu1 %vm1671_vm2, %v1807_v0  ;;  %v5187_v0 = vld [vmem:[#allocation2 + $0x68] sm:$0xff] }
 0x278   : > { %4776 = vmatpush3.bf16.xpose.msra.mxu0 %v2845_v37  ;;  %4791 = vmatprep.mubr.msk.bf16.mxu0 %vm5247_vm4, %v7145_v51  ;;  %v1800_v43 = vpack.c.bf16 %v5187_v0, %v5186_v24  ;;  %v7185_v24 = vpack.c.bf16 %v6183_v4, %v6181_v46  ;;  %v2119_v0 = vsel %vm1671_vm2, %v1811_v56, 0  ;;  %v2783_v46 = vpack.c.bf16 %v6226_v55, %v6313_v9 }
 0x279   : > { %4777 = vmatprep.subr.bf16.mxu0 %v7145_v51  ;;  %v7188_v9 = vpack.c.bf16 %v6111_v42, %v6109_v11  ;;  %v7189_v11 = vpack.c.bf16 %v6136_v33, %v6134_v38  ;;  %v7193_v33 = vpack.c.bf16 %v6152_v54, %v6150_v23  ;;  %v7198_v54 = vld [vmem:[#allocation77_spill] sm:$0xff] }
 0x27a   : > { %v2086_v37 = vsel %vm1671_vm2, %v1800_v43, 0  ;;  %v2857_v44 = vsel %vm1671_vm2, %v7185_v24, 0  ;;  %v7186_v43 = vpack.c.bf16 %v6163_v47, %v6161_v26  ;;  %v6445_v26 = vld [vmem:[#allocation2 + $0x191] sm:$0xff]  ;;  %v7199_v24 = vld [vmem:[#allocation76_spill] sm:$0xff] }
 0x27b   : > { %v2784_v47 = vpack.c.bf16 %v6445_v26, %v6232_v6  ;;  %v6469_v42 = vsel %vm1671_vm2, %v7189_v11, 0  ;;  %v6486_v38 = vsel %vm1671_vm2, %v7193_v33, 0  ;;  %v5193_v33 = vld [vmem:[#allocation2 + $0xa2] sm:$0xff] }
 0x27c   : > { %v2860_v4 = vsel %vm1671_vm2, %v7186_v43, 0  ;;  %v2223_v43 = vld [vmem:[#allocation2 + $0x2] sm:$0xff] }
 0x27e   : > { %4340 = vmatpush3.bf16.xpose.msra.mxu1 %v2083_v57  ;;  %v1801_v57 = vpack.c.bf16 %v5189_v34, %v5188_v49  ;;  %v7191_v49 = vld [vmem:[#allocation72_spill] sm:$0xff] }
 0x27f   : > { %5020 = vmatprep.subr.msk.bf16.mxu1 %vm1671_vm2, %v1808_v41 }
 0x280   : > { %4778 = vmatpush3.bf16.xpose.msra.mxu0 %v2848_v58  ;;  %v2089_v41 = vsel %vm1671_vm2, %v1801_v57, 0  ;;  %v2854_v58 = vsel %vm1671_vm2, %v7184_v27, 0  ;;  %v7195_v27 = vld [vmem:[#allocation74_spill] sm:$0xff] }
 0x281   : > { %4779 = vmatprep.subr.bf16.mxu0 %v7145_v51 }
 0x286   : > { %4342 = vmatpush3.bf16.xpose.msra.mxu1 %v2086_v37  ;;  %v7187_v37 = vpack.c.bf16 %v6087_v17, %v6085_v16  ;;  %v6454_v17 = vsel %vm1671_vm2, %v7188_v9, 0  ;;  %v2866_v16 = vsel %vm1671_vm2, %v2784_v47, 0 }
 0x287   : > { %5021 = vmatprep.subr.msk.bf16.mxu1 %vm1671_vm2, %v1809_v30  ;;  %v2863_v30 = vsel %vm1671_vm2, %v2783_v46, 0  ;;  %v5190_v46 = vld [vmem:[#allocation2 + $0x82] sm:$0xff] }
 0x288   : > { %4780 = vmatpush3.bf16.xpose.msra.mxu0 %v2851_v60  ;;  %v2122_v52 = vsel %vm1671_vm2, %v7187_v37, 0  ;;  %v7190_v60 = vld [vmem:[#allocation73_spill] sm:$0xff] }
 0x289   : > { %4781 = vmatprep.subr.bf16.mxu0 %v7145_v51  ;;  %v7192_v34 = vpack.c.bf16 %v7190_v60, %v7191_v49  ;;  %v2225_v49 = vld [vmem:[#allocation2 + $0x12] sm:$0xff] }
 0x28b   : > { %v3090_v57 = vsel %vm1671_vm2, %v7192_v34, 0  ;;  %v5192_v34 = vld [vmem:[#allocation2 + $0x1a] sm:$0xff] }
 0x28e   : > { %4344 = vmatpush3.bf16.xpose.msra.mxu1 %v2089_v41  ;;  %v7194_v41 = vld [vmem:[#allocation75_spill] sm:$0xff] }
 0x28f   : > { %4715 = vmatprep.subr.bf16.mxu1 %v7145_v51 }
 0x290   : > { %4782 = vmatpush3.bf16.xpose.msra.mxu0 %v2854_v58  ;;  %v7196_v58 = vpack.c.bf16 %v7194_v41, %v7195_v27  ;;  %v5194_v41 = vld [vmem:[#allocation2 + $0xaa] sm:$0xff] }
 0x291   : > { %4783 = vmatprep.subr.bf16.mxu0 %v7145_v51  ;;  %v2281_v27 = vpack.c.bf16 %v5194_v41, %v5193_v33  ;;  %v6560_v41 = vld [vmem:[%s6982_s3 + $0x28] sm:$0xff]  }
 0x292   : > { %v3093_v39 = vsel %vm1671_vm2, %v7196_v58, 0 }
 0x295   : > { %4346 = vmatmul.mubr.msk.bf16.vlgmr.msra.gmra.mrb[0].mxu1 %vm1671_vm2, %v6332_v32 }
 0x296   : > { %4716 = vmatpush3.bf16.xpose.msra.mxu1 %v2116_v1  ;;  %4731 = vmatprep.mubr.msk.bf16.mxu1 %vm5247_vm4, %v7145_v51  ;;  %v7197_v1 = vpack.c.bf16 %v6187_v61, %v6185_v53  ;;  %v7201_v53 = vpack.c.bf16 %v6209_v20, %v6207_v22  ;;  %v6522_v20 = vld [vmem:[#allocation2 + $0x92] sm:$0xff] }
 0x297   : > { %4717 = vmatprep.subr.bf16.mxu1 %v7145_v51 }
 0x298   : > { %4784 = vmatpush3.bf16.xpose.msra.mxu0 %v2857_v44  ;;  %v6499_v23 = vsel %vm1671_vm2, %v7197_v1, 0  ;;  %v7200_v44 = vpack.c.bf16 %v7198_v54, %v7199_v24  ;;  %v6512_v61 = vsel %vm1671_vm2, %v7201_v53, 0  ;;  %v5195_v1 = vld [vmem:[#allocation2 + $0x22] sm:$0xff]  ;;  %v5196_v54 = vld [vmem:[#allocation2 + $0x2a] sm:$0xff]  ;;  %v5198_v53 = vld [vmem:[#allocation2 + $0xba] sm:$0xff] }
 0x299   : > { %4785 = vmatprep.subr.bf16.mxu0 %v7145_v51  ;;  %v2273_v24 = vpack.c.bf16 %v5196_v54, %v5195_v1  ;;  %v5205_v1 = vld [vmem:[#allocation2 + $0x5a] sm:$0xff] }
 0x29a   : > { %v3096_v56 = vsel %vm1671_vm2, %v7200_v44, 0  ;;  %v7208_v44 = vld [vmem:[#allocation85_spill] sm:$0xff] }
 0x29e   : > { %4718 = vmatpush3.bf16.xpose.msra.mxu1 %v2119_v0  ;;  %v2240_v0 = vld [vmem:[#allocation2 + $0x8a] sm:$0xff] }
 0x29f   : > { %4719 = vmatprep.subr.bf16.mxu1 %v7145_v51  ;;  %v2279_v37 = vpack.c.bf16 %v2240_v0, %v5190_v46 }
 0x2a0   : > { %4786 = vmatpush3.bf16.xpose.msra.mxu0 %v2860_v4  ;;  %v2224_v4 = vld [vmem:[#allocation2 + $0xa] sm:$0xff] }
 0x2a1   : > { %4787 = vmatprep.subr.bf16.mxu0 %v7145_v51  ;;  %v2271_v9 = vpack.c.bf16 %v2224_v4, %v2223_v43  ;;  %v2313_v43 = vsel %vm1671_vm2, %v2273_v24, 0  ;;  %v5197_v4 = vld [vmem:[#allocation2 + $0xb2] sm:$0xff] }
 0x2a2   : > { %v2282_v46 = vpack.c.bf16 %v5198_v53, %v5197_v4  ;;  %v5207_v4 = vld [vmem:[#allocation2 + $0x6a] sm:$0xff] }
 0x2a3   : > { %v2307_v22 = vsel %vm1671_vm2, %v2271_v9, 0 }
 0x2a6   : > { %4720 = vmatpush3.bf16.xpose.msra.mxu1 %v2122_v52  ;;  %v7202_v52 = vld [vmem:[#allocation78_spill] sm:$0xff] }
 0x2a7   : > { %4721 = vmatprep.subr.bf16.mxu1 %v7145_v51 }
 0x2a8   : > { %4788 = vmatpush3.bf16.xpose.msra.mxu0 %v2863_v30  ;;  %v7203_v30 = vpack.c.bf16 %v6148_v10, %v7202_v52  ;;  %v7204_v10 = vpack.c.bf16 %v6194_v7, %v6192_v48  ;;  %v7205_v48 = vld [vmem:[#allocation80_spill] sm:$0xff]  ;;  %v7206_v7 = vld [vmem:[#allocation79_spill] sm:$0xff] }
 0x2a9   : > { %4789 = vmatprep.subr.bf16.mxu0 %v7145_v51  ;;  %v7207_v58 = vpack.c.bf16 %v7205_v48, %v7206_v7  ;;  %v6547_v52 = vld [vmem:[#allocation2 + $0x192] sm:$0xff]  ;;  %v7212_v48 = vld [vmem:[#allocation49_spill] sm:$0xff] }
 0x2aa   : > { %v3099_v47 = vsel %vm1671_vm2, %v7203_v30, 0  ;;  %v3102_v60 = vsel %vm1671_vm2, %v7204_v10, 0  ;;  %v5199_v30 = vld [vmem:[#allocation2 + $0x32] sm:$0xff]  ;;  %v5201_v10 = vld [vmem:[#allocation2 + $0xc2] sm:$0xff] }
 0x2ab   : > { %v7213_v7 = vld [vmem:[#allocation50_spill] sm:$0xff] }
 0x2ae   : > { %4722 = vmatpush3.bf16.xpose.msra.mxu1 %v6454_v17 }
 0x2af   : > { %4723 = vmatprep.subr.bf16.mxu1 %v7145_v51 }
 0x2b0   : > { %4790 = vmatpush3.bf16.xpose.msra.mxu0 %v2866_v16  ;;  %v5191_v16 = vld [vmem:[#allocation2 + $0x9a] sm:$0xff] }
 0x2b1   : > { %4795 = vmatprep.subr.bf16.mxu0 %v7145_v51  ;;  %v2280_v11 = vpack.c.bf16 %v5191_v16, %v6522_v20 }
 0x2b6   : > { %4724 = vmatpush3.bf16.xpose.msra.mxu1 %v6469_v42 }
 0x2b7   : > { %4792 = vmatmul.mubr.msk.bf16.vlgmr.msra.gmra.mrb[56].mxu0 %vm1671_vm2, %v6463_v50  ;;  %4725 = vmatprep.subr.bf16.mxu1 %v7145_v51 }
 0x2b8   : > { %4796 = vmatpush3.bf16.xpose.msra.mxu0 %v3090_v57  ;;  %4811 = vmatprep.mubr.msk.bf16.mxu0 %vm5247_vm4, %v7145_v51 }
 0x2b9   : > { %4797 = vmatprep.subr.bf16.mxu0 %v7145_v51 }
 0x2be   : > { %4726 = vmatpush3.bf16.xpose.msra.mxu1 %v6486_v38 }
 0x2bf   : > { %4727 = vmatprep.subr.bf16.mxu1 %v7145_v51 }
 0x2c0   : > { %4798 = vmatpush3.bf16.xpose.msra.mxu0 %v3093_v39  ;;  %v3105_v39 = vsel %vm1671_vm2, %v7207_v58, 0  ;;  %v2284_v58 = vpack.c.bf16 %v7213_v7, %v7212_v48 }
 0x2c1   : > { %4799 = vmatprep.subr.bf16.mxu0 %v7145_v51 }
 0x2c6   : > { %4728 = vmatpush3.bf16.xpose.msra.mxu1 %v6499_v23 }
 0x2c7   : > { %4729 = vmatprep.subr.bf16.mxu1 %v7145_v51 }
 0x2c8   : > { %4800 = vmatpush3.bf16.xpose.msra.mxu0 %v3096_v56  ;;  %v7209_v56 = vld [vmem:[#allocation81_spill] sm:$0xff] }
 0x2c9   : > { %4801 = vmatprep.subr.bf16.mxu0 %v7145_v51  ;;  %v3028_v0 = vpack.c.bf16 %v7209_v56, %v7208_v44  ;;  %v7214_v44 = vld [vmem:[#allocation51_spill] sm:$0xff] }
 0x2ce   : > { %4730 = vmatpush3.bf16.xpose.msra.mxu1 %v6512_v61 }
 0x2cf   : > { %5022 = vmatprep.subr.msk.bf16.mxu1 %vm1671_vm2, %v2279_v37  ;;  %v3108_v37 = vsel %vm1671_vm2, %v3028_v0, 0  ;;  %v7215_v0 = vld [vmem:[#allocation64_spill] sm:$0xff] }
 0x2d0   : > { %4802 = vmatpush3.bf16.xpose.msra.mxu0 %v3099_v47  ;;  %v5200_v47 = vld [vmem:[#allocation2 + $0x3a] sm:$0xff] }
 0x2d1   : > { %4803 = vmatprep.subr.bf16.mxu0 %v7145_v51  ;;  %v2274_v9 = vpack.c.bf16 %v5200_v47, %v5199_v30  ;;  %v7216_v30 = vld [vmem:[#allocation65_spill] sm:$0xff] }
 0x2d5   : > { %4732 = vmatmul.mubr.msk.bf16.vlgmr.msra.gmra.mrb[8].mxu1 %vm1671_vm2, %v6332_v32  ;;  %v2272_v32 = vpack.c.bf16 %v5192_v34, %v2225_v49 }
 0x2d6   : > { %4357 = vmatpush3.bf16.xpose.msra.mxu1 %v2307_v22  ;;  %4372 = vmatprep.mubr.msk.bf16.mxu1 %vm1671_vm2, %v6284_v35  ;;  %v7210_v22 = vld [vmem:[#allocation82_spill] sm:$0xff] }
 0x2d7   : > { %5023 = vmatprep.subr.msk.bf16.mxu1 %vm1671_vm2, %v2280_v11  ;;  %v2310_v57 = vsel %vm1671_vm2, %v2272_v32, 0  ;;  %v3029_v16 = vpack.c.bf16 %v6547_v52, %v7210_v22  ;;  %v2316_v11 = vsel %vm1671_vm2, %v2274_v9, 0  ;;  %v5202_v32 = vld [vmem:[#allocation2 + $0x42] sm:$0xff]  ;;  %v5209_v9 = vld [vmem:[#allocation2 + $0x7a] sm:$0xff] }
 0x2d8   : > { %4804 = vmatpush3.bf16.xpose.msra.mxu0 %v3102_v60  ;;  %v7211_v60 = vld [vmem:[#allocation48_spill] sm:$0xff] }
 0x2d9   : > { %4805 = vmatprep.subr.bf16.mxu0 %v7145_v51  ;;  %v2283_v49 = vpack.c.bf16 %v7211_v60, %v5201_v10  ;;  %v3111_v34 = vsel %vm1671_vm2, %v3029_v16, 0  ;;  %v7217_v10 = vpack.c.bf16 %v5847_v18, %v5841_v62  ;;  %v7221_v62 = vpack.c.bf16 %v5852_v15, %v5849_v12  ;;  %v7222_v18 = vld [vmem:[#allocation5_spill] sm:$0xff]  ;;  %v3248_v15 = vld [vmem:[#allocation2 + $0x198] sm:$0xff] }
 0x2da   : > { %v7226_v12 = vpack.c.bf16 %v5880_v13, %v5873_v40  ;;  %v7230_v13 = vpack.c.bf16 %v5887_v29, %v5885_v31 }
 0x2de   : > { %4359 = vmatpush3.bf16.xpose.msra.mxu1 %v2310_v57  ;;  %v5203_v57 = vld [vmem:[#allocation2 + $0x4a] sm:$0xff] }
 0x2df   : > { %5024 = vmatprep.subr.msk.bf16.mxu1 %vm1671_vm2, %v2281_v27  ;;  %v2275_v33 = vpack.c.bf16 %v5203_v57, %v5202_v32 }
 0x2e0   : > { %4806 = vmatpush3.bf16.xpose.msra.mxu0 %v3105_v39  ;;  %v5204_v39 = vld [vmem:[#allocation2 + $0x52] sm:$0xff] }
 0x2e1   : > { %4807 = vmatprep.subr.bf16.mxu0 %v7145_v51  ;;  %v2319_v27 = vsel %vm1671_vm2, %v2275_v33, 0  ;;  %v2276_v54 = vpack.c.bf16 %v5205_v1, %v5204_v39  ;;  %v7225_v33 = vpack.c.bf16 %v6215_v5, %v6213_v63  ;;  %v3273_v39 = vpack.c.bf16 %v3248_v15, %v6361_v3  ;;  %v7227_v1 = vld [vmem:[#allocation12_spill] sm:$0xff]  ;;  %v7244_v15 = vld [vmem:[#allocation27_spill] sm:$0xff] }
 0x2e2   : > { %v3249_v63 = vld [vmem:[#allocation2 + $0x1a0] sm:$0xff] }
 0x2e3   : > { %v2322_v24 = vsel %vm1671_vm2, %v2276_v54, 0  ;;  %v7228_v54 = vld [vmem:[#allocation11_spill] sm:$0xff]  ;;  %v3353_v40 = vsel %vm1671_vm2, %v3273_v39, 0 }
 0x2e6   : > { %4361 = vmatpush3.bf16.xpose.msra.mxu1 %v2313_v43  ;;  %v2285_v43 = vpack.c.bf16 %v7215_v0, %v7214_v44 }
 0x2e7   : > { %5025 = vmatprep.subr.msk.bf16.mxu1 %vm1671_vm2, %v2282_v46  ;;  %v6578_v46 = vld [vmem:[#allocation2 + $0xfa] sm:$0xff] }
 0x2e8   : > { %4808 = vmatpush3.bf16.xpose.msra.mxu0 %v3108_v37  ;;  %v2286_v47 = vpack.c.bf16 %v6578_v46, %v7216_v30 }
 0x2e9   : > { %4809 = vmatprep.subr.bf16.mxu0 %v7145_v51 }
 0x2ee   : > { %4363 = vmatpush3.bf16.xpose.msra.mxu1 %v2316_v11 }
 0x2ef   : > { %5026 = vmatprep.subr.msk.bf16.mxu1 %vm1671_vm2, %v2283_v49  ;;  %v7219_v49 = vld [vmem:[#allocation6_spill] sm:$0xff] }
 0x2f0   : > { %4810 = vmatpush3.bf16.xpose.msra.mxu0 %v3111_v34 }
 0x2f1   : > { %4815 = vmatprep.subr.bf16.mxu0 %v7145_v51 }
 0x2f6   : > { %4365 = vmatpush3.bf16.xpose.msra.mxu1 %v2319_v27  ;;  %v3350_v27 = vsel %vm1671_vm2, %v7225_v33, 0  ;;  %v7241_v33 = vld [vmem:[#allocation21_spill] sm:$0xff] }
 0x2f7   : > { %4812 = vmatmul.mubr.msk.bf16.vlgmr.msra.gmra.mrb[60].mxu0 %vm1671_vm2, %v6560_v41  ;;  %5027 = vmatprep.subr.msk.bf16.mxu1 %vm1671_vm2, %v2284_v58 }
 0x2f8   : > { %4816 = vmatpush3.bf16.xpose.msra.mxu0 %v6454_v17  ;;  %4831 = vmatprep.mubr.msk.bf16.mxu0 %vm5247_vm4, %v7145_v51  ;;  %v5206_v17 = vld [vmem:[#allocation2 + $0x62] sm:$0xff] }
 0x2f9   : > { %4817 = vmatprep.subr.bf16.mxu0 %v7145_v51  ;;  %v2277_v53 = vpack.c.bf16 %v5207_v4, %v5206_v17 }
 0x2fb   : > { %v2325_v37 = vsel %vm1671_vm2, %v2277_v53, 0 }
 0x2fe   : > { %4367 = vmatpush3.bf16.xpose.msra.mxu1 %v2322_v24  ;;  %v7229_v24 = vpack.c.bf16 %v7227_v1, %v7228_v54  ;;  %v7246_v1 = vpack.c.bf16 %v6043_v28, %v6041_v59  ;;  %v7247_v54 = vld [vmem:[#allocation87_spill] sm:$0xff] }
 0x2ff   : > { %5028 = vmatprep.subr.msk.bf16.mxu1 %vm1671_vm2, %v2285_v43  ;;  %v3250_v43 = vld [vmem:[#allocation2 + $0x1a8] sm:$0xff]  ;;  %v5210_v59 = vld [vmem:[#allocation2 + $0x99] sm:$0xff] }
 0x300   : > { %4818 = vmatpush3.bf16.xpose.msra.mxu0 %v6469_v42  ;;  %v5208_v42 = vld [vmem:[#allocation2 + $0x72] sm:$0xff]  ;;  %v2558_v5 = vsel %vm1671_vm2, %v7229_v24, 0  ;;  %v3274_v3 = vpack.c.bf16 %v3250_v43, %v3249_v63  ;;  %v3486_v24 = vld [vmem:[#allocation2 + $0x161] sm:$0xff] }
 0x301   : > { %4819 = vmatprep.subr.bf16.mxu0 %v7145_v51  ;;  %v2278_v16 = vpack.c.bf16 %v5209_v9, %v5208_v42 }
 0x302   : > { %v3356_v9 = vsel %vm1671_vm2, %v3274_v3, 0 }
 0x303   : > { %v2328_v11 = vsel %vm1671_vm2, %v2278_v16, 0  ;;  %v7231_v16 = vld [vmem:[#allocation14_spill] sm:$0xff] }
 0x306   : > { %4369 = vmatpush3.bf16.xpose.msra.mxu1 %v2325_v37 }
 0x307   : > { %5029 = vmatprep.subr.msk.bf16.mxu1 %vm1671_vm2, %v2286_v47 }
 0x308   : > { %4820 = vmatpush3.bf16.xpose.msra.mxu0 %v6486_v38  ;;  %v7218_v38 = vld [vmem:[#allocation3_spill] sm:$0xff] }
 0x309   : > { %4821 = vmatprep.subr.bf16.mxu0 %v7145_v51  ;;  %v7220_v34 = vpack.c.bf16 %v7218_v38, %v7219_v49  ;;  %v6653_v38 = vld [vmem:[%s6982_s3 + $0x30] sm:$0xff]   ;;  %v7235_v49 = vld [vmem:[#allocation20_spill] sm:$0xff] }
 0x30b   : > { %v2552_v32 = vsel %vm1671_vm2, %v7220_v34, 0  ;;  %v7236_v34 = vld [vmem:[#allocation17_spill] sm:$0xff] }
 0x30e   : > { %4371 = vmatpush3.bf16.xpose.msra.mxu1 %v2328_v11  ;;  %v7232_v11 = vld [vmem:[#allocation13_spill] sm:$0xff] }
 0x30f   : > { %5030 = vmatprep.subr.msk.bf16.mxu1 %vm1671_vm2, %v7217_v10  ;;  %v7233_v31 = vpack.c.bf16 %v7231_v16, %v7232_v11  ;;  %v7234_v10 = vpack.c.bf16 %v5942_v14, %v5940_v2  ;;  %v7238_v2 = vpack.c.bf16 %v5931_v21, %v5944_v45  ;;  %v7239_v14 = vld [vmem:[#allocation86_spill] sm:$0xff]  ;;  %v7243_v45 = vpack.c.bf16 %v6034_v19, %v6021_v8  ;;  %v3489_v16 = vld [vmem:[#allocation2 + $0x179] sm:$0xff] }
 0x310   : > { %4822 = vmatpush3.bf16.xpose.msra.mxu0 %v6499_v23  ;;  %v3487_v19 = vld [vmem:[#allocation2 + $0x169] sm:$0xff]  ;;  %v2713_v11 = vld [vmem:[#allocation2 + $0x19] sm:$0xff] }
 0x311   : > { %4823 = vmatprep.subr.bf16.mxu0 %v7145_v51  ;;  %v2561_v29 = vsel %vm1671_vm2, %v7233_v31, 0 }
 0x315   : > { %4373 = vmatmul.mubr.msk.bf16.vlgmr.msra.gmra.mrb[0].mxu1 %vm1671_vm2, %v6284_v35  ;;  %v7223_v35 = vld [vmem:[#allocation4_spill] sm:$0xff] }
 0x316   : > { %4384 = vmatpush3.bf16.xpose.msra.mxu1 %v2552_v32  ;;  %4399 = vmatprep.mubr.msk.bf16.mxu1 %vm1671_vm2, %v6375_v25  ;;  %v7224_v23 = vpack.c.bf16 %v7222_v18, %v7223_v35  ;;  %v7237_v32 = vpack.c.bf16 %v7235_v49, %v7236_v34  ;;  %v3482_v18 = vld [vmem:[#allocation2 + $0x141] sm:$0xff]  ;;  %v3483_v35 = vld [vmem:[#allocation2 + $0x149] sm:$0xff]  ;;  %v5212_v34 = vld [vmem:[#allocation2 + $0xb1] sm:$0xff] }
 0x317   : > { %5031 = vmatprep.subr.msk.bf16.mxu1 %vm1671_vm2, %v7221_v62 }
 0x318   : > { %4824 = vmatpush3.bf16.xpose.msra.mxu0 %v6512_v61  ;;  %v2555_v57 = vsel %vm1671_vm2, %v7224_v23, 0  ;;  %v6619_v61 = vpop.f32.mrb[48].mxu0  ;;  %v2564_v62 = vsel %vm1671_vm2, %v7237_v32, 0  ;;  %v3513_v23 = vpack.c.bf16 %v3483_v35, %v3482_v18  ;;  %v5213_v32 = vld [vmem:[#allocation2 + $0xa9] sm:$0xff]  ;;  %v5214_v18 = vld [vmem:[#allocation2 + $0x31] sm:$0xff] }
 0x319   : > { %4825 = vmatprep.subr.bf16.mxu0 %v7145_v51  ;;  %v4753_v58 = vpop.f32.mrb[49].mxu0 }
 0x31a   : > { %v6635_v53 = vpop.f32.mrb[50].mxu0  ;;  %v3583_v21 = vsel %vm1671_vm2, %v3513_v23, 0  ;;  %v7245_v58 = vpack.c.bf16 %v5803_v36, %v7244_v15  ;;  %v5215_v23 = vld [vmem:[#allocation2 + $0xb9] sm:$0xff] }
 0x31b   : > { %v4754_v47 = vpop.f32.mrb[51].mxu0  ;;  %v5217_v15 = vld [vmem:[#allocation2 + $0x39] sm:$0xff] }
 0x31c   : > { %v2570_v39 = vsel %vm1671_vm2, %v7245_v58, 0  ;;  %v5218_v58 = vld [vmem:[#allocation2 + $0x41] sm:$0xff] }
 0x31e   : > { %4386 = vmatpush3.bf16.xpose.msra.mxu1 %v2555_v57  ;;  %v7240_v57 = vld [vmem:[#allocation22_spill] sm:$0xff] }
 0x31f   : > { %5032 = vmatprep.subr.msk.bf16.mxu1 %vm1671_vm2, %v7226_v12 }
 0x320   : > { %4826 = vmatpush3.bf16.xpose.msra.mxu0 %v3350_v27  ;;  %v7242_v27 = vpack.c.bf16 %v7240_v57, %v7241_v33  ;;  %v5216_v57 = vld [vmem:[#allocation2 + $0xc1] sm:$0xff] }
 0x321   : > { %4827 = vmatprep.subr.bf16.mxu0 %v7145_v51  ;;  %v2771_v33 = vpack.c.bf16 %v5216_v57, %v5215_v23 }
 0x322   : > { %v2567_v12 = vsel %vm1671_vm2, %v7242_v27, 0  ;;  %v3493_v27 = vld [vmem:[#allocation2 + $0x199] sm:$0xff] }
 0x326   : > { %4388 = vmatpush3.bf16.xpose.msra.mxu1 %v2558_v5  ;;  %v3515_v5 = vpack.c.bf16 %v3487_v19, %v3486_v24  ;;  %v5219_v24 = vld [vmem:[#allocation2 + $0xc9] sm:$0xff]  ;;  %v5220_v19 = vld [vmem:[#allocation2 + $0xd1] sm:$0xff] }
 0x327   : > { %5033 = vmatprep.subr.msk.bf16.mxu1 %vm1671_vm2, %v7230_v13  ;;  %v7249_v13 = vld [vmem:[#allocation26_spill] sm:$0xff] }
 0x328   : > { %4828 = vmatpush3.bf16.xpose.msra.mxu0 %v3353_v40  ;;  %v6632_v17 = vpop.f32.mrb[4].mxu1  ;;  %v7248_v40 = vld [vmem:[#allocation25_spill] sm:$0xff] }
 0x329   : > { %4829 = vmatprep.subr.bf16.mxu0 %v7145_v51  ;;  %v4713_v4 = vpop.f32.mrb[5].mxu1  ;;  %v7250_v3 = vpack.c.bf16 %v7248_v40, %v7249_v13 }
 0x32a   : > { %v6637_v37 = vpop.f32.mrb[6].mxu1  ;;  %v5211_v4 = vld [vmem:[#allocation2 + $0xa1] sm:$0xff] }
 0x32b   : > { %v4714_v42 = vpop.f32.mrb[7].mxu1  ;;  %v2573_v28 = vsel %vm1671_vm2, %v7250_v3, 0  ;;  %v2769_v47 = vpack.c.bf16 %v5211_v4, %v5210_v59  ;;  %v5224_v59 = vld [vmem:[#allocation2 + $0xe1] sm:$0xff] }
 0x32c   : > { %v3589_v42 = vsel %vm1671_vm2, %v3515_v5, 0  ;;  %v2772_v5 = vpack.c.bf16 %v5220_v19, %v5219_v24 }
 0x32e   : > { %4390 = vmatpush3.bf16.xpose.msra.mxu1 %v2561_v29  ;;  %v3488_v29 = vld [vmem:[#allocation2 + $0x171] sm:$0xff] }
 0x32f   : > { %5034 = vmatprep.subr.msk.bf16.mxu1 %vm1671_vm2, %v7234_v10  ;;  %v3516_v10 = vpack.c.bf16 %v3489_v16, %v3488_v29 }
 0x330   : > { %4830 = vmatpush3.bf16.xpose.msra.mxu0 %v3356_v9  ;;  %v2714_v9 = vld [vmem:[#allocation2 + $0x21] sm:$0xff] }
 0x331   : > { %4835 = vmatprep.subr.bf16.mxu0 %v7145_v51  ;;  %v2761_v31 = vpack.c.bf16 %v2714_v9, %v2713_v11  ;;  %v5226_v9 = vld [vmem:[#allocation2 + $0x61] sm:$0xff]  ;;  %v3725_v11 = vld [vmem:[#allocation2 + $0x132] sm:$0xff] }
 0x333   : > { %v2797_v49 = vsel %vm1671_vm2, %v2761_v31, 0  ;;  %v6727_v31 = vld [vmem:[%s6982_s3 + $0x38] sm:$0xff]  }
 0x336   : > { %4392 = vmatpush3.bf16.xpose.msra.mxu1 %v2564_v62  ;;  %v2770_v62 = vpack.c.bf16 %v5212_v34, %v5213_v32  ;;  %v5228_v34 = vld [vmem:[#allocation2 + $0xf1] sm:$0xff] }
 0x337   : > { %4832 = vmatmul.mubr.msk.bf16.vlgmr.msra.gmra.mrb[64].mxu0 %vm1671_vm2, %v6653_v38  ;;  %5035 = vmatprep.subr.msk.bf16.mxu1 %vm1671_vm2, %v7238_v2  ;;  %v3592_v2 = vsel %vm1671_vm2, %v3516_v10, 0 }
 0x338   : > { %4836 = vmatpush3.bf16.xpose.msra.mxu0 %v7239_v14  ;;  %4851 = vmatprep.mubr.msk.bf16.mxu0 %vm5247_vm4, %v7145_v51  ;;  %v2715_v14 = vld [vmem:[#allocation2 + $0x29] sm:$0xff] }
 0x339   : > { %4837 = vmatprep.subr.bf16.mxu0 %v7145_v51  ;;  %v2762_v35 = vpack.c.bf16 %v5214_v18, %v2715_v14  ;;  %v3728_v14 = vld [vmem:[#allocation2 + $0x14a] sm:$0xff] }
 0x33a   : > { %v5229_v18 = vld [vmem:[#allocation2 + $0x69] sm:$0xff] }
 0x33e   : > { %4394 = vmatpush3.bf16.xpose.msra.mxu1 %v2567_v12  ;;  %v7251_v12 = vpack.c.bf16 %v6232_v6, %v6226_v55  ;;  %v3494_v55 = vld [vmem:[#allocation2 + $0x1a1] sm:$0xff]  ;;  %v3495_v6 = vld [vmem:[#allocation2 + $0x1a9] sm:$0xff] }
 0x33f   : > { %5036 = vmatprep.subr.msk.bf16.mxu1 %vm1671_vm2, %v7243_v45  ;;  %v3518_v45 = vpack.c.bf16 %v3493_v27, %v6445_v26  ;;  %v5221_v26 = vld [vmem:[#allocation2 + $0x49] sm:$0xff]  ;;  %v5232_v27 = vld [vmem:[#allocation2 + $0x101] sm:$0xff] }
 0x340   : > { %4838 = vmatpush3.bf16.xpose.msra.mxu0 %v3583_v21  ;;  %v3595_v21 = vsel %vm1671_vm2, %v7251_v12, 0 }
 0x341   : > { %4839 = vmatprep.subr.bf16.mxu0 %v7145_v51 }
 0x346   : > { %4396 = vmatpush3.bf16.xpose.msra.mxu1 %v2570_v39  ;;  %v2763_v39 = vpack.c.bf16 %v5218_v58, %v5217_v15  ;;  %v5233_v15 = vld [vmem:[#allocation2 + $0x79] sm:$0xff]  ;;  %v5234_v58 = vld [vmem:[#allocation2 + $0x81] sm:$0xff] }
 0x347   : > { %5037 = vmatprep.subr.msk.bf16.mxu1 %vm1671_vm2, %v7246_v1  ;;  %v3598_v1 = vsel %vm1671_vm2, %v3518_v45, 0  ;;  %v3730_v45 = vld [vmem:[#allocation2 + $0x15a] sm:$0xff] }
 0x348   : > { %4840 = vmatpush3.bf16.xpose.msra.mxu0 %v7247_v54  ;;  %v2803_v54 = vsel %vm1671_vm2, %v2763_v39, 0  ;;  %v2767_v39 = vpack.c.bf16 %v5234_v58, %v5233_v15  ;;  %v3738_v15 = vld [vmem:[#allocation2 + $0x19a] sm:$0xff]  ;;  %v7264_v58 = vpack.c.bf16 %v7210_v22, %v7209_v56  ;;  %v3739_v56 = vld [vmem:[#allocation2 + $0x1a2] sm:$0xff]  ;;  %v3740_v22 = vld [vmem:[#allocation2 + $0x1aa] sm:$0xff] }
 0x349   : > { %4841 = vmatprep.subr.bf16.mxu0 %v7145_v51 }
 0x34a   : > { %v6689_v8 = vpop.f32.mrb[52].mxu0  ;;  %v2815_v19 = vsel %vm1671_vm2, %v2767_v39, 0  ;;  %v3840_v39 = vsel %vm1671_vm2, %v7264_v58, 0 }
 0x34b   : > { %v4773_v63 = vpop.f32.mrb[53].mxu0 }
 0x34c   : > { %v6691_v43 = vpop.f32.mrb[54].mxu0  ;;  %v3519_v63 = vpack.c.bf16 %v3495_v6, %v3494_v55 }
 0x34d   : > { %v4774_v36 = vpop.f32.mrb[55].mxu0 }
 0x34e   : > { %4398 = vmatpush3.bf16.xpose.msra.mxu1 %v2573_v28  ;;  %v5222_v36 = vld [vmem:[#allocation2 + $0x51] sm:$0xff]  ;;  %v3601_v13 = vsel %vm1671_vm2, %v3519_v63, 0  ;;  %v5223_v28 = vld [vmem:[#allocation2 + $0xd9] sm:$0xff]  ;;  %v3731_v63 = vld [vmem:[#allocation2 + $0x162] sm:$0xff] }
 0x34f   : > { %5038 = vmatprep.subr.msk.bf16.mxu1 %vm1671_vm2, %v2769_v47  ;;  %v2764_v40 = vpack.c.bf16 %v5222_v36, %v5221_v26  ;;  %v2773_v4 = vpack.c.bf16 %v5224_v59, %v5223_v28  ;;  %v3726_v47 = vld [vmem:[#allocation2 + $0x13a] sm:$0xff]  ;;  %v5248_v26 = vmov 0   ;;  %v5236_v36 = vld [vmem:[#allocation2 + $0x89] sm:$0xff] }
 0x350   : > { %4842 = vmatpush3.bf16.xpose.msra.mxu0 %v3589_v42  ;;  %v5225_v42 = vld [vmem:[#allocation2 + $0x59] sm:$0xff]  ;;  %v3757_v29 = vpack.c.bf16 %v3726_v47, %v3725_v11  ;;  %5091 = vset.pattern.permute.xlu0 %v5248_v26  ;;  %v3939_v11 = vld [vmem:[%s6983_s4 + $0x8] sm:$0xff] }
 0x351   : > { %4843 = vmatprep.subr.bf16.mxu0 %v7145_v51  ;;  %v2806_v3 = vsel %vm1671_vm2, %v2764_v40, 0  ;;  %v2765_v16 = vpack.c.bf16 %v5226_v9, %v5225_v42  ;;  %v5237_v40 = vld [vmem:[#allocation2 + $0x91] sm:$0xff]  ;;  %v3938_v47 = vld [vmem:[%s6983_s4] sm:$0xff] }
 0x352   : > { %3942 = vperm.xlu0 %5091, %v3938_v47  }
 0x353   : > { %v2809_v10 = vsel %vm1671_vm2, %v2765_v16, 0 }
 0x355   : > { %4400 = vmatmul.mubr.msk.bf16.vlgmr.msra.gmra.mrb[0].mxu1 %vm1671_vm2, %v6375_v25  ;;  %v2800_v25 = vsel %vm1671_vm2, %v2762_v35, 0  ;;  %v5230_v35 = vld [vmem:[#allocation2 + $0x71] sm:$0xff] }
 0x356   : > { %4411 = vmatpush3.bf16.xpose.msra.mxu1 %v2797_v49  ;;  %4426 = vmatprep.mubr.msk.bf16.mxu1 %vm1671_vm2, %v6463_v50  ;;  %v5227_v49 = vld [vmem:[#allocation2 + $0xe9] sm:$0xff] }
 0x357   : > { %5039 = vmatprep.subr.msk.bf16.mxu1 %vm1671_vm2, %v2770_v62  ;;  %v2774_v32 = vpack.c.bf16 %v5228_v34, %v5227_v49  ;;  %v3825_v62 = vsel %vm1671_vm2, %v3757_v29, 0  ;;  %v7253_v49 = vld [vmem:[#allocation32_spill] sm:$0xff]  ;;  %3947 = vperm.xlu0 %5091, %v3939_v11  }
 0x358   : > { %4844 = vmatpush3.bf16.xpose.msra.mxu0 %v3592_v2  ;;  %v3727_v2 = vld [vmem:[#allocation2 + $0x142] sm:$0xff] }
 0x359   : > { %4845 = vmatprep.subr.bf16.mxu0 %v7145_v51  ;;  %v3758_v23 = vpack.c.bf16 %v3728_v14, %v3727_v2  ;;  %v7255_v14 = vld [vmem:[#allocation8_spill] sm:$0xff] }
 0x35e   : > { %4413 = vmatpush3.bf16.xpose.msra.mxu1 %v2800_v25  ;;  %v2766_v25 = vpack.c.bf16 %v5230_v35, %v5229_v18  ;;  %v7256_v18 = vld [vmem:[#allocation7_spill] sm:$0xff] }
 0x35f   : > { %5040 = vmatprep.subr.msk.bf16.mxu1 %vm1671_vm2, %v2771_v33  ;;  %v5231_v33 = vld [vmem:[#allocation2 + $0xf9] sm:$0xff]  ;;  %v7257_v35 = vpack.c.bf16 %v7255_v14, %v7256_v18 }
 0x360   : > { %4846 = vmatpush3.bf16.xpose.msra.mxu0 %v3595_v21  ;;  %v2812_v57 = vsel %vm1671_vm2, %v2766_v25, 0  ;;  %v2775_v12 = vpack.c.bf16 %v5232_v27, %v5231_v33  ;;  %v3828_v21 = vsel %vm1671_vm2, %v3758_v23, 0  ;;  %v7259_v33 = vld [vmem:[#allocation34_spill] sm:$0xff]  ;;  %v7283_v14 = vld [vmem:[#allocation83_spill] sm:$0xff] }
 0x361   : > { %4847 = vmatprep.subr.bf16.mxu0 %v7145_v51  ;;  %v3042_v25 = vsel %vm1671_vm2, %v7257_v35, 0  ;;  %v3020_v18 = vpack.c.bf16 %v7283_v14, %v6578_v46  ;;  %v6836_v35 = vld [vmem:[#allocation2 + $0x112] sm:$0xff] }
 0x366   : > { %4415 = vmatpush3.bf16.xpose.msra.mxu1 %v2803_v54  ;;  %v6741_v54 = vld [vmem:[#allocation2 + $0x111] sm:$0xff] }
 0x367   : > { %5041 = vmatprep.subr.msk.bf16.mxu1 %vm1671_vm2, %v2772_v5  ;;  %v5235_v5 = vld [vmem:[#allocation2 + $0x109] sm:$0xff] }
 0x368   : > { %4848 = vmatpush3.bf16.xpose.msra.mxu0 %v3598_v1  ;;  %v3729_v1 = vld [vmem:[#allocation2 + $0x152] sm:$0xff]  ;;  %v2776_v55 = vpack.c.bf16 %v6741_v54, %v5235_v5  ;;  %v3763_v5 = vpack.c.bf16 %v3738_v15, %v6547_v52  ;;  %v3764_v52 = vpack.c.bf16 %v3740_v22, %v3739_v56  ;;  %v3205_v56 = vld [vmem:[#allocation2 + $0x40] sm:$0xff]  ;;  %v3206_v22 = vld [vmem:[#allocation2 + $0x48] sm:$0xff] }
 0x369   : > { %4849 = vmatprep.subr.bf16.mxu0 %v7145_v51  ;;  %v3759_v24 = vpack.c.bf16 %v3730_v45, %v3729_v1  ;;  %v7265_v1 = vld [vmem:[#allocation37_spill] sm:$0xff] }
 0x36a   : > { %v3846_v11 = vsel %vm1671_vm2, %v3764_v52, 0  ;;  %v3223_v52 = vld [vmem:[#allocation2 + $0xd0] sm:$0xff] }
 0x36b   : > { %v3831_v6 = vsel %vm1671_vm2, %v3759_v24, 0  ;;  %v7266_v24 = vld [vmem:[#allocation36_spill] sm:$0xff] }
 0x36e   : > { %4417 = vmatpush3.bf16.xpose.msra.mxu1 %v2806_v3  ;;  %v3732_v3 = vld [vmem:[#allocation2 + $0x16a] sm:$0xff] }
 0x36f   : > { %5042 = vmatprep.subr.msk.bf16.mxu1 %vm1671_vm2, %v2773_v4  ;;  %v3760_v59 = vpack.c.bf16 %v3732_v3, %v3731_v63  ;;  %v7269_v63 = vld [vmem:[#allocation15_spill] sm:$0xff] }
 0x370   : > { %4850 = vmatpush3.bf16.xpose.msra.mxu0 %v3601_v13  ;;  %v2768_v13 = vpack.c.bf16 %v5237_v40, %v5236_v36  ;;  %v7271_v40 = vpack.c.bf16 %v7212_v48, %v7211_v60 }
 0x371   : > { %4855 = vmatprep.subr.bf16.mxu0 %v7145_v51  ;;  %v3834_v29 = vsel %vm1671_vm2, %v3760_v59, 0 }
 0x372   : > { %v2818_v16 = vsel %vm1671_vm2, %v2768_v13, 0 }
 0x376   : > { %4419 = vmatpush3.bf16.xpose.msra.mxu1 %v2809_v10  ;;  %v7252_v10 = vld [vmem:[#allocation33_spill] sm:$0xff] }
 0x377   : > { %4852 = vmatmul.mubr.msk.bf16.vlgmr.msra.gmra.mrb[68].mxu0 %vm1671_vm2, %v6727_v31  ;;  %5043 = vmatprep.subr.msk.bf16.mxu1 %vm1671_vm2, %v2774_v32  ;;  %v7254_v34 = vpack.c.bf16 %v7252_v10, %v7253_v49  ;;  %v3733_v32 = vld [vmem:[#allocation2 + $0x172] sm:$0xff] }
 0x378   : > { %4856 = vmatpush3.bf16.xpose.msra.mxu0 %v3825_v62  ;;  %4871 = vmatprep.mubr.msk.bf16.mxu0 %vm5247_vm4, %v7145_v51  ;;  %v3734_v62 = vld [vmem:[#allocation2 + $0x17a] sm:$0xff]  ;;  %v7273_v10 = vld [vmem:[#allocation18_spill] sm:$0xff] }
 0x379   : > { %4857 = vmatprep.subr.bf16.mxu0 %v7145_v51  ;;  %v3761_v2 = vpack.c.bf16 %v3734_v62, %v3733_v32  ;;  %v7277_v32 = vld [vmem:[#allocation23_spill] sm:$0xff] }
 0x37b   : > { %v3837_v23 = vsel %vm1671_vm2, %v3761_v2, 0 }
 0x37e   : > { %4421 = vmatpush3.bf16.xpose.msra.mxu1 %v2812_v57  ;;  %v7258_v57 = vld [vmem:[#allocation35_spill] sm:$0xff] }
 0x37f   : > { %5044 = vmatprep.subr.msk.bf16.mxu1 %vm1671_vm2, %v2775_v12  ;;  %v7260_v27 = vpack.c.bf16 %v7258_v57, %v7259_v33  ;;  %v7262_v12 = vld [vmem:[#allocation9_spill] sm:$0xff] }
 0x380   : > { %4858 = vmatpush3.bf16.xpose.msra.mxu0 %v3828_v21 }
 0x381   : > { %4859 = vmatprep.subr.bf16.mxu0 %v7145_v51 }
 0x386   : > { %4423 = vmatpush3.bf16.xpose.msra.mxu1 %v2815_v19  ;;  %v7267_v19 = vpack.c.bf16 %v7265_v1, %v7266_v24 }
 0x387   : > { %5045 = vmatprep.subr.msk.bf16.mxu1 %vm1671_vm2, %v2776_v55  ;;  %v3843_v55 = vsel %vm1671_vm2, %v3763_v5, 0  ;;  %v3204_v5 = vld [vmem:[#allocation2 + $0x38] sm:$0xff] }
 0x388   : > { %4860 = vmatpush3.bf16.xpose.msra.mxu0 %v3831_v6  ;;  %v7268_v6 = vld [vmem:[#allocation16_spill] sm:$0xff] }
 0x389   : > { %4861 = vmatprep.subr.bf16.mxu0 %v7145_v51  ;;  %v7270_v26 = vpack.c.bf16 %v7268_v6, %v7269_v63  ;;  %v3221_v63 = vld [vmem:[#allocation2 + $0xc0] sm:$0xff] }
 0x38a   : > { %v2945_v28 = vpop.f32.mrb[56].mxu0 }
 0x38b   : > { %v4793_v4 = vpop.f32.mrb[57].mxu0  ;;  %v3048_v36 = vsel %vm1671_vm2, %v7270_v26, 0 }
 0x38c   : > { %v2948_v42 = vpop.f32.mrb[58].mxu0 }
 0x38d   : > { %v4794_v9 = vpop.f32.mrb[59].mxu0 }
 0x38e   : > { %4425 = vmatpush3.bf16.xpose.msra.mxu1 %v2818_v16 }
 0x38f   : > { %5046 = vmatprep.subr.msk.bf16.mxu1 %vm1671_vm2, %v7254_v34 }
 0x390   : > { %4862 = vmatpush3.bf16.xpose.msra.mxu0 %v3834_v29  ;;  %v7272_v29 = vld [vmem:[#allocation19_spill] sm:$0xff] }
 0x391   : > { %4863 = vmatprep.subr.bf16.mxu0 %v7145_v51  ;;  %v7274_v49 = vpack.c.bf16 %v7272_v29, %v7273_v10  ;;  %v3210_v29 = vld [vmem:[#allocation2 + $0x68] sm:$0xff] }
 0x395   : > { %4427 = vmatmul.mubr.msk.bf16.vlgmr.msra.gmra.mrb[0].mxu1 %vm1671_vm2, %v6463_v50  ;;  %v7261_v50 = vld [vmem:[#allocation10_spill] sm:$0xff] }
 0x396   : > { %4438 = vmatpush3.bf16.xpose.msra.mxu1 %v3042_v25  ;;  %4453 = vmatprep.mubr.msk.bf16.mxu1 %vm1671_vm2, %v6560_v41  ;;  %v7263_v21 = vpack.c.bf16 %v7261_v50, %v7262_v12  ;;  %v7284_v25 = vld [vmem:[#allocation29_spill] sm:$0xff] }
 0x397   : > { %5047 = vmatprep.subr.msk.bf16.mxu1 %vm1671_vm2, %v7260_v27  ;;  %v6845_v27 = vld [vmem:[#allocation2 + $0x8a] sm:$0xff] }
 0x398   : > { %4864 = vmatpush3.bf16.xpose.msra.mxu0 %v3837_v23  ;;  %v3045_v45 = vsel %vm1671_vm2, %v7263_v21, 0  ;;  %v7285_v23 = vld [vmem:[#allocation30_spill] sm:$0xff]  ;;  %v3013_v46 = vpack.c.bf16 %v6522_v20, %v6845_v27  ;;  %v3222_v20 = vld [vmem:[#allocation2 + $0xc8] sm:$0xff] }
 0x399   : > { %4865 = vmatprep.subr.bf16.mxu0 %v7145_v51  ;;  %v7286_v57 = vpack.c.bf16 %v7284_v25, %v7285_v23 }
 0x39a   : > { %v3063_v24 = vsel %vm1671_vm2, %v3013_v46, 0  ;;  %v3234_v46 = vld [vmem:[#allocation2 + $0x128] sm:$0xff] }
 0x39e   : > { %4440 = vmatpush3.bf16.xpose.msra.mxu1 %v3045_v45  ;;  %v3220_v45 = vld [vmem:[#allocation2 + $0xb8] sm:$0xff] }
 0x39f   : > { %5048 = vmatprep.subr.msk.bf16.mxu1 %vm1671_vm2, %v7267_v19 }
 0x3a0   : > { %4866 = vmatpush3.bf16.xpose.msra.mxu0 %v3840_v39  ;;  %v3219_v39 = vld [vmem:[#allocation2 + $0xb0] sm:$0xff] }
 0x3a1   : > { %4867 = vmatprep.subr.bf16.mxu0 %v7145_v51  ;;  %v3259_v19 = vpack.c.bf16 %v3220_v45, %v3219_v39  ;;  %v3218_v39 = vld [vmem:[#allocation2 + $0xa8] sm:$0xff] }
 0x3a6   : > { %4442 = vmatpush3.bf16.xpose.msra.mxu1 %v3048_v36  ;;  %v3260_v36 = vpack.c.bf16 %v3222_v20, %v3221_v63 }
 0x3a7   : > { %5049 = vmatprep.subr.msk.bf16.mxu1 %vm1671_vm2, %v7271_v40  ;;  %v3252_v40 = vpack.c.bf16 %v3206_v22, %v3205_v56  ;;  %v7291_v22 = vld [vmem:[#allocation39_spill] sm:$0xff] }
 0x3a8   : > { %4868 = vmatpush3.bf16.xpose.msra.mxu0 %v3843_v55  ;;  %v2216_v13 = vpop.f32.mrb[8].mxu1  ;;  %v3203_v55 = vld [vmem:[#allocation2 + $0x30] sm:$0xff] }
 0x3a9   : > { %4869 = vmatprep.subr.bf16.mxu0 %v7145_v51  ;;  %v2217_v3 = vadd.f32 %v2216_v13, %v6632_v17  ;;  %v4733_v59 = vpop.f32.mrb[9].mxu1  ;;  %v3051_v51 = vsel %vm1671_vm2, %v7274_v49, 0  ;;  %v3251_v6 = vpack.c.bf16 %v3204_v5, %v3203_v55  ;;  %v3224_v13 = vld [vmem:[#allocation2 + $0xd8] sm:$0xff] }
 0x3aa   : > { %v2219_v4 = vpop.f32.mrb[10].mxu1  ;;  %v3261_v59 = vpack.c.bf16 %v3224_v13, %v3223_v52  ;;  %v3228_v49 = vld [vmem:[#allocation2 + $0xf8] sm:$0xff]  ;;  %v7295_v52 = vld [vmem:[#allocation41_spill] sm:$0xff] }
 0x3ab   : > { %v2220_v47 = vadd.f32 %v2219_v4, %v6637_v37  ;;  %v2464_v9 = vadd.f32 %v6619_v61, %v2217_v3  ;;  %v4734_v16 = vpop.f32.mrb[11].mxu1  ;;  %v7275_v37 = vpack.c.bf16 %v7214_v44, %v7213_v7  ;;  %v7279_v7 = vpack.c.bf16 %v7216_v30, %v7215_v0  ;;  %v7280_v44 = vld [vmem:[#allocation28_spill] sm:$0xff]  ;;  %v3208_v4 = vld [vmem:[#allocation2 + $0x58] sm:$0xff] }
 0x3ac   : > { %v3060_v0 = vsel %vm1671_vm2, %v7286_v57, 0  ;;  %v7287_v30 = vld [vmem:[#allocation84_spill] sm:$0xff]  ;;  %v3287_v26 = vsel %vm1671_vm2, %v3251_v6, 0  ;;  %v3290_v3 = vsel %vm1671_vm2, %v3252_v40, 0  ;;  %v3226_v16 = vld [vmem:[#allocation2 + $0xe8] sm:$0xff]  ;;  %v3216_v57 = vld [vmem:[#allocation2 + $0x98] sm:$0xff] }
 0x3ad   : > { %v2709_v60 = vadd.f32 %v6689_v8, %v2464_v9  ;;  %v2467_v48 = vadd.f32 %v6635_v53, %v2220_v47  ;;  %v6817_v53 = vld [vmem:[%s6982_s3 + $0x40] sm:$0xff]   ;;  %v3021_v33 = vpack.c.bf16 %v6836_v35, %v7287_v30 }
 0x3ae   : > { %4444 = vmatpush3.bf16.xpose.msra.mxu1 %v3051_v51  ;;  %v7276_v8 = vld [vmem:[#allocation24_spill] sm:$0xff]  ;;  %v3227_v51 = vld [vmem:[#allocation2 + $0xf0] sm:$0xff] }
 0x3af   : > { %v2712_v17 = vadd.f32 %v6691_v43, %v2467_v48  ;;  %v2954_v34 = vadd.f32 %v2945_v28, %v2709_v60  ;;  %5050 = vmatprep.subr.msk.bf16.mxu1 %vm1671_vm2, %v7275_v37  ;;  %v7278_v62 = vpack.c.bf16 %v7276_v8, %v7277_v32  ;;  %v7281_v43 = vld [vmem:[#allocation31_spill] sm:$0xff]  ;;  %v3225_v9 = vld [vmem:[#allocation2 + $0xe0] sm:$0xff] }
 0x3b0   : > { %4870 = vmatpush3.bf16.xpose.msra.mxu0 %v3846_v11  ;;  %v7282_v28 = vpack.c.bf16 %v7280_v44, %v7281_v43  ;;  %v3262_v60 = vpack.c.bf16 %v3226_v16, %v3225_v9  ;;  %v3209_v48 = vld [vmem:[#allocation2 + $0x60] sm:$0xff]  ;;  %v3212_v37 = vld [vmem:[#allocation2 + $0x78] sm:$0xff]  ;;  %v3214_v43 = vld [vmem:[#allocation2 + $0x88] sm:$0xff] }
 0x3b1   : > { %v2957_v61 = vadd.f32 %v2948_v42, %v2712_v17  ;;  %v3054_v2 = vsel %vm1671_vm2, %v7278_v62, 0  ;;  %v3254_v10 = vpack.c.bf16 %v3210_v29, %v3209_v48  ;;  %v3229_v32 = vld [vmem:[#allocation2 + $0x100] sm:$0xff]  ;;  %v3230_v62 = vld [vmem:[#allocation2 + $0x108] sm:$0xff] }
 0x3b2   : > { %v3057_v42 = vsel %vm1671_vm2, %v7282_v28, 0  ;;  %v3213_v44 = vld [vmem:[#allocation2 + $0x80] sm:$0xff]  ;;  %v7301_v9 = vld [vmem:[#allocation53_spill] sm:$0xff] }
 0x3b3   : > { %v3296_v17 = vsel %vm1671_vm2, %v3254_v10, 0  ;;  %v3256_v28 = vpack.c.bf16 %v3214_v43, %v3213_v44  ;;  %v7292_v40 = vld [vmem:[#allocation40_spill] sm:$0xff] }
 0x3b4   : > { %v7293_v13 = vpack.c.bf16 %v7291_v22, %v7292_v40  ;;  %v7306_v10 = vld [vmem:[#allocation56_spill] sm:$0xff]  ;;  %v7327_v22 = vld [vmem:[#allocation67_spill] sm:$0xff]  ;;  %v7328_v40 = vld [vmem:[#allocation66_spill] sm:$0xff] }
 0x3b5   : > { %v3302_v25 = vsel %vm1671_vm2, %v3256_v28, 0  ;;  %v7318_v28 = vld [vmem:[#allocation71_spill] sm:$0xff] }
 0x3b6   : > { %4446 = vmatpush3.bf16.xpose.msra.mxu1 %v3054_v2 }
 0x3b7   : > { %4872 = vmatmul.mubr.msk.bf16.vlgmr.msra.gmra.mrb[72].mxu0 %vm1671_vm2, %v6817_v53  ;;  %5051 = vmatprep.subr.msk.bf16.mxu1 %vm1671_vm2, %v7279_v7  ;;  %v3264_v7 = vpack.c.bf16 %v3230_v62, %v3229_v32  ;;  %v7313_v32 = vld [vmem:[#allocation68_spill] sm:$0xff] }
 0x3be   : > { %4448 = vmatpush3.bf16.xpose.msra.mxu1 %v3057_v42  ;;  %v3232_v42 = vld [vmem:[#allocation2 + $0x118] sm:$0xff] }
 0x3bf   : > { %5052 = vmatprep.subr.msk.bf16.mxu1 %vm1671_vm2, %v3020_v18  ;;  %v3231_v18 = vld [vmem:[#allocation2 + $0x110] sm:$0xff] }
 0x3c0   : > { %v3265_v23 = vpack.c.bf16 %v3232_v42, %v3231_v18  ;;  %v7319_v42 = vld [vmem:[#allocation70_spill] sm:$0xff] }
 0x3c1   : > { %v7320_v18 = vpack.c.bf16 %v7318_v28, %v7319_v42 }
 0x3c6   : > { %4450 = vmatpush3.bf16.xpose.msra.mxu1 %v3060_v0  ;;  %v3215_v0 = vld [vmem:[#allocation2 + $0x90] sm:$0xff] }
 0x3c7   : > { %5053 = vmatprep.subr.msk.bf16.mxu1 %vm1671_vm2, %v3021_v33  ;;  %v3257_v33 = vpack.c.bf16 %v3216_v57, %v3215_v0  ;;  %v7322_v57 = vld [vmem:[#allocation60_spill] sm:$0xff] }
 0x3ca   : > { %v3190_v50 = vpop.f32.mrb[60].mxu0 }
 0x3cb   : > { %v6849_v12 = vadd.f32 %v3190_v50, %v2954_v34  ;;  %v4813_v21 = vpop.f32.mrb[61].mxu0  ;;  %v3263_v34 = vpack.c.bf16 %v3228_v49, %v3227_v51  ;;  %v3233_v50 = vld [vmem:[#allocation2 + $0x120] sm:$0xff]  ;;  %v7307_v49 = vld [vmem:[#allocation55_spill] sm:$0xff] }
 0x3cc   : > { %v3193_v15 = vpop.f32.mrb[62].mxu0  ;;  %v3305_v21 = vsel %vm1671_vm2, %v3257_v33, 0  ;;  %v3266_v45 = vpack.c.bf16 %v3234_v46, %v3233_v50  ;;  %v7308_v51 = vpack.c.bf16 %v7306_v10, %v7307_v49  ;;  %v3478_v46 = vld [vmem:[#allocation2 + $0x121] sm:$0xff] }
 0x3cd   : > { %v6851_v58 = vadd.f32 %v3193_v15, %v2957_v61  ;;  %v4814_v1 = vpop.f32.mrb[63].mxu0  ;;  %v3211_v61 = vld [vmem:[#allocation2 + $0x70] sm:$0xff]  ;;  %v3217_v15 = vld [vmem:[#allocation2 + $0xa0] sm:$0xff] }
 0x3ce   : > { %4452 = vmatpush3.bf16.xpose.msra.mxu1 %v3063_v24  ;;  %v3255_v8 = vpack.c.bf16 %v3212_v37, %v3211_v61  ;;  %v3258_v24 = vpack.c.bf16 %v3218_v39, %v3217_v15  ;;  %v7325_v15 = vld [vmem:[#allocation63_spill] sm:$0xff]  ;;  %v3715_v49 = vld [vmem:[#allocation2 + $0xe2] sm:$0xff] }
 0x3cf   : > { %5054 = vmatprep.subr.msk.bf16.mxu1 %vm1671_vm2, %v3259_v19 }
 0x3d0   : > { %v3299_v2 = vsel %vm1671_vm2, %v3255_v8, 0  ;;  %v3308_v20 = vsel %vm1671_vm2, %v3258_v24, 0  ;;  %v7312_v8 = vld [vmem:[#allocation69_spill] sm:$0xff] }
 0x3d1   : > { %v7314_v62 = vpack.c.bf16 %v7312_v8, %v7313_v32  ;;  %v3718_v32 = vld [vmem:[#allocation2 + $0xfa] sm:$0xff] }
 0x3d5   : > { %4454 = vmatmul.mubr.msk.bf16.vlgmr.msra.gmra.mrb[0].mxu1 %vm1671_vm2, %v6560_v41  ;;  %v3207_v41 = vld [vmem:[#allocation2 + $0x50] sm:$0xff] }
 0x3d6   : > { %4465 = vmatpush3.bf16.xpose.msra.mxu1 %v3287_v26  ;;  %4480 = vmatprep.mubr.msk.bf16.mxu1 %vm1671_vm2, %v6653_v38  ;;  %v3253_v47 = vpack.c.bf16 %v3208_v4, %v3207_v41  ;;  %v7288_v26 = vld [vmem:[#allocation38_spill] sm:$0xff]  ;;  %v7298_v4 = vld [vmem:[#allocation43_spill] sm:$0xff] }
 0x3d7   : > { %5055 = vmatprep.subr.msk.bf16.mxu1 %vm1671_vm2, %v3260_v36  ;;  %v7289_v36 = vld [vmem:[#allocation42_spill] sm:$0xff] }
 0x3d8   : > { %v3293_v11 = vsel %vm1671_vm2, %v3253_v47, 0  ;;  %v7290_v56 = vpack.c.bf16 %v7288_v26, %v7289_v36 }
 0x3de   : > { %4467 = vmatpush3.bf16.xpose.msra.mxu1 %v3290_v3 }
 0x3df   : > { %5056 = vmatprep.subr.msk.bf16.mxu1 %vm1671_vm2, %v3261_v59  ;;  %v7297_v59 = vld [vmem:[#allocation44_spill] sm:$0xff] }
 0x3e0   : > { %v7299_v41 = vpack.c.bf16 %v7297_v59, %v7298_v4  ;;  %v3711_v59 = vld [vmem:[#allocation2 + $0xc2] sm:$0xff]  ;;  %v3712_v4 = vld [vmem:[#allocation2 + $0xca] sm:$0xff] }
 0x3e2   : > { %v3535_v47 = vsel %vm1671_vm2, %v7299_v41, 0  ;;  %v3750_v41 = vpack.c.bf16 %v3712_v4, %v3711_v59 }
 0x3e6   : > { %4469 = vmatpush3.bf16.xpose.msra.mxu1 %v3293_v11  ;;  %v7303_v11 = vld [vmem:[#allocation45_spill] sm:$0xff] }
 0x3e7   : > { %5057 = vmatprep.subr.msk.bf16.mxu1 %vm1671_vm2, %v3262_v60  ;;  %v7304_v60 = vld [vmem:[#allocation47_spill] sm:$0xff] }
 0x3e8   : > { %v7305_v48 = vpack.c.bf16 %v7303_v11, %v7304_v60  ;;  %v3713_v11 = vld [vmem:[#allocation2 + $0xd2] sm:$0xff] }
 0x3ea   : > { %v3538_v29 = vsel %vm1671_vm2, %v7305_v48, 0 }
 0x3ee   : > { %4471 = vmatpush3.bf16.xpose.msra.mxu1 %v3296_v17  ;;  %v7309_v17 = vld [vmem:[#allocation58_spill] sm:$0xff] }
 0x3ef   : > { %5058 = vmatprep.subr.msk.bf16.mxu1 %vm1671_vm2, %v3263_v34  ;;  %v7310_v34 = vld [vmem:[#allocation52_spill] sm:$0xff] }
 0x3f0   : > { %v7311_v37 = vpack.c.bf16 %v7309_v17, %v7310_v34 }
 0x3f2   : > { %v3541_v61 = vsel %vm1671_vm2, %v7311_v37, 0  ;;  %v3699_v37 = vld [vmem:[#allocation2 + $0x62] sm:$0xff] }
 0x3f6   : > { %4473 = vmatpush3.bf16.xpose.msra.mxu1 %v3299_v2  ;;  %v7315_v2 = vld [vmem:[#allocation57_spill] sm:$0xff] }
 0x3f7   : > { %5059 = vmatprep.subr.msk.bf16.mxu1 %vm1671_vm2, %v3264_v7  ;;  %v7316_v7 = vld [vmem:[#allocation59_spill] sm:$0xff] }
 0x3f8   : > { %v7317_v44 = vpack.c.bf16 %v7315_v2, %v7316_v7 }
 0x3fa   : > { %v3544_v43 = vsel %vm1671_vm2, %v7317_v44, 0  ;;  %v3702_v44 = vld [vmem:[#allocation2 + $0x7a] sm:$0xff] }
 0x3fe   : > { %4475 = vmatpush3.bf16.xpose.msra.mxu1 %v3302_v25  ;;  %v3477_v25 = vld [vmem:[#allocation2 + $0x119] sm:$0xff] }
 0x3ff   : > { %5060 = vmatprep.subr.msk.bf16.mxu1 %vm1671_vm2, %v3265_v23  ;;  %v7321_v23 = vld [vmem:[#allocation62_spill] sm:$0xff]  ;;  %v3510_v50 = vpack.c.bf16 %v3477_v25, %v6741_v54  ;;  %v3710_v54 = vld [vmem:[#allocation2 + $0xba] sm:$0xff]  ;;  %v7330_v25 = vpack.c.bf16 %v7287_v30, %v7283_v14 }
 0x400   : > { %v7323_v0 = vpack.c.bf16 %v7321_v23, %v7322_v57  ;;  %v3722_v57 = vld [vmem:[#allocation2 + $0x11a] sm:$0xff] }
 0x402   : > { %v3547_v33 = vsel %vm1671_vm2, %v7323_v0, 0 }
 0x406   : > { %4477 = vmatpush3.bf16.xpose.msra.mxu1 %v3305_v21  ;;  %v3479_v21 = vld [vmem:[#allocation2 + $0x129] sm:$0xff] }
 0x407   : > { %5061 = vmatprep.subr.msk.bf16.mxu1 %vm1671_vm2, %v3266_v45  ;;  %v7324_v45 = vld [vmem:[#allocation61_spill] sm:$0xff]  ;;  %v3511_v24 = vpack.c.bf16 %v3479_v21, %v3478_v46  ;;  %v3705_v46 = vld [vmem:[#allocation2 + $0x92] sm:$0xff] }
 0x408   : > { %v7326_v39 = vpack.c.bf16 %v7324_v45, %v7325_v15  ;;  %v3723_v45 = vld [vmem:[#allocation2 + $0x122] sm:$0xff]  ;;  %v3724_v15 = vld [vmem:[#allocation2 + $0x12a] sm:$0xff] }
 0x409   : > { %v3756_v30 = vpack.c.bf16 %v3724_v15, %v3723_v45 }
 0x40a   : > { %v3435_v1 = vpop.f32.mrb[64].mxu0 }
 0x40b   : > { %v3444_v19 = vadd.f32 %v3435_v1, %v6849_v12  ;;  %v4833_v5 = vpop.f32.mrb[65].mxu0  ;;  %v3532_v12 = vsel %vm1671_vm2, %v7293_v13, 0  ;;  %v3550_v1 = vsel %vm1671_vm2, %v7326_v39, 0  ;;  %v7329_v13 = vpack.c.bf16 %v7327_v22, %v7328_v40  ;;  %v3943_v39 = vpop.permute.xlu0 %3942 }
 0x40c   : > { %v3438_v55 = vpop.f32.mrb[66].mxu0 }
 0x40d   : > { %v3447_v6 = vadd.f32 %v3438_v55, %v6851_v58  ;;  %v4834_v63 = vpop.f32.mrb[67].mxu0  ;;  %v7294_v58 = vld [vmem:[#allocation46_spill] sm:$0xff] }
 0x40e   : > { %4479 = vmatpush3.bf16.xpose.msra.mxu1 %v3308_v20  ;;  %v7296_v3 = vpack.c.bf16 %v7294_v58, %v7295_v52  ;;  %v3709_v20 = vld [vmem:[#allocation2 + $0xb2] sm:$0xff]  ;;  %v3694_v52 = vld [vmem:[#allocation2 + $0x3a] sm:$0xff] }
 0x40f   : > { %5062 = vmatprep.subr.msk.bf16.mxu1 %vm1671_vm2, %v7290_v56  ;;  %v3749_v58 = vpack.c.bf16 %v3710_v54, %v3709_v20  ;;  %v3948_v54 = vpop.permute.xlu0 %3947 }
 0x415   : > { %4481 = vmatmul.mubr.msk.bf16.vlgmr.msra.gmra.mrb[0].mxu1 %vm1671_vm2, %v6653_v38  ;;  %v7300_v38 = vld [vmem:[#allocation54_spill] sm:$0xff] }
 0x416   : > { %4492 = vmatpush3.bf16.xpose.msra.mxu1 %v3532_v12  ;;  %4507 = vmatprep.mubr.msk.bf16.mxu1 %vm1671_vm2, %v6727_v31  ;;  %v7302_v16 = vpack.c.bf16 %v7300_v38, %v7301_v9  ;;  %v3553_v12 = vsel %vm1671_vm2, %v7329_v13, 0  ;;  %v3696_v38 = vld [vmem:[#allocation2 + $0x4a] sm:$0xff] }
 0x417   : > { %5063 = vmatprep.subr.msk.bf16.mxu1 %vm1671_vm2, %v7296_v3  ;;  %v3693_v3 = vld [vmem:[#allocation2 + $0x32] sm:$0xff] }
 0x41e   : > { %4494 = vmatpush3.bf16.xpose.msra.mxu1 %v3535_v47  ;;  %v3695_v47 = vld [vmem:[#allocation2 + $0x42] sm:$0xff] }
 0x41f   : > { %5064 = vmatprep.subr.msk.bf16.mxu1 %vm1671_vm2, %v7302_v16  ;;  %v3742_v9 = vpack.c.bf16 %v3696_v38, %v3695_v47  ;;  %v3714_v16 = vld [vmem:[#allocation2 + $0xda] sm:$0xff] }
 0x420   : > { %v3751_v48 = vpack.c.bf16 %v3714_v16, %v3713_v11 }
 0x421   : > { %v3780_v60 = vsel %vm1671_vm2, %v3742_v9, 0 }
 0x426   : > { %4496 = vmatpush3.bf16.xpose.msra.mxu1 %v3538_v29  ;;  %v3697_v29 = vld [vmem:[#allocation2 + $0x52] sm:$0xff] }
 0x427   : > { %5065 = vmatprep.subr.msk.bf16.mxu1 %vm1671_vm2, %v7308_v51  ;;  %v3716_v51 = vld [vmem:[#allocation2 + $0xea] sm:$0xff] }
 0x428   : > { %v3752_v34 = vpack.c.bf16 %v3716_v51, %v3715_v49 }
 0x42e   : > { %4498 = vmatpush3.bf16.xpose.msra.mxu1 %v3541_v61  ;;  %v3700_v61 = vld [vmem:[#allocation2 + $0x6a] sm:$0xff] }
 0x42f   : > { %5066 = vmatprep.subr.msk.bf16.mxu1 %vm1671_vm2, %v7314_v62  ;;  %v3744_v8 = vpack.c.bf16 %v3700_v61, %v3699_v37  ;;  %v3717_v62 = vld [vmem:[#allocation2 + $0xf2] sm:$0xff] }
 0x430   : > { %v3753_v7 = vpack.c.bf16 %v3718_v32, %v3717_v62 }
 0x431   : > { %v3786_v2 = vsel %vm1671_vm2, %v3744_v8, 0 }
 0x436   : > { %4500 = vmatpush3.bf16.xpose.msra.mxu1 %v3544_v43  ;;  %v3701_v43 = vld [vmem:[#allocation2 + $0x72] sm:$0xff] }
 0x437   : > { %5067 = vmatprep.subr.msk.bf16.mxu1 %vm1671_vm2, %v7320_v18  ;;  %v3745_v28 = vpack.c.bf16 %v3702_v44, %v3701_v43  ;;  %v3703_v18 = vld [vmem:[#allocation2 + $0x82] sm:$0xff] }
 0x438   : > { %v3746_v23 = vpack.c.bf16 %v6845_v27, %v3703_v18  ;;  %v3707_v27 = vld [vmem:[#allocation2 + $0xa2] sm:$0xff] }
 0x439   : > { %v3789_v42 = vsel %vm1671_vm2, %v3745_v28, 0 }
 0x43a   : > { %v3792_v0 = vsel %vm1671_vm2, %v3746_v23, 0 }
 0x43e   : > { %4502 = vmatpush3.bf16.xpose.msra.mxu1 %v3547_v33  ;;  %v3755_v33 = vpack.c.bf16 %v3722_v57, %v6836_v35 }
 0x43f   : > { %5068 = vmatprep.subr.msk.bf16.mxu1 %vm1671_vm2, %v3510_v50  ;;  %v3706_v50 = vld [vmem:[#allocation2 + $0x9a] sm:$0xff] }
 0x440   : > { %v3747_v21 = vpack.c.bf16 %v3706_v50, %v3705_v46 }
 0x442   : > { %v3795_v14 = vsel %vm1671_vm2, %v3747_v21, 0 }
 0x446   : > { %4504 = vmatpush3.bf16.xpose.msra.mxu1 %v3550_v1  ;;  %v3708_v1 = vld [vmem:[#allocation2 + $0xaa] sm:$0xff] }
 0x447   : > { %5069 = vmatprep.subr.msk.bf16.mxu1 %vm1671_vm2, %v3511_v24  ;;  %v3748_v35 = vpack.c.bf16 %v3708_v1, %v3707_v27 }
 0x449   : > { %v3798_v40 = vsel %vm1671_vm2, %v3748_v35, 0 }
 0x44a   : > { %v3680_v5 = vpop.f32.mrb[68].mxu0 }
 0x44b   : > { %v6935_v55 = vadd.f32 %v3680_v5, %v3444_v19  ;;  %v4853_v63 = vpop.f32.mrb[69].mxu0  ;;  %v3741_v19 = vpack.c.bf16 %v3694_v52, %v3693_v3 }
 0x44c   : > { %v3683_v26 = vpop.f32.mrb[70].mxu0 }
 0x44d   : > { %v6937_v36 = vadd.f32 %v3683_v26, %v3447_v6  ;;  %v4854_v56 = vpop.f32.mrb[71].mxu0  ;;  %v3777_v6 = vsel %vm1671_vm2, %v3741_v19, 0 }
 0x44e   : > { %4506 = vmatpush3.bf16.xpose.msra.mxu1 %v3553_v12 }
 0x44f   : > { %5070 = vmatprep.subr.msk.bf16.mxu1 %vm1671_vm2, %v3749_v58 }
 0x455   : > { %4508 = vmatmul.mubr.msk.bf16.vlgmr.msra.gmra.mrb[0].mxu1 %vm1671_vm2, %v6727_v31  ;;  %v3698_v31 = vld [vmem:[#allocation2 + $0x5a] sm:$0xff] }
 0x456   : > { %4519 = vmatpush3.bf16.xpose.msra.mxu1 %v3777_v6  ;;  %4534 = vmatprep.mubr.msk.bf16.mxu1 %vm1671_vm2, %v6817_v53  ;;  %v3743_v10 = vpack.c.bf16 %v3698_v31, %v3697_v29 }
 0x457   : > { %5071 = vmatprep.subr.msk.bf16.mxu1 %vm1671_vm2, %v3750_v41 }
 0x458   : > { %v3783_v17 = vsel %vm1671_vm2, %v3743_v10, 0 }
 0x45e   : > { %4521 = vmatpush3.bf16.xpose.msra.mxu1 %v3780_v60 }
 0x45f   : > { %5072 = vmatprep.subr.msk.bf16.mxu1 %vm1671_vm2, %v3751_v48 }
 0x466   : > { %4523 = vmatpush3.bf16.xpose.msra.mxu1 %v3783_v17 }
 0x467   : > { %5073 = vmatprep.subr.msk.bf16.mxu1 %vm1671_vm2, %v3752_v34 }
 0x46e   : > { %4525 = vmatpush3.bf16.xpose.msra.mxu1 %v3786_v2 }
 0x46f   : > { %5074 = vmatprep.subr.msk.bf16.mxu1 %vm1671_vm2, %v3753_v7 }
 0x476   : > { %4527 = vmatpush3.bf16.xpose.msra.mxu1 %v3789_v42 }
 0x477   : > { %5075 = vmatprep.subr.msk.bf16.mxu1 %vm1671_vm2, %v7330_v25 }
 0x47e   : > { %4529 = vmatpush3.bf16.xpose.msra.mxu1 %v3792_v0 }
 0x47f   : > { %5076 = vmatprep.subr.msk.bf16.mxu1 %vm1671_vm2, %v3755_v33 }
 0x486   : > { %4531 = vmatpush3.bf16.xpose.msra.mxu1 %v3795_v14 }
 0x487   : > { %5077 = vmatprep.subr.msk.bf16.mxu1 %vm1671_vm2, %v3756_v30 }
 0x48a   : > { %v3925_v24 = vpop.f32.mrb[72].mxu0 }
 0x48b   : > { %v3934_v5 = vadd.f32 %v3925_v24, %v6935_v55  ;;  %v4873_v63 = vpop.f32.mrb[73].mxu0 }
 0x48c   : > { %v3928_v20 = vpop.f32.mrb[74].mxu0 }
 0x48d   : > { %v3952_v26 = vadd.f32 %v3943_v39, %v3934_v5  ;;  %v3937_v56 = vadd.f32 %v3928_v20, %v6937_v36  ;;  %v4874_v22 = vpop.f32.mrb[75].mxu0 }
 0x48e   : > { %4533 = vmatpush3.bf16.xpose.msra.mxu1 %v3798_v40 }
 0x48f   : > { %v3958_v13 = vmax.f32 %v3952_v26, 0.0  ;;  %v3955_v12 = vadd.f32 %v3948_v54, %v3937_v56 }
 0x491   : > { %3964 = vst [vmem:[%s224_s11 + $0x10] sm:$0xff] %v3958_v13  ;;  %v3961_v58 = vmax.f32 %v3955_v12, 0.0 }
 0x493   : > { %3967 = vst [vmem:[%s224_s11 + $0x28] sm:$0xff] %v3961_v58 }
 0x495   : > { %4535 = vmatmul.mubr.msk.bf16.vlgmr.msra.gmra.mrb[0].mxu1 %vm1671_vm2, %v6817_v53 }
 0x568   : > { %v3882_v55 = vpop.f32.mrb[0].mxu1 }
 0x569   : > { %v3950_v52 = vadd.f32 %v3943_v39, %v3882_v55  ;;  %v3884_v3 = vpop.f32.mrb[1].mxu1 }
 0x56a   : > { %v3951_v36 = vadd.f32 %v3943_v39, %v3884_v3  ;;  %v3886_v19 = vpop.f32.mrb[2].mxu1 }
 0x56b   : > { %v3956_v59 = vmax.f32 %v3950_v52, 0.0  ;;  %v3953_v4 = vadd.f32 %v3948_v54, %v3886_v19  ;;  %v3888_v6 = vpop.f32.mrb[3].mxu1 }
 0x56c   : > { %v3957_v41 = vmax.f32 %v3951_v36, 0.0  ;;  %v3954_v47 = vadd.f32 %v3948_v54, %v3888_v6 }
 0x56d   : > { %3962 = vst [vmem:[%s224_s11] sm:$0xff] %v3956_v59  ;;  %v3959_v38 = vmax.f32 %v3953_v4, 0.0 }
 0x56e   : > { %3963 = vst [vmem:[%s224_s11 + $0x8] sm:$0xff] %v3957_v41  ;;  %v3960_v9 = vmax.f32 %v3954_v47, 0.0 }
 0x56f   : > { %3965 = vst [vmem:[%s224_s11 + $0x18] sm:$0xff] %v3959_v38 }
 0x570   : > { %3966 = vst [vmem:[%s224_s11 + $0x20] sm:$0xff] %v3960_v9 }
 0x571 PF: > { %s15_s18 = sadd.s32 1, %s5244_s18  }
 0x572   : > { %p12_p4 = scmp.ge.s32.totalorder %s15_s18, 4  }
 0x574   :  { %14 = sbr.rel (!%p12_p4) target bundleno = 1 (0x1), region = 80 }

</bundles_post_ra>
